<compile_context>
chip_gen: v6e
topology: v6e:2x2x1
jax: 0.10.0
libtpu: 0.0.40
codegen_flags: <defaults>
</compile_context>

<pallas_src>
import functools
import numpy as np

import jax
import jax.numpy as jnp
from jax import lax
from jax.experimental import pallas as pl
from jax.experimental.pallas import tpu as pltpu


# ---------------------------------------------------------------------------
# Kernel: one fused ResGCN 'Basic' module (spatial GCN + temporal conv)
# ---------------------------------------------------------------------------
def _resgcn_basic_module_kernel(
        x_ref, aT_ref, wg_ref, s1_ref, h1v_ref, wt2_ref, s2_ref, h2_ref, *rest,
        K, T, V, c_out, win, res_mode):
    if res_mode == 2:
        wr_ref, sr_ref, hr_ref, o_ref, hp_ref, slab_ref = rest
    else:
        o_ref, hp_ref, slab_ref = rest

    pad = (win - 1) // 2
    x2d = x_ref[0]                                     # (T*V, c_in)  f32
    x_bf = x2d.astype(jnp.bfloat16)

    # ---- SpatialGraphConv 1x1 conv (input BN + bias folded on the wrapper side) ---
    y = jnp.dot(x_bf, wg_ref[...], preferred_element_type=jnp.float32)  # (T*V, K*c_out)
    y_bf = y.astype(jnp.bfloat16).reshape(T, V, K * c_out)

    # ---- graph aggregation: z[t,w,c] = sum_{k,v} A_eff[k,v,w] * y[t,v,(k,c)] -------
    # Per-frame batched matmul over T with the small (V,V) operator (no kron(I_T, A)).
    z = jnp.zeros((T, V, c_out), jnp.float32)
    for k in range(K):
        a_b = jnp.broadcast_to(aT_ref[k][None, :, :], (T, V, V))        # (T, W, V) bf16
        y_k = y_bf[:, :, k * c_out:(k + 1) * c_out]                     # (T, V, c_out)
        z = z + lax.dot_general(
            a_b, y_k,
            dimension_numbers=(((2,), (1,)), ((0,), (0,))),
            preferred_element_type=jnp.float32)                         # (T, W, c_out)

    # ---- spatial BN (gcn bias folded into per-joint shift h1v) + ReLU --------------
    h = jnp.maximum(z * s1_ref[0] + h1v_ref[...], 0.0)                  # (T, V, c_out) f32
    h_bf = h.reshape(T * V, c_out).astype(jnp.bfloat16)

    # ---- temporal conv (win x 1), stride 1, zero "same" padding, via im2col --------
    # hp rows are (t_padded, v), t-major; only the pad rows are re-zeroed each step.
    zpad = jnp.zeros((pad * V, c_out), jnp.bfloat16)
    hp_ref[0:pad * V, :] = zpad
    hp_ref[(pad + T) * V:(2 * pad + T) * V, :] = zpad
    hp_ref[pad * V:(pad + T) * V, :] = h_bf
    for dt in range(win):
        slab_ref[:, dt * c_out:(dt + 1) * c_out] = hp_ref[dt * V: dt * V + T * V, :]
    t_out = jnp.dot(slab_ref[...], wt2_ref[...],
                    preferred_element_type=jnp.float32)                 # (T*V, c_out)
    t_out = t_out * s2_ref[...] + h2_ref[...]          # temporal bias folded into h2

    # ---- module residual ------------------------------------------------------------
    if res_mode == 0:                                  # initial module: residual = 0
        out = jnp.maximum(t_out, 0.0)
    elif res_mode == 1:                                # identity (stride 1, c_in == c_out)
        out = jnp.maximum(t_out + x2d, 0.0)
    else:                                              # 1x1 conv + BN residual
        r = jnp.dot(x_bf, wr_ref[...], preferred_element_type=jnp.float32)
        out = jnp.maximum(t_out + r * sr_ref[...] + hr_ref[...], 0.0)

    o_ref[0] = out.astype(o_ref.dtype)


def resgcn_module_apply(x, prep):
    N, TV, c_in = x.shape
    T, V, K = prep['T'], prep['V'], prep['K']
    c_out, win, res_mode = prep['c_out'], prep['win'], prep['res_mode']
    pad = (win - 1) // 2

    inputs = [x, prep['a'], prep['wg'], prep['s1'], prep['h1v'],
              prep['wt2'], prep['s2'], prep['h2']]
    if res_mode == 2:
        inputs += [prep['wr'], prep['sr'], prep['hr']]

    def whole(a):
        nd = a.ndim
        return pl.BlockSpec(a.shape, lambda n, _nd=nd: (0,) * _nd)

    in_specs = [pl.BlockSpec((1, TV, c_in), lambda n: (n, 0, 0))]
    in_specs += [whole(a) for a in inputs[1:]]

    kernel = functools.partial(_resgcn_basic_module_kernel,
                               K=K, T=T, V=V, c_out=c_out, win=win, res_mode=res_mode)

    # TODO(synk): for very large T (real gait clips) add a T-tile grid axis with a
    # pad-frame halo, and pack several batch samples per step on v5e/v6e.
    return pl.pallas_call(
        kernel,
        out_shape=jax.ShapeDtypeStruct((N, TV, c_out), jnp.float32),
        grid=(N,),
        in_specs=in_specs,
        out_specs=pl.BlockSpec((1, TV, c_out), lambda n: (n, 0, 0)),
        scratch_shapes=[pltpu.VMEM(((T + 2 * pad) * V, c_out), jnp.bfloat16),
                        pltpu.VMEM((TV, win * c_out), jnp.bfloat16)],
        compiler_params=pltpu.CompilerParams(dimension_semantics=("parallel",)),
    )(*inputs)


# ---------------------------------------------------------------------------
# Trace-time parameter preparation (folds, bf16 casts)
# ---------------------------------------------------------------------------
def _prep_module(p, A, T, V, input_bn=None, win=9):
    K = A.shape[0]
    c_out = p['s1'].shape[-1]

    wg = p['wg'].astype(jnp.float32)               # (c_in, K*c_out)
    bg = p['bg'][0].astype(jnp.float32)            # (K*c_out,)
    if input_bn is not None:                       # fold the branch input BN into module 0
        s_in, h_in = input_bn                      # (1, c_in) each
        bg = bg + h_in[0] @ wg
        wg = wg * s_in[0][:, None]

    a_eff = (A * p['edge']).astype(jnp.float32)    # (K, V, V) indexed [k, v, w]

    # gcn bias propagated through the graph operator + spatial BN -> per-joint shift
    colsum = a_eff.sum(axis=1)                     # (K, W): sum_v A_eff[k, v, w]
    bsum = colsum.T @ bg.reshape(K, c_out)         # (V, c_out)
    h1v = p['h1'] + p['s1'] * bsum                 # (V, c_out)

    h2 = p['h2'] + p['bt'] * p['s2']               # temporal bias folded, (1, c_out)
    wt2 = p['wt'].reshape(win * c_out, c_out)      # im2col weight, rows = (dt, c_in)

    prep = dict(T=T, V=V, K=K, c_out=c_out, win=win, res_mode=p['res_mode'],
                a=jnp.transpose(a_eff, (0, 2, 1)).astype(jnp.bfloat16),   # (K, W, V)
                wg=wg.astype(jnp.bfloat16),
                s1=p['s1'].astype(jnp.float32),
                h1v=h1v.astype(jnp.float32),
                wt2=wt2.astype(jnp.bfloat16),
                s2=p['s2'].astype(jnp.float32),
                h2=h2.astype(jnp.float32))
    if p['res_mode'] == 2:
        prep['wr'] = p['wr'].astype(jnp.bfloat16)
        prep['sr'] = p['sr'].astype(jnp.float32)
        prep['hr'] = (p['hr'] + p['br'] * p['sr']).astype(jnp.float32)
    return prep


# ---------------------------------------------------------------------------
# ResGCN_Input_Branch forward
# ---------------------------------------------------------------------------
def resgcn_input_branch_forward(x_nchw, A, branch, win=9):
    N, C, T, V = x_nchw.shape
    x = jnp.transpose(x_nchw, (0, 2, 3, 1)).astype(jnp.float32).reshape(N, T * V, C)
    input_bn = (branch['bn_scale'], branch['bn_shift'])
    for i, p in enumerate(branch['modules']):
        prep = _prep_module(p, A, T=T, V=V,
                            input_bn=input_bn if i == 0 else None, win=win)
        x = resgcn_module_apply(x, prep)
    c_last = x.shape[-1]
    return jnp.transpose(x.reshape(N, T, V, c_last), (0, 3, 1, 2))       # back to NCHW


# ---------------------------------------------------------------------------
# Deterministic synthetic parameters (shapes from the module's __init__)
# ---------------------------------------------------------------------------
def _bn_fold(key, c, eps=1e-5):
    k1, k2, k3, k4 = jax.random.split(key, 4)
    gamma = 1.0 + 0.1 * jax.random.normal(k1, (c,))
    beta = 0.1 * jax.random.normal(k2, (c,))
    mean = 0.1 * jax.random.normal(k3, (c,))
    var = jnp.abs(jax.random.normal(k4, (c,))) + 0.5
    scale = gamma / jnp.sqrt(var + eps)
    shift = beta - mean * scale
    return (scale.reshape(1, c).astype(jnp.float32),
            shift.reshape(1, c).astype(jnp.float32))


def _make_module_params(key, c_in, c_out, K, V, res_mode, win=9):
    ks = jax.random.split(key, 9)
    p = {'res_mode': res_mode}
    p['wg'] = (jax.random.normal(ks[0], (c_in, K * c_out)) / np.sqrt(c_in)).astype(jnp.float32)
    p['bg'] = (0.1 * jax.random.normal(ks[1], (1, K * c_out))).astype(jnp.float32)
    p['s1'], p['h1'] = _bn_fold(ks[2], c_out)
    p['wt'] = (jax.random.normal(ks[3], (win, c_out, c_out)) / np.sqrt(win * c_out)).astype(jnp.float32)
    p['bt'] = (0.1 * jax.random.normal(ks[4], (1, c_out))).astype(jnp.float32)
    p['s2'], p['h2'] = _bn_fold(ks[5], c_out)
    p['edge'] = jnp.ones((K, V, V), jnp.float32)   # nn.Parameter(torch.ones_like(A))
    if res_mode == 2:
        p['wr'] = (jax.random.normal(ks[6], (c_in, c_out)) / np.sqrt(c_in)).astype(jnp.float32)
        p['br'] = (0.1 * jax.random.normal(ks[7], (1, c_out))).astype(jnp.float32)
        p['sr'], p['hr'] = _bn_fold(ks[8], c_out)
    return p


def make_branch_params(key, num_channel, V, K, structure, block='Basic', win=9):
    if block != 'Basic':
        # TODO(synk): 'Bottleneck' ResGCN blocks are not implemented in this synthetic kernel.
        raise NotImplementedError("only block='Basic' is implemented")
    # res_mode: 0 = zero (initial), 1 = identity, 2 = conv1x1+BN
    cfgs = [(num_channel, 64, 0)]
    cfgs += [(64, 64, 0) for _ in range(structure[0] - 1)]
    cfgs += [(64, 64, 1) for _ in range(structure[1] - 1)]
    cfgs += [(64, 32, 2)]
    keys = jax.random.split(key, len(cfgs) + 1)
    bn_scale, bn_shift = _bn_fold(keys[0], num_channel)
    modules = [_make_module_params(k, ci, co, K, V, rm, win)
               for k, (ci, co, rm) in zip(keys[1:], cfgs)]
    return {'bn_scale': bn_scale, 'bn_shift': bn_shift, 'modules': modules}


# ---------------------------------------------------------------------------
# Pure-JAX reference (raw unfolded params, f32) for validation
# ---------------------------------------------------------------------------
def reference_forward(x_nchw, A, branch, win=9):
    x = jnp.transpose(x_nchw, (0, 2, 3, 1)).astype(jnp.float32)
    x = x * branch['bn_scale'] + branch['bn_shift']
    for p in branch['modules']:
        N, T, V, c_in = x.shape
        K = A.shape[0]
        c_out = p['s1'].shape[-1]
        a_eff = A * p['edge']
        y = jnp.einsum('ntvi,io->ntvo', x, p['wg']) + p['bg'][0]
        y = y.reshape(N, T, V, K, c_out)
        z = jnp.einsum('ntvkc,kvw->ntwc', y, a_eff)
        h = jax.nn.relu(z * p['s1'][0] + p['h1'][0])
        pad = (win - 1) // 2
        hp = jnp.pad(h, ((0, 0), (pad, pad), (0, 0), (0, 0)))
        t = jnp.zeros((N, T, V, c_out), jnp.float32) + p['bt'][0]
        for dt in range(win):
            t = t + jnp.einsum('ntvc,cd->ntvd', hp[:, dt:dt + T], p['wt'][dt])
        t = t * p['s2'][0] + p['h2'][0]
        if p['res_mode'] == 0:
            res = 0.0
        elif p['res_mode'] == 1:
            res = x
        else:
            r = jnp.einsum('ntvi,io->ntvo', x, p['wr']) + p['br'][0]
            res = r * p['sr'][0] + p['hr'][0]
        x = jax.nn.relu(t + res)
    return jnp.transpose(x, (0, 3, 1, 2))


# ---------------------------------------------------------------------------
if __name__ == "__main__":
    key = jax.random.PRNGKey(0)
    k_x, k_a, k_p = jax.random.split(key, 3)

    # Small shapes consistent with the module:
    #   batch=2, num_channel=3, T=16 frames, V=16 joints,
    #   K=3 adjacency partitions (kernel_size=[9, 2] -> s_kernel_size = 3).
    N, C_IN, T, V, K = 2, 3, 16, 16, 3
    structure = (1, 2)      # ResGCN_Input_Branch uses structure[0] and structure[1]
    block = 'Basic'

    # adjacency buffer A: (K, V, V), sparse-ish and row-normalized
    A = (jax.random.uniform(k_a, (K, V, V), jnp.float32) < 0.3).astype(jnp.float32)
    A = A / jnp.maximum(A.sum(-1, keepdims=True), 1.0)

    branch = make_branch_params(k_p, C_IN, V, K, structure, block=block)

    x = jax.random.normal(k_x, (N, C_IN, T, V), jnp.float32)   # PyTorch NCHW input

    out = resgcn_input_branch_forward(x, A, branch)
    out = jax.block_until_ready(out)
    assert out.shape == (N, 32, T, V), out.shape

    # Reference is pure f32; kernel feeds the MXU in bf16 (f32 accumulation), so use
    # a tolerance consistent with bf16 input rounding across 4 stacked modules.
    ref = reference_forward(x, A, branch)
    np.testing.assert_allclose(np.asarray(out), np.asarray(ref), rtol=5e-2, atol=5e-2)

    print("KERNEL_OK")
</pallas_src>

<mosaic_0001>
module attributes {stable_mosaic.version = 11 : i64} {
  func.func @_resgcn_basic_module_kernel(%arg0: i32, %arg1: memref<1x256x3xf32, #tpu.memory_space<vmem>>, %arg2: memref<3x16x16xbf16, #tpu.memory_space<vmem>>, %arg3: memref<3x192xbf16, #tpu.memory_space<vmem>>, %arg4: memref<1x64xf32, #tpu.memory_space<vmem>>, %arg5: memref<16x64xf32, #tpu.memory_space<vmem>>, %arg6: memref<576x64xbf16, #tpu.memory_space<vmem>>, %arg7: memref<1x64xf32, #tpu.memory_space<vmem>>, %arg8: memref<1x64xf32, #tpu.memory_space<vmem>>, %arg9: memref<1x256x64xf32, #tpu.memory_space<vmem>>, %arg10: memref<384x64xbf16, #tpu.memory_space<vmem>>, %arg11: memref<256x576xbf16, #tpu.memory_space<vmem>>) attributes {dimension_semantics = [#tpu.dimension_semantics<parallel>], iteration_bounds = array<i64: 2>, scalar_prefetch = 0 : i64, scratch_operands = 2 : i64, tpu.core_type = #tpu.core_type<tc>, window_params = [{transform_indices = @transform_0, window_bounds = array<i64: 1, 256, 3>}, {pipeline_mode = #tpu.pipeline_mode<synchronous>, transform_indices = @transform_1, window_bounds = array<i64: 3, 16, 16>}, {pipeline_mode = #tpu.pipeline_mode<synchronous>, transform_indices = @transform_2, window_bounds = array<i64: 3, 192>}, {pipeline_mode = #tpu.pipeline_mode<synchronous>, transform_indices = @transform_3, window_bounds = array<i64: 1, 64>}, {pipeline_mode = #tpu.pipeline_mode<synchronous>, transform_indices = @transform_4, window_bounds = array<i64: 16, 64>}, {pipeline_mode = #tpu.pipeline_mode<synchronous>, transform_indices = @transform_5, window_bounds = array<i64: 576, 64>}, {pipeline_mode = #tpu.pipeline_mode<synchronous>, transform_indices = @transform_6, window_bounds = array<i64: 1, 64>}, {pipeline_mode = #tpu.pipeline_mode<synchronous>, transform_indices = @transform_7, window_bounds = array<i64: 1, 64>}, {transform_indices = @transform_8, window_bounds = array<i64: 1, 256, 64>}]} {
    %c0 = arith.constant 0 : index
    %c0_0 = arith.constant 0 : index
    %c0_1 = arith.constant 0 : index
    %0 = vector.load %arg1[%c0, %c0_0, %c0_1] : memref<1x256x3xf32, #tpu.memory_space<vmem>>, vector<1x256x3xf32>
    %1 = vector.shape_cast %0 : vector<1x256x3xf32> to vector<256x3xf32>
    %2 = arith.truncf %1 : vector<256x3xf32> to vector<256x3xbf16>
    %c0_2 = arith.constant 0 : index
    %c0_3 = arith.constant 0 : index
    %3 = vector.load %arg3[%c0_2, %c0_3] : memref<3x192xbf16, #tpu.memory_space<vmem>>, vector<3x192xbf16>
    %cst = arith.constant dense<0.000000e+00> : vector<256x192xf32>
    %4 = tpu.matmul %2, %3, %cst {dimension_numbers = #tpu.dot_dimension_numbers<[1], [0], [0], [1], [0, 0, 1, 1], [], []>} : vector<256x3xbf16>, vector<3x192xbf16>, vector<256x192xf32> -> vector<256x192xf32>
    %5 = arith.truncf %4 : vector<256x192xf32> to vector<256x192xbf16>
    %6 = vector.shape_cast %5 : vector<256x192xbf16> to vector<16x16x192xbf16>
    %cst_4 = arith.constant 0.000000e+00 : f32
    %7 = vector.broadcast %cst_4 : f32 to vector<16x16x64xf32>
    %c0_5 = arith.constant 0 : index
    %c0_6 = arith.constant 0 : index
    %c0_7 = arith.constant 0 : index
    %8 = vector.load %arg2[%c0_5, %c0_6, %c0_7] : memref<3x16x16xbf16, #tpu.memory_space<vmem>>, vector<1x16x16xbf16>
    %9 = vector.shape_cast %8 : vector<1x16x16xbf16> to vector<16x16xbf16>
    %10 = vector.shape_cast %9 : vector<16x16xbf16> to vector<1x16x16xbf16>
    %11 = vector.shape_cast %10 : vector<1x16x16xbf16> to vector<1x16x16xbf16>
    %12 = vector.broadcast %11 : vector<1x16x16xbf16> to vector<16x16x16xbf16>
    %13 = vector.extract_strided_slice %6 {offsets = [0, 0, 0], sizes = [16, 16, 64], strides = [1, 1, 1]} : vector<16x16x192xbf16> to vector<16x16x64xbf16>
    %cst_8 = arith.constant dense<0.000000e+00> : vector<16x16x64xf32>
    %14 = tpu.matmul %12, %13, %cst_8 {dimension_numbers = #tpu.dot_dimension_numbers<[2], [1], [1], [2], [0, 0, 0, 1, 1, 2], [0], [0]>} : vector<16x16x16xbf16>, vector<16x16x64xbf16>, vector<16x16x64xf32> -> vector<16x16x64xf32>
    %15 = arith.addf %7, %14 : vector<16x16x64xf32>
    %c1 = arith.constant 1 : index
    %c0_9 = arith.constant 0 : index
    %c0_10 = arith.constant 0 : index
    %16 = vector.load %arg2[%c1, %c0_9, %c0_10] : memref<3x16x16xbf16, #tpu.memory_space<vmem>>, vector<1x16x16xbf16>
    %17 = vector.shape_cast %16 : vector<1x16x16xbf16> to vector<16x16xbf16>
    %18 = vector.shape_cast %17 : vector<16x16xbf16> to vector<1x16x16xbf16>
    %19 = vector.shape_cast %18 : vector<1x16x16xbf16> to vector<1x16x16xbf16>
    %20 = vector.broadcast %19 : vector<1x16x16xbf16> to vector<16x16x16xbf16>
    %21 = vector.extract_strided_slice %6 {offsets = [0, 0, 64], sizes = [16, 16, 64], strides = [1, 1, 1]} : vector<16x16x192xbf16> to vector<16x16x64xbf16>
    %cst_11 = arith.constant dense<0.000000e+00> : vector<16x16x64xf32>
    %22 = tpu.matmul %20, %21, %cst_11 {dimension_numbers = #tpu.dot_dimension_numbers<[2], [1], [1], [2], [0, 0, 0, 1, 1, 2], [0], [0]>} : vector<16x16x16xbf16>, vector<16x16x64xbf16>, vector<16x16x64xf32> -> vector<16x16x64xf32>
    %23 = arith.addf %15, %22 : vector<16x16x64xf32>
    %c2 = arith.constant 2 : index
    %c0_12 = arith.constant 0 : index
    %c0_13 = arith.constant 0 : index
    %24 = vector.load %arg2[%c2, %c0_12, %c0_13] : memref<3x16x16xbf16, #tpu.memory_space<vmem>>, vector<1x16x16xbf16>
    %25 = vector.shape_cast %24 : vector<1x16x16xbf16> to vector<16x16xbf16>
    %26 = vector.shape_cast %25 : vector<16x16xbf16> to vector<1x16x16xbf16>
    %27 = vector.shape_cast %26 : vector<1x16x16xbf16> to vector<1x16x16xbf16>
    %28 = vector.broadcast %27 : vector<1x16x16xbf16> to vector<16x16x16xbf16>
    %29 = vector.extract_strided_slice %6 {offsets = [0, 0, 128], sizes = [16, 16, 64], strides = [1, 1, 1]} : vector<16x16x192xbf16> to vector<16x16x64xbf16>
    %cst_14 = arith.constant dense<0.000000e+00> : vector<16x16x64xf32>
    %30 = tpu.matmul %28, %29, %cst_14 {dimension_numbers = #tpu.dot_dimension_numbers<[2], [1], [1], [2], [0, 0, 0, 1, 1, 2], [0], [0]>} : vector<16x16x16xbf16>, vector<16x16x64xbf16>, vector<16x16x64xf32> -> vector<16x16x64xf32>
    %31 = arith.addf %23, %30 : vector<16x16x64xf32>
    %c0_15 = arith.constant 0 : index
    %c0_16 = arith.constant 0 : index
    %32 = vector.load %arg4[%c0_15, %c0_16] : memref<1x64xf32, #tpu.memory_space<vmem>>, vector<1x64xf32>
    %33 = vector.shape_cast %32 : vector<1x64xf32> to vector<64xf32>
    %34 = vector.shape_cast %33 : vector<64xf32> to vector<1x1x64xf32>
    %35 = vector.broadcast %34 : vector<1x1x64xf32> to vector<16x16x64xf32>
    %36 = arith.mulf %31, %35 : vector<16x16x64xf32>
    %c0_17 = arith.constant 0 : index
    %c0_18 = arith.constant 0 : index
    %37 = vector.load %arg5[%c0_17, %c0_18] : memref<16x64xf32, #tpu.memory_space<vmem>>, vector<16x64xf32>
    %38 = vector.shape_cast %37 : vector<16x64xf32> to vector<1x16x64xf32>
    %39 = vector.broadcast %38 : vector<1x16x64xf32> to vector<16x16x64xf32>
    %40 = arith.addf %36, %39 : vector<16x16x64xf32>
    %cst_19 = arith.constant 0.000000e+00 : f32
    %41 = vector.broadcast %cst_19 : f32 to vector<16x16x64xf32>
    %42 = arith.maximumf %40, %41 : vector<16x16x64xf32>
    %43 = vector.shape_cast %42 : vector<16x16x64xf32> to vector<256x64xf32>
    %44 = arith.truncf %43 : vector<256x64xf32> to vector<256x64xbf16>
    %cst_20 = arith.constant 0.000000e+00 : bf16
    %45 = vector.broadcast %cst_20 : bf16 to vector<64x64xbf16>
    %c0_21 = arith.constant 0 : index
    %c0_22 = arith.constant 0 : index
    %46 = vector.load %arg10[%c0_21, %c0_22] : memref<384x64xbf16, #tpu.memory_space<vmem>>, vector<64x64xbf16>
    tpu.vector_store %arg10[%c0_21, %c0_22], %45 {strides = array<i32>} : memref<384x64xbf16, #tpu.memory_space<vmem>>, vector<64x64xbf16>,
    %c320 = arith.constant 320 : index
    %c0_23 = arith.constant 0 : index
    %47 = vector.load %arg10[%c320, %c0_23] : memref<384x64xbf16, #tpu.memory_space<vmem>>, vector<64x64xbf16>
    tpu.vector_store %arg10[%c320, %c0_23], %45 {strides = array<i32>} : memref<384x64xbf16, #tpu.memory_space<vmem>>, vector<64x64xbf16>,
    %c64 = arith.constant 64 : index
    %c0_24 = arith.constant 0 : index
    %48 = vector.load %arg10[%c64, %c0_24] : memref<384x64xbf16, #tpu.memory_space<vmem>>, vector<256x64xbf16>
    tpu.vector_store %arg10[%c64, %c0_24], %44 {strides = array<i32>} : memref<384x64xbf16, #tpu.memory_space<vmem>>, vector<256x64xbf16>,
    %c0_25 = arith.constant 0 : index
    %c0_26 = arith.constant 0 : index
    %49 = vector.load %arg10[%c0_25, %c0_26] : memref<384x64xbf16, #tpu.memory_space<vmem>>, vector<256x64xbf16>
    %c0_27 = arith.constant 0 : index
    %c0_28 = arith.constant 0 : index
    %50 = vector.load %arg11[%c0_27, %c0_28] : memref<256x576xbf16, #tpu.memory_space<vmem>>, vector<256x64xbf16>
    tpu.vector_store %arg11[%c0_27, %c0_28], %49 {strides = array<i32>} : memref<256x576xbf16, #tpu.memory_space<vmem>>, vector<256x64xbf16>,
    %c16 = arith.constant 16 : index
    %c0_29 = arith.constant 0 : index
    %51 = vector.load %arg10[%c16, %c0_29] : memref<384x64xbf16, #tpu.memory_space<vmem>>, vector<256x64xbf16>
    %c0_30 = arith.constant 0 : index
    %c64_31 = arith.constant 64 : index
    %52 = vector.load %arg11[%c0_30, %c64_31] : memref<256x576xbf16, #tpu.memory_space<vmem>>, vector<256x64xbf16>
    tpu.vector_store %arg11[%c0_30, %c64_31], %51 {strides = array<i32>} : memref<256x576xbf16, #tpu.memory_space<vmem>>, vector<256x64xbf16>,
    %c32 = arith.constant 32 : index
    %c0_32 = arith.constant 0 : index
    %53 = vector.load %arg10[%c32, %c0_32] : memref<384x64xbf16, #tpu.memory_space<vmem>>, vector<256x64xbf16>
    %c0_33 = arith.constant 0 : index
    %c128 = arith.constant 128 : index
    %54 = vector.load %arg11[%c0_33, %c128] : memref<256x576xbf16, #tpu.memory_space<vmem>>, vector<256x64xbf16>
    tpu.vector_store %arg11[%c0_33, %c128], %53 {strides = array<i32>} : memref<256x576xbf16, #tpu.memory_space<vmem>>, vector<256x64xbf16>,
    %c48 = arith.constant 48 : index
    %c0_34 = arith.constant 0 : index
    %55 = vector.load %arg10[%c48, %c0_34] : memref<384x64xbf16, #tpu.memory_space<vmem>>, vector<256x64xbf16>
    %c0_35 = arith.constant 0 : index
    %c192 = arith.constant 192 : index
    %56 = vector.load %arg11[%c0_35, %c192] : memref<256x576xbf16, #tpu.memory_space<vmem>>, vector<256x64xbf16>
    tpu.vector_store %arg11[%c0_35, %c192], %55 {strides = array<i32>} : memref<256x576xbf16, #tpu.memory_space<vmem>>, vector<256x64xbf16>,
    %c64_36 = arith.constant 64 : index
    %c0_37 = arith.constant 0 : index
    %57 = vector.load %arg10[%c64_36, %c0_37] : memref<384x64xbf16, #tpu.memory_space<vmem>>, vector<256x64xbf16>
    %c0_38 = arith.constant 0 : index
    %c256 = arith.constant 256 : index
    %58 = vector.load %arg11[%c0_38, %c256] : memref<256x576xbf16, #tpu.memory_space<vmem>>, vector<256x64xbf16>
    tpu.vector_store %arg11[%c0_38, %c256], %57 {strides = array<i32>} : memref<256x576xbf16, #tpu.memory_space<vmem>>, vector<256x64xbf16>,
    %c80 = arith.constant 80 : index
    %c0_39 = arith.constant 0 : index
    %59 = vector.load %arg10[%c80, %c0_39] : memref<384x64xbf16, #tpu.memory_space<vmem>>, vector<256x64xbf16>
    %c0_40 = arith.constant 0 : index
    %c320_41 = arith.constant 320 : index
    %60 = vector.load %arg11[%c0_40, %c320_41] : memref<256x576xbf16, #tpu.memory_space<vmem>>, vector<256x64xbf16>
    tpu.vector_store %arg11[%c0_40, %c320_41], %59 {strides = array<i32>} : memref<256x576xbf16, #tpu.memory_space<vmem>>, vector<256x64xbf16>,
    %c96 = arith.constant 96 : index
    %c0_42 = arith.constant 0 : index
    %61 = vector.load %arg10[%c96, %c0_42] : memref<384x64xbf16, #tpu.memory_space<vmem>>, vector<256x64xbf16>
    %c0_43 = arith.constant 0 : index
    %c384 = arith.constant 384 : index
    %62 = vector.load %arg11[%c0_43, %c384] : memref<256x576xbf16, #tpu.memory_space<vmem>>, vector<256x64xbf16>
    tpu.vector_store %arg11[%c0_43, %c384], %61 {strides = array<i32>} : memref<256x576xbf16, #tpu.memory_space<vmem>>, vector<256x64xbf16>,
    %c112 = arith.constant 112 : index
    %c0_44 = arith.constant 0 : index
    %63 = vector.load %arg10[%c112, %c0_44] : memref<384x64xbf16, #tpu.memory_space<vmem>>, vector<256x64xbf16>
    %c0_45 = arith.constant 0 : index
    %c448 = arith.constant 448 : index
    %64 = vector.load %arg11[%c0_45, %c448] : memref<256x576xbf16, #tpu.memory_space<vmem>>, vector<256x64xbf16>
    tpu.vector_store %arg11[%c0_45, %c448], %63 {strides = array<i32>} : memref<256x576xbf16, #tpu.memory_space<vmem>>, vector<256x64xbf16>,
    %c128_46 = arith.constant 128 : index
    %c0_47 = arith.constant 0 : index
    %65 = vector.load %arg10[%c128_46, %c0_47] : memref<384x64xbf16, #tpu.memory_space<vmem>>, vector<256x64xbf16>
    %c0_48 = arith.constant 0 : index
    %c512 = arith.constant 512 : index
    %66 = vector.load %arg11[%c0_48, %c512] : memref<256x576xbf16, #tpu.memory_space<vmem>>, vector<256x64xbf16>
    tpu.vector_store %arg11[%c0_48, %c512], %65 {strides = array<i32>} : memref<256x576xbf16, #tpu.memory_space<vmem>>, vector<256x64xbf16>,
    %c0_49 = arith.constant 0 : index
    %c0_50 = arith.constant 0 : index
    %67 = vector.load %arg11[%c0_49, %c0_50] : memref<256x576xbf16, #tpu.memory_space<vmem>>, vector<256x576xbf16>
    %c0_51 = arith.constant 0 : index
    %c0_52 = arith.constant 0 : index
    %68 = vector.load %arg6[%c0_51, %c0_52] : memref<576x64xbf16, #tpu.memory_space<vmem>>, vector<576x64xbf16>
    %cst_53 = arith.constant dense<0.000000e+00> : vector<256x64xf32>
    %69 = tpu.matmul %67, %68, %cst_53 {dimension_numbers = #tpu.dot_dimension_numbers<[1], [0], [0], [1], [0, 0, 1, 1], [], []>} : vector<256x576xbf16>, vector<576x64xbf16>, vector<256x64xf32> -> vector<256x64xf32>
    %c0_54 = arith.constant 0 : index
    %c0_55 = arith.constant 0 : index
    %70 = vector.load %arg7[%c0_54, %c0_55] : memref<1x64xf32, #tpu.memory_space<vmem>>, vector<1x64xf32>
    %71 = vector.broadcast %70 : vector<1x64xf32> to vector<256x64xf32>
    %72 = arith.mulf %69, %71 : vector<256x64xf32>
    %c0_56 = arith.constant 0 : index
    %c0_57 = arith.constant 0 : index
    %73 = vector.load %arg8[%c0_56, %c0_57] : memref<1x64xf32, #tpu.memory_space<vmem>>, vector<1x64xf32>
    %74 = vector.broadcast %73 : vector<1x64xf32> to vector<256x64xf32>
    %75 = arith.addf %72, %74 : vector<256x64xf32>
    %cst_58 = arith.constant 0.000000e+00 : f32
    %76 = vector.broadcast %cst_58 : f32 to vector<256x64xf32>
    %77 = arith.maximumf %75, %76 : vector<256x64xf32>
    %c0_59 = arith.constant 0 : index
    %c0_60 = arith.constant 0 : index
    %c0_61 = arith.constant 0 : index
    %78 = vector.load %arg9[%c0_59, %c0_60, %c0_61] : memref<1x256x64xf32, #tpu.memory_space<vmem>>, vector<1x256x64xf32>
    %79 = vector.shape_cast %78 : vector<1x256x64xf32> to vector<256x64xf32>
    %80 = vector.shape_cast %77 : vector<256x64xf32> to vector<1x256x64xf32>
    tpu.vector_store %arg9[%c0_59, %c0_60, %c0_61], %80 {strides = array<i32>} : memref<1x256x64xf32, #tpu.memory_space<vmem>>, vector<1x256x64xf32>,
    return
  }
  func.func @transform_0(%arg0: i32) -> (i32, i32, i32) {
    %c0_i32 = arith.constant 0 : i32
    %c0_i32_0 = arith.constant 0 : i32
    %c0_i32_1 = arith.constant 0 : i32
    return %arg0, %c0_i32, %c0_i32_0 : i32, i32, i32
  }
  func.func @transform_1(%arg0: i32) -> (i32, i32, i32) {
    %c0_i32 = arith.constant 0 : i32
    %c0_i32_0 = arith.constant 0 : i32
    %c0_i32_1 = arith.constant 0 : i32
    %c0_i32_2 = arith.constant 0 : i32
    return %c0_i32, %c0_i32_0, %c0_i32_1 : i32, i32, i32
  }
  func.func @transform_2(%arg0: i32) -> (i32, i32) {
    %c0_i32 = arith.constant 0 : i32
    %c0_i32_0 = arith.constant 0 : i32
    %c0_i32_1 = arith.constant 0 : i32
    return %c0_i32, %c0_i32_0 : i32, i32
  }
  func.func @transform_3(%arg0: i32) -> (i32, i32) {
    %c0_i32 = arith.constant 0 : i32
    %c0_i32_0 = arith.constant 0 : i32
    %c0_i32_1 = arith.constant 0 : i32
    return %c0_i32, %c0_i32_0 : i32, i32
  }
  func.func @transform_4(%arg0: i32) -> (i32, i32) {
    %c0_i32 = arith.constant 0 : i32
    %c0_i32_0 = arith.constant 0 : i32
    %c0_i32_1 = arith.constant 0 : i32
    return %c0_i32, %c0_i32_0 : i32, i32
  }
  func.func @transform_5(%arg0: i32) -> (i32, i32) {
    %c0_i32 = arith.constant 0 : i32
    %c0_i32_0 = arith.constant 0 : i32
    %c0_i32_1 = arith.constant 0 : i32
    return %c0_i32, %c0_i32_0 : i32, i32
  }
  func.func @transform_6(%arg0: i32) -> (i32, i32) {
    %c0_i32 = arith.constant 0 : i32
    %c0_i32_0 = arith.constant 0 : i32
    %c0_i32_1 = arith.constant 0 : i32
    return %c0_i32, %c0_i32_0 : i32, i32
  }
  func.func @transform_7(%arg0: i32) -> (i32, i32) {
    %c0_i32 = arith.constant 0 : i32
    %c0_i32_0 = arith.constant 0 : i32
    %c0_i32_1 = arith.constant 0 : i32
    return %c0_i32, %c0_i32_0 : i32, i32
  }
  func.func @transform_8(%arg0: i32) -> (i32, i32, i32) {
    %c0_i32 = arith.constant 0 : i32
    %c0_i32_0 = arith.constant 0 : i32
    %c0_i32_1 = arith.constant 0 : i32
    return %arg0, %c0_i32, %c0_i32_0 : i32, i32, i32
  }
}

</mosaic_0001>

<bundles_post_ra>
// kernel: tpu_custom_call.1
= control target key start
LH: loop header
LB: loop body
LE: loop exit
PB: predicated region body
PF: predicated region fallthrough
CT: control target
= control target key end

     0   :  { %s6809_s27 = smov 0   ;;  %s8655_s0 = inlined_call_operand.vmem [shape: f32[2,256,3], index: 0, kind: input, shape index: {}]   ;;  %s8656_s1 = inlined_call_operand.vmem [shape: bf16[3,16,16], index: 1, kind: input, shape index: {}]   ;;  %s8657_s2 = inlined_call_operand.vmem [shape: bf16[3,192], index: 2, kind: input, shape index: {}]   ;;  %s8658_s3 = inlined_call_operand.vmem [shape: f32[1,64], index: 3, kind: input, shape index: {}]   ;;  %s8659_s4 = inlined_call_operand.vmem [shape: f32[16,64], index: 4, kind: input, shape index: {}]   ;;  %s8660_s5 = inlined_call_operand.vmem [shape: bf16[576,64], index: 5, kind: input, shape index: {}]   ;;  %s8661_s6 = inlined_call_operand.vmem [shape: f32[1,64], index: 6, kind: input, shape index: {}]   ;;  %s8662_s7 = inlined_call_operand.vmem [shape: f32[1,64], index: 7, kind: input, shape index: {}]   ;;  %s8663_s8 = inlined_call_operand.vmem [shape: f32[2,256,64], index: 8, kind: output, shape index: {}]  }
   0x1 LB: > { %s5630_s28 = sadd.s32 4294967295, %s6757_s27   ;;  %p5634_p0 = scmp.ge.s32.totalorder %s6757_s27, 1  ;;  %s6757_s27 = sphi %s6809_s27, %s18_s27  }
   0x2   : > { %p262_p1 = scmp.lt.s32.totalorder %s6757_s27, 3 }
   0x4   : > { %p263_p2 = pnand %p5634_p0, %p262_p1 }
   0x6   : > { %266 = sbr.rel (%p263_p2) target bundleno = 1260 (0x4ec), region = 52 }
   0xb   : > { %v5639_v0 = vld.sshfl [vmem:[%s8657_s2] sm:$0x33 pattern:$0x76325410]  ;;  %vm414_vm0 = vcmask 1040384   ;;  %vm415_vm1 = vcmask 1041408  }
   0xc   : > { %v364_v1 = vcombine.high %v5639_v0, %v5639_v0  ;;  %p296_p3 = scmp.lt.s32.totalorder %s5630_s28, 1  ;;  %v6759_v2 = vmov 65535   ;;  %v6760_v4 = vmov 0   ;;  %vm365_vm2 = vcmask 23552   ;;  %v6907_v62 = vld [vmem:[%s8656_s1] sm:$0xff]   ;;  %s6763_s15 = smov 64  }
   0xd   : > { %v416_v3 = vsel %vm414_vm0, 4294967295, %v6759_v2  ;;  %456 = vmatprep.mubr.bf16.mxu0 %v6760_v4  ;;  %576 = vmatprep.mubr.bf16.mxu1 %v6760_v4  ;;  %v6761_v50 = vmov 0.0   ;;  %vm6762_vm3 = vmmov 0   ;;  %vm663_vm4 = vcmask 130048  }
   0xe   : > { %v417_v5 = vsel %vm415_vm1, %v416_v3, 0  ;;  %s8689_s28 = smov (!%p296_p3, %s5630_s28), 1  ;;  %vm2867_vm5 = vcmask 519168   ;;  %vm3252_vm6 = vcmask 1043968   ;;  %vm4901_vm7 = vcmask 523264  }
   0xf   : > { %v422_v6 = vand.u32 %v417_v5, %v364_v1  ;;  %v419_v7 = vand.u32 %v5639_v0, %v417_v5  ;;  %s5880_s9 = sshll.u32 %s8689_s28, 8  ;;  %2868 = vst.msk [vmem:[#allocation2] sm:$0xf] %vm2867_vm5, %v6760_v4  ;;  %2869 = vst.msk [vmem:[#allocation2 + $0x4] sm:$0xf] %vm2867_vm5, %v6760_v4 }
  0x10   : > { %s6830_s12 = scalar_lea.vmem %s8655_s0, %s5880_s9  ;;  %2870 = vst.msk [vmem:[#allocation2 + $0x8] sm:$0xf] %vm2867_vm5, %v6760_v4  ;;  %2871 = vst.msk [vmem:[#allocation2 + $0xc] sm:$0xf] %vm2867_vm5, %v6760_v4  ;;  %s8434_s19 = scalar_lea.vmem %s8663_s8, %s5880_s9 }
  0x11   : > { %438 = vmatprep.subr.bf16.mxu0 %v422_v6  ;;  %6582 = vmatprep.subr.bf16.mxu1 %v422_v6  ;;  %v307_v8 = vld [vmem:[%s6830_s12] sm:$0xff]  ;;  %v308_v9 = vld [vmem:[%s6830_s12 + $0x8] sm:$0xff]  ;;  %v309_v11 = vld [vmem:[%s6830_s12 + $0x10] sm:$0xff]  ;;  %2872 = vst.msk [vmem:[#allocation2 + $0x10] sm:$0xf] %vm2867_vm5, %v6760_v4 }
  0x12   : > { %439 = vmatpush1.bf16.msra.mxu0 %v419_v7  ;;  %6583 = vmatpush1.bf16.msra.mxu1 %v419_v7  ;;  %v339_v10 = vpack.c.bf16 %v308_v9, %v307_v8  ;;  %v310_v12 = vld [vmem:[%s6830_s12 + $0x18] sm:$0xff]  ;;  %v331_v13 = vld [vmem:[%s6830_s12 + $0xc0] sm:$0xff]  ;;  %v332_v15 = vld [vmem:[%s6830_s12 + $0xc8] sm:$0xff]  ;;  %2873 = vst.msk [vmem:[#allocation2 + $0x14] sm:$0xf] %vm2867_vm5, %v6760_v4 }
  0x13   : > { %v340_v14 = vpack.c.bf16 %v310_v12, %v309_v11  ;;  %v351_v16 = vpack.c.bf16 %v332_v15, %v331_v13  ;;  %v311_v17 = vld [vmem:[%s6830_s12 + $0x20] sm:$0xff]  ;;  %v312_v18 = vld [vmem:[%s6830_s12 + $0x28] sm:$0xff]  ;;  %v333_v19 = vld [vmem:[%s6830_s12 + $0xd0] sm:$0xff]  ;;  %6350 = vmatprep.subr.bf16.mxu0 %v6761_v50  ;;  %6254 = vmatprep.subr.bf16.mxu1 %v6761_v50  ;;  %2874 = vst.msk [vmem:[#allocation2 + $0x18] sm:$0xf] %vm2867_vm5, %v6760_v4 }
  0x14   : > { %v334_v20 = vld [vmem:[%s6830_s12 + $0xd8] sm:$0xff]  ;;  %v341_v22 = vpack.c.bf16 %v312_v18, %v311_v17  ;;  %v335_v23 = vld [vmem:[%s6830_s12 + $0xe0] sm:$0xff]  ;;  %v336_v24 = vld [vmem:[%s6830_s12 + $0xe8] sm:$0xff]  ;;  %2875 = vst.msk [vmem:[#allocation2 + $0x1c] sm:$0xf] %vm2867_vm5, %v6760_v4 }
  0x15   : > { %5640 = vmatmul.mubr.msk.bf16.vlgmr.msra.gmra.mxu0 %vm365_vm2, %v339_v10  ;;  %5652 = vmatmul.mubr.msk.bf16.vlgmr.msra.gmra.mxu1 %vm365_vm2, %v351_v16  ;;  %v352_v21 = vpack.c.bf16 %v334_v20, %v333_v19  ;;  %v313_v25 = vld [vmem:[%s6830_s12 + $0x30] sm:$0xff]  ;;  %v314_v26 = vld [vmem:[%s6830_s12 + $0x38] sm:$0xff]  ;;  %v353_v27 = vpack.c.bf16 %v336_v24, %v335_v23  ;;  %v315_v31 = vld [vmem:[%s6830_s12 + $0x40] sm:$0xff]  ;;  %2876 = vst.msk [vmem:[#allocation2 + $0xa0] sm:$0xf] %vm2867_vm5, %v6760_v4 }
  0x16   : > { %466 = vmatprep.mubr.bf16.mxu0 %v6760_v4  ;;  %586 = vmatprep.mubr.bf16.mxu1 %v6760_v4  ;;  %v342_v28 = vpack.c.bf16 %v314_v26, %v313_v25  ;;  %v337_v29 = vld [vmem:[%s6830_s12 + $0xf0] sm:$0xff]  ;;  %v338_v30 = vld [vmem:[%s6830_s12 + $0xf8] sm:$0xff]  ;;  %v316_v32 = vld [vmem:[%s6830_s12 + $0x48] sm:$0xff]  ;;  %2877 = vst.msk [vmem:[#allocation2 + $0xa4] sm:$0xf] %vm2867_vm5, %v6760_v4 }
  0x17   : > { %v354_v33 = vpack.c.bf16 %v338_v30, %v337_v29  ;;  %v343_v34 = vpack.c.bf16 %v316_v32, %v315_v31  ;;  %v317_v35 = vld [vmem:[%s6830_s12 + $0x50] sm:$0xff]  ;;  %v318_v36 = vld [vmem:[%s6830_s12 + $0x58] sm:$0xff]  ;;  %v319_v38 = vld [vmem:[%s6830_s12 + $0x60] sm:$0xff]  ;;  %2878 = vst.msk [vmem:[#allocation2 + $0xa8] sm:$0xf] %vm2867_vm5, %v6760_v4 }
  0x18   : > { %v344_v37 = vpack.c.bf16 %v318_v36, %v317_v35  ;;  %v320_v39 = vld [vmem:[%s6830_s12 + $0x68] sm:$0xff]  ;;  %v321_v41 = vld [vmem:[%s6830_s12 + $0x70] sm:$0xff]  ;;  %v322_v42 = vld [vmem:[%s6830_s12 + $0x78] sm:$0xff]  ;;  %2879 = vst.msk [vmem:[#allocation2 + $0xac] sm:$0xf] %vm2867_vm5, %v6760_v4 }
  0x19   : > { %v345_v40 = vpack.c.bf16 %v320_v39, %v319_v38  ;;  %v346_v43 = vpack.c.bf16 %v322_v42, %v321_v41  ;;  %v323_v44 = vld [vmem:[%s6830_s12 + $0x80] sm:$0xff]  ;;  %v324_v45 = vld [vmem:[%s6830_s12 + $0x88] sm:$0xff]  ;;  %v325_v47 = vld [vmem:[%s6830_s12 + $0x90] sm:$0xff]  ;;  %2880 = vst.msk [vmem:[#allocation2 + $0xb0] sm:$0xf] %vm2867_vm5, %v6760_v4 }
  0x1a   : > { %v347_v46 = vpack.c.bf16 %v324_v45, %v323_v44  ;;  %v326_v48 = vld [vmem:[%s6830_s12 + $0x98] sm:$0xff]  ;;  %v327_v51 = vld [vmem:[%s6830_s12 + $0xa0] sm:$0xff]  ;;  %v328_v52 = vld [vmem:[%s6830_s12 + $0xa8] sm:$0xff]  ;;  %2881 = vst.msk [vmem:[#allocation2 + $0xb4] sm:$0xf] %vm2867_vm5, %v6760_v4 }
  0x1b   : > { %v348_v49 = vpack.c.bf16 %v326_v48, %v325_v47  ;;  %v349_v53 = vpack.c.bf16 %v328_v52, %v327_v51  ;;  %v329_v54 = vld [vmem:[%s6830_s12 + $0xb0] sm:$0xff]  ;;  %v330_v55 = vld [vmem:[%s6830_s12 + $0xb8] sm:$0xff]  ;;  %2882 = vst.msk [vmem:[#allocation2 + $0xb8] sm:$0xf] %vm2867_vm5, %v6760_v4  ;;  %2883 = vst.msk [vmem:[#allocation2 + $0xbc] sm:$0xf] %vm2867_vm5, %v6760_v4 }
  0x1c   : > { %v350_v56 = vpack.c.bf16 %v330_v55, %v329_v54 }
  0x1d   : > { %5641 = vmatmul.mubr.msk.bf16.gmra.mxu0 %vm365_vm2, %v340_v14  ;;  %5653 = vmatmul.mubr.msk.bf16.gmra.mxu1 %vm365_vm2, %v352_v21 }
  0x1e   : > { %476 = vmatprep.mubr.bf16.mxu0 %v6760_v4  ;;  %596 = vmatprep.mubr.bf16.mxu1 %v6760_v4 }
  0x25   : > { %5642 = vmatmul.mubr.msk.bf16.gmra.mxu0 %vm365_vm2, %v341_v22  ;;  %5654 = vmatmul.mubr.msk.bf16.gmra.mxu1 %vm365_vm2, %v353_v27 }
  0x26   : > { %486 = vmatprep.mubr.bf16.mxu0 %v6760_v4  ;;  %606 = vmatprep.mubr.bf16.mxu1 %v6760_v4 }
  0x2d   : > { %5643 = vmatmul.mubr.msk.bf16.gmra.mxu0 %vm365_vm2, %v342_v28  ;;  %5655 = vmatmul.mubr.msk.bf16.gmra.mxu1 %vm365_vm2, %v354_v33 }
  0x2e   : > { %496 = vmatprep.mubr.bf16.mxu0 %v6760_v4  ;;  %6256 = vmatprep.mubr.msk.bf16.mxu1 %vm6762_vm3, %v6761_v50 }
  0x35   : > { %5644 = vmatmul.mubr.msk.bf16.gmra.mxu0 %vm365_vm2, %v343_v34 }
  0x36   : > { %506 = vmatprep.mubr.bf16.mxu0 %v6760_v4 }
  0x3d   : > { %5645 = vmatmul.mubr.msk.bf16.gmra.mxu0 %vm365_vm2, %v344_v37 }
  0x3e   : > { %516 = vmatprep.mubr.bf16.mxu0 %v6760_v4 }
  0x45   : > { %5646 = vmatmul.mubr.msk.bf16.gmra.mxu0 %vm365_vm2, %v345_v40 }
  0x46   : > { %526 = vmatprep.mubr.bf16.mxu0 %v6760_v4 }
  0x4d   : > { %5647 = vmatmul.mubr.msk.bf16.gmra.mxu0 %vm365_vm2, %v346_v43 }
  0x4e   : > { %536 = vmatprep.mubr.bf16.mxu0 %v6760_v4 }
  0x55   : > { %5648 = vmatmul.mubr.msk.bf16.gmra.mxu0 %vm365_vm2, %v347_v46 }
  0x56   : > { %546 = vmatprep.mubr.bf16.mxu0 %v6760_v4 }
  0x5d   : > { %5649 = vmatmul.mubr.msk.bf16.gmra.mxu0 %vm365_vm2, %v348_v49 }
  0x5e   : > { %556 = vmatprep.mubr.bf16.mxu0 %v6760_v4 }
  0x65   : > { %5650 = vmatmul.mubr.msk.bf16.gmra.mxu0 %vm365_vm2, %v349_v53 }
  0x66   : > { %566 = vmatprep.mubr.bf16.mxu0 %v6760_v4  ;;  %v3093_v4 = vld [vmem:[#allocation2 + $0xc] sm:$0xf] }
  0x6d   : > { %5651 = vmatmul.mubr.msk.bf16.gmra.mxu0 %vm365_vm2, %v350_v56 }
  0x6e   : > { %6352 = vmatprep.mubr.msk.bf16.mxu0 %vm6762_vm3, %v6761_v50 }
  0xd5   : > { %v458_v57 = vpop.f32.mrf.mxu0  ;;  %v578_v24 = vpop.f32.mrf.mxu1 }
  0xd7   : > { %v6900_v58 = vpop.f32.mrf.mxu0  ;;  %v6959_v27 = vpop.f32.mrf.mxu1 }
  0xd9   : > { %v462_v59 = vpop.f32.mrf.mxu0  ;;  %v582_v31 = vpop.f32.mrf.mxu1 }
  0xda   : > { %v617_v60 = vpack.c.bf16 %v462_v59, %v458_v57 }
  0xdb   : > { %v6902_v61 = vpop.f32.mrf.mxu0  ;;  %v6967_v34 = vpop.f32.mrf.mxu1 }
  0xdc   : > { %660 = vrot.lane.b32.xlu0 %v617_v60, %s6763_s15  ;;  %6351 = vmatpush3.bf16.msra.mxu0 %v617_v60 }
  0xdd   : > { %v468_v63 = vpop.f32.mrf.mxu0  ;;  %6362 = vmatprep.subr.bf16.mxu0 %v6761_v50  ;;  %v588_v38 = vpop.f32.mrf.mxu1 }
  0xdf   : > { %v6911_v0 = vpop.f32.mrf.mxu0  ;;  %6353 = vmatmul.mubr.msk.bf16.vlgmr.msra.gmra.mxu0 %vm663_vm4, %v6907_v62  ;;  %v6981_v41 = vpop.f32.mrf.mxu1 }
  0xe0   : > { %6364 = vmatprep.mubr.msk.bf16.mxu0 %vm6762_vm3, %v6761_v50 }
  0xe1   : > { %v472_v1 = vpop.f32.mrf.mxu0  ;;  %v592_v45 = vpop.f32.mrf.mxu1 }
  0xe2   : > { %v6917_v2 = vpack.c.bf16 %v472_v1, %v468_v63 }
  0xe3   : > { %v6919_v3 = vpop.f32.mrf.mxu0  ;;  %v6989_v48 = vpop.f32.mrf.mxu1 }
  0xe4   : > { %709 = vrot.lane.b32.xlu0 %v6917_v2, %s6763_s15 }
  0xe5   : > { %v478_v5 = vpop.f32.mrf.mxu0  ;;  %v598_v53 = vpop.f32.mrf.mxu1 }
  0xe7   : > { %v6923_v6 = vpop.f32.mrf.mxu0  ;;  %v7003_v56 = vpop.f32.mrf.mxu1 }
  0xe9   : > { %v482_v7 = vpop.f32.mrf.mxu0  ;;  %v602_v63 = vpop.f32.mrf.mxu1 }
  0xea   : > { %v621_v8 = vpack.c.bf16 %v482_v7, %v478_v5  ;;  %v641_v5 = vpack.c.bf16 %v582_v31, %v578_v24 }
  0xeb   : > { %v6925_v9 = vpop.f32.mrf.mxu0  ;;  %v7010_v7 = vpop.f32.mrf.mxu1 }
  0xec   : > { %754 = vrot.lane.b32.xlu1 %v621_v8, %s6763_s15  ;;  %6363 = vmatpush3.bf16.msra.mxu0 %v621_v8  ;;  %v622_v31 = vpack.c.bf16 %v6925_v9, %v6923_v6 }
  0xed   : > { %v488_v10 = vpop.f32.mrf.mxu0  ;;  %6374 = vmatprep.subr.bf16.mxu0 %v6761_v50 }
  0xef   : > { %v6929_v11 = vpop.f32.mrf.mxu0  ;;  %6365 = vmatmul.mubr.msk.bf16.vlgmr.msra.gmra.mxu0 %vm663_vm4, %v6907_v62 }
  0xf0   : > { %6376 = vmatprep.mubr.msk.bf16.mxu0 %vm6762_vm3, %v6761_v50 }
  0xf1   : > { %v492_v12 = vpop.f32.mrf.mxu0 }
  0xf2   : > { %v6935_v13 = vpack.c.bf16 %v492_v12, %v488_v10  ;;  %v608_v12 = vpop.f32.mrf.mxu1 }
  0xf3   : > { %v6937_v14 = vpop.f32.mrf.mxu0 }
  0xf4   : > { %799 = vrot.lane.b32.xlu1 %v6935_v13, %s6763_s15 }
  0xf5   : > { %v498_v15 = vpop.f32.mrf.mxu0 }
  0xf7   : > { %v6941_v16 = vpop.f32.mrf.mxu0 }
  0xf9   : > { %v502_v17 = vpop.f32.mrf.mxu0 }
  0xfa   : > { %v625_v18 = vpack.c.bf16 %v502_v17, %v498_v15 }
  0xfb   : > { %v6943_v19 = vpop.f32.mrf.mxu0 }
  0xfc   : > { %844 = vrot.lane.b32.xlu0 %v625_v18, %s6763_s15  ;;  %6375 = vmatpush3.bf16.msra.mxu0 %v625_v18  ;;  %v645_v18 = vpack.c.bf16 %v602_v63, %v598_v53  ;;  %v3096_v63 = vld [vmem:[#allocation2 + $0x18] sm:$0xf] }
  0xfd   : > { %v508_v20 = vpop.f32.mrf.mxu0  ;;  %6386 = vmatprep.subr.bf16.mxu0 %v6761_v50 }
  0xff   : > { %v6947_v21 = vpop.f32.mrf.mxu0  ;;  %6377 = vmatmul.mubr.msk.bf16.vlgmr.msra.gmra.mxu0 %vm663_vm4, %v6907_v62 }
 0x100   : > { %6388 = vmatprep.mubr.msk.bf16.mxu0 %vm6762_vm3, %v6761_v50 }
 0x101   : > { %v512_v22 = vpop.f32.mrf.mxu0 }
 0x102   : > { %v6953_v23 = vpack.c.bf16 %v512_v22, %v508_v20  ;;  %v7025_v20 = vpop.f32.mrf.mxu1  ;;  %v7027_v22 = vpack.c.bf16 %v592_v45, %v588_v38  ;;  %v3092_v45 = vld [vmem:[#allocation2 + $0x8] sm:$0xf] }
 0x103   : > { %v6955_v25 = vpop.f32.mrf.mxu0 }
 0x104   : > { %889 = vrot.lane.b32.xlu1 %v6953_v23, %s6763_s15  ;;  %v612_v24 = vpop.f32.mrf.mxu1 }
 0x105   : > { %v518_v26 = vpop.f32.mrf.mxu0 }
 0x107   : > { %v6961_v28 = vpop.f32.mrf.mxu0 }
 0x109   : > { %v522_v29 = vpop.f32.mrf.mxu0 }
 0x10a   : > { %v629_v30 = vpack.c.bf16 %v522_v29, %v518_v26  ;;  %v7037_v26 = vpack.c.bf16 %v612_v24, %v608_v12  ;;  %v618_v29 = vpack.c.bf16 %v6902_v61, %v6900_v58  ;;  %v626_v58 = vpack.c.bf16 %v6943_v19, %v6941_v16 }
 0x10b   : > { %v6963_v32 = vpop.f32.mrf.mxu0 }
 0x10c   : > { %934 = vrot.lane.b32.xlu0 %v629_v30, %s6763_s15  ;;  %6387 = vmatpush3.bf16.msra.mxu0 %v629_v30  ;;  %v7051_v30 = vld [vmem:[%s8656_s1 + $0x10] sm:$0xff]   ;;  %v630_v6 = vpack.c.bf16 %v6963_v32, %v6961_v28 }
 0x10d   : > { %v528_v33 = vpop.f32.mrf.mxu0  ;;  %6398 = vmatprep.subr.bf16.mxu0 %v6761_v50 }
 0x10f   : > { %v6969_v35 = vpop.f32.mrf.mxu0  ;;  %6389 = vmatmul.mubr.msk.bf16.vlgmr.msra.gmra.mxu0 %vm663_vm4, %v6907_v62 }
 0x110   : > { %6400 = vmatprep.mubr.msk.bf16.mxu0 %vm6762_vm3, %v6761_v50 }
 0x111   : > { %v532_v36 = vpop.f32.mrf.mxu0 }
 0x112   : > { %v6975_v37 = vpack.c.bf16 %v532_v36, %v528_v33  ;;  %v7065_v33 = vld [vmem:[%s8656_s1 + $0x8] sm:$0xff]   ;;  %v642_v36 = vpack.c.bf16 %v6967_v34, %v6959_v27  ;;  %v646_v27 = vpack.c.bf16 %v7010_v7, %v7003_v56  ;;  %v3094_v56 = vld [vmem:[#allocation2 + $0x10] sm:$0xf]  ;;  %v3097_v7 = vld [vmem:[#allocation2 + $0x1c] sm:$0xf] }
 0x113   : > { %v6977_v39 = vpop.f32.mrf.mxu0 }
 0x114   : > { %979 = vrot.lane.b32.xlu1 %v6975_v37, %s6763_s15 }
 0x115   : > { %v538_v40 = vpop.f32.mrf.mxu0 }
 0x117   : > { %v6983_v42 = vpop.f32.mrf.mxu0 }
 0x119   : > { %v542_v43 = vpop.f32.mrf.mxu0 }
 0x11a   : > { %v633_v44 = vpack.c.bf16 %v542_v43, %v538_v40 }
 0x11b   : > { %v6985_v46 = vpop.f32.mrf.mxu0 }
 0x11c   : > { %1024 = vrot.lane.b32.xlu0 %v633_v44, %s6763_s15  ;;  %6399 = vmatpush3.bf16.msra.mxu0 %v633_v44  ;;  %v634_v16 = vpack.c.bf16 %v6985_v46, %v6983_v42  ;;  %v3349_v46 = vld [vmem:[#allocation2 + $0x18] sm:$0xf] }
 0x11d   : > { %v548_v47 = vpop.f32.mrf.mxu0  ;;  %6410 = vmatprep.subr.bf16.mxu0 %v6761_v50 }
 0x11f   : > { %v6991_v49 = vpop.f32.mrf.mxu0  ;;  %6401 = vmatmul.mubr.msk.bf16.vlgmr.msra.gmra.mxu0 %vm663_vm4, %v6907_v62 }
 0x120   : > { %6412 = vmatprep.mubr.msk.bf16.mxu0 %vm6762_vm3, %v6761_v50 }
 0x121   : > { %v552_v51 = vpop.f32.mrf.mxu0 }
 0x122   : > { %v6997_v52 = vpack.c.bf16 %v552_v51, %v548_v47 }
 0x123   : > { %v6999_v54 = vpop.f32.mrf.mxu0 }
 0x124   : > { %1069 = vrot.lane.b32.xlu1 %v6997_v52, %s6763_s15 }
 0x125   : > { %v558_v55 = vpop.f32.mrf.mxu0 }
 0x127   : > { %v7005_v57 = vpop.f32.mrf.mxu0 }
 0x129   : > { %v562_v59 = vpop.f32.mrf.mxu0 }
 0x12a   : > { %v637_v60 = vpack.c.bf16 %v562_v59, %v558_v55  ;;  %v3350_v55 = vld [vmem:[#allocation2 + $0x1c] sm:$0xf] }
 0x12b   : > { %v7007_v1 = vpop.f32.mrf.mxu0 }
 0x12c   : > { %1114 = vrot.lane.b32.xlu0 %v637_v60, %s6763_s15  ;;  %6411 = vmatpush3.bf16.msra.mxu0 %v637_v60  ;;  %v638_v28 = vpack.c.bf16 %v7007_v1, %v7005_v57  ;;  %v3095_v60 = vld [vmem:[#allocation2 + $0x14] sm:$0xf] }
 0x12d   : > { %v568_v8 = vpop.f32.mrf.mxu0  ;;  %6422 = vmatprep.subr.bf16.mxu0 %v6761_v50 }
 0x12f   : > { %v7013_v10 = vpop.f32.mrf.mxu0  ;;  %6413 = vmatmul.mubr.msk.bf16.vlgmr.msra.gmra.mxu0 %vm663_vm4, %v6907_v62 }
 0x130   : > { %6423 = vmatpush3.bf16.msra.mxu0 %v641_v5  ;;  %6424 = vmatprep.mubr.msk.bf16.mxu0 %vm6762_vm3, %v6761_v50 }
 0x131   : > { %v572_v15 = vpop.f32.mrf.mxu0  ;;  %6434 = vmatprep.subr.bf16.mxu0 %v6761_v50  ;;  %1204 = vrot.lane.b32.xlu0 %v641_v5, %s6763_s15 }
 0x132   : > { %v7021_v17 = vpack.c.bf16 %v572_v15, %v568_v8 }
 0x133   : > { %v7193_v47 = vpop.f32.mrf.mxu0 }
 0x134   : > { %1159 = vrot.lane.b32.xlu1 %v7021_v17, %s6763_s15 }
 0x135   : > { %1294 = vrot.lane.b32.xlu0 %v645_v18, %s6763_s15 }
 0x137   : > { %6425 = vmatmul.mubr.msk.bf16.vlgmr.msra.gmra.mxu0 %vm663_vm4, %v6907_v62 }
 0x138   : > { %6435 = vmatpush3.bf16.msra.mxu0 %v645_v18  ;;  %6436 = vmatprep.mubr.msk.bf16.mxu0 %vm6762_vm3, %v6761_v50 }
 0x139   : > { %6446 = vmatprep.subr.bf16.mxu0 %v6761_v50  ;;  %1249 = vrot.lane.b32.xlu1 %v7027_v22, %s6763_s15 }
 0x13a   : > { %3156 = vrot.lane.b32.xlu0 %v3092_v45, %s6763_s15 }
 0x13d   : > { %1339 = vrot.lane.b32.xlu1 %v7037_v26, %s6763_s15 }
 0x13e   : > { %3413 = vrot.lane.b32.xlu0 %v3349_v46, %s6763_s15  ;;  %v6602_v46 = vld [vmem:[%s8660_s5 + $0x70] sm:$0xff]  }
 0x13f   : > { %6437 = vmatmul.mubr.msk.bf16.vlgmr.msra.gmra.mxu0 %vm663_vm4, %v6907_v62 }
 0x140   : > { %6447 = vmatpush3.bf16.msra.mxu0 %v618_v29  ;;  %6448 = vmatprep.mubr.msk.bf16.mxu0 %vm6762_vm3, %v6761_v50 }
 0x141   : > { %6458 = vmatprep.subr.bf16.mxu0 %v6761_v50  ;;  %3158 = vrot.lane.b32.xlu1 %v3093_v4, %s6763_s15  ;;  %v6601_v4 = vld [vmem:[%s8660_s5 + $0x38] sm:$0xff]  }
 0x142   : > { %3160 = vrot.lane.b32.xlu0 %v3094_v56, %s6763_s15 }
 0x145   : > { %3415 = vrot.lane.b32.xlu1 %v3350_v55, %s6763_s15  ;;  %v6603_v55 = vld [vmem:[%s8660_s5 + $0x30] sm:$0xff]  }
 0x146   : > { %3164 = vrot.lane.b32.xlu0 %v3096_v63, %s6763_s15  ;;  %v6605_v63 = vld [vmem:[%s8660_s5 + $0x28] sm:$0xff]  }
 0x147   : > { %6449 = vmatmul.mubr.msk.bf16.vlgmr.msra.gmra.mxu0 %vm663_vm4, %v7051_v30 }
 0x148   : > { %6459 = vmatpush3.bf16.msra.mxu0 %v622_v31  ;;  %6460 = vmatprep.mubr.msk.bf16.mxu0 %vm6762_vm3, %v6761_v50 }
 0x149   : > { %6470 = vmatprep.subr.bf16.mxu0 %v6761_v50  ;;  %3162 = vrot.lane.b32.xlu1 %v3095_v60, %s6763_s15 }
 0x14d   : > { %3166 = vrot.lane.b32.xlu1 %v3097_v7, %s6763_s15 }
 0x14e   : > { %v661_v61 = vpop.permute.xlu0 %660 }
 0x14f   : > { %6255 = vmatpush3.bf16.msra.mxu1 %v661_v61  ;;  %6461 = vmatmul.mubr.msk.bf16.vlgmr.msra.gmra.mxu0 %vm663_vm4, %v7051_v30 }
 0x150   : > { %6471 = vmatpush3.bf16.msra.mxu0 %v626_v58  ;;  %6260 = vmatprep.subr.bf16.mxu1 %v6761_v50 }
 0x151   : > { %6472 = vmatprep.mubr.msk.bf16.mxu0 %vm6762_vm3, %v6761_v50  ;;  %6482 = vmatprep.subr.bf16.mxu0 %v6761_v50 }
 0x152   : > { %6257 = vmatmul.mubr.msk.bf16.vlgmr.msra.gmra.mxu1 %vm663_vm4, %v7065_v33 }
 0x153   : > { %6262 = vmatprep.mubr.msk.bf16.mxu1 %vm6762_vm3, %v6761_v50 }
 0x156   : > { %v710_v9 = vpop.permute.xlu0 %709 }
 0x157   : > { %6261 = vmatpush3.bf16.msra.mxu1 %v710_v9  ;;  %6473 = vmatmul.mubr.msk.bf16.vlgmr.msra.gmra.mxu0 %vm663_vm4, %v7051_v30 }
 0x158   : > { %6483 = vmatpush3.bf16.msra.mxu0 %v630_v6  ;;  %6266 = vmatprep.subr.bf16.mxu1 %v6761_v50 }
 0x159   : > { %6484 = vmatprep.mubr.msk.bf16.mxu0 %vm6762_vm3, %v6761_v50  ;;  %6494 = vmatprep.subr.bf16.mxu0 %v6761_v50 }
 0x15a   : > { %6263 = vmatmul.mubr.msk.bf16.vlgmr.msra.gmra.mxu1 %vm663_vm4, %v7065_v33 }
 0x15b   : > { %6268 = vmatprep.mubr.msk.bf16.mxu1 %vm6762_vm3, %v6761_v50 }
 0x15e   : > { %v755_v19 = vpop.permute.xlu1 %754 }
 0x15f   : > { %6267 = vmatpush3.bf16.msra.mxu1 %v755_v19  ;;  %6485 = vmatmul.mubr.msk.bf16.vlgmr.msra.gmra.mxu0 %vm663_vm4, %v7051_v30 }
 0x160   : > { %6495 = vmatpush3.bf16.msra.mxu0 %v634_v16  ;;  %6272 = vmatprep.subr.bf16.mxu1 %v6761_v50 }
 0x161   : > { %6496 = vmatprep.mubr.msk.bf16.mxu0 %vm6762_vm3, %v6761_v50  ;;  %6506 = vmatprep.subr.bf16.mxu0 %v6761_v50 }
 0x162   : > { %6269 = vmatmul.mubr.msk.bf16.vlgmr.msra.gmra.mxu1 %vm663_vm4, %v7065_v33 }
 0x163   : > { %6274 = vmatprep.mubr.msk.bf16.mxu1 %vm6762_vm3, %v6761_v50 }
 0x166   : > { %v800_v32 = vpop.permute.xlu1 %799 }
 0x167   : > { %6273 = vmatpush3.bf16.msra.mxu1 %v800_v32  ;;  %6497 = vmatmul.mubr.msk.bf16.vlgmr.msra.gmra.mxu0 %vm663_vm4, %v7051_v30 }
 0x168   : > { %6507 = vmatpush3.bf16.msra.mxu0 %v638_v28  ;;  %6278 = vmatprep.subr.bf16.mxu1 %v6761_v50 }
 0x169   : > { %6508 = vmatprep.mubr.msk.bf16.mxu0 %vm6762_vm3, %v6761_v50  ;;  %6518 = vmatprep.subr.bf16.mxu0 %v6761_v50 }
 0x16a   : > { %6275 = vmatmul.mubr.msk.bf16.vlgmr.msra.gmra.mxu1 %vm663_vm4, %v7065_v33 }
 0x16b   : > { %6280 = vmatprep.mubr.msk.bf16.mxu1 %vm6762_vm3, %v6761_v50 }
 0x16e   : > { %v845_v38 = vpop.permute.xlu0 %844 }
 0x16f   : > { %6279 = vmatpush3.bf16.msra.mxu1 %v845_v38  ;;  %6509 = vmatmul.mubr.msk.bf16.vlgmr.msra.gmra.mxu0 %vm663_vm4, %v7051_v30 }
 0x170   : > { %6519 = vmatpush3.bf16.msra.mxu0 %v642_v36  ;;  %6284 = vmatprep.subr.bf16.mxu1 %v6761_v50 }
 0x171   : > { %6520 = vmatprep.mubr.msk.bf16.mxu0 %vm6762_vm3, %v6761_v50  ;;  %6530 = vmatprep.subr.bf16.mxu0 %v6761_v50 }
 0x172   : > { %6281 = vmatmul.mubr.msk.bf16.vlgmr.msra.gmra.mxu1 %vm663_vm4, %v7065_v33 }
 0x173   : > { %6286 = vmatprep.mubr.msk.bf16.mxu1 %vm6762_vm3, %v6761_v50 }
 0x176   : > { %v890_v34 = vpop.permute.xlu1 %889 }
 0x177   : > { %6285 = vmatpush3.bf16.msra.mxu1 %v890_v34  ;;  %6521 = vmatmul.mubr.msk.bf16.vlgmr.msra.gmra.mxu0 %vm663_vm4, %v7051_v30 }
 0x178   : > { %6531 = vmatpush3.bf16.msra.mxu0 %v646_v27  ;;  %6290 = vmatprep.subr.bf16.mxu1 %v6761_v50 }
 0x179   : > { %6532 = vmatprep.mubr.msk.bf16.mxu0 %vm6762_vm3, %v6761_v50 }
 0x17a   : > { %6287 = vmatmul.mubr.msk.bf16.vlgmr.msra.gmra.mxu1 %vm663_vm4, %v7065_v33 }
 0x17b   : > { %6292 = vmatprep.mubr.msk.bf16.mxu1 %vm6762_vm3, %v6761_v50 }
 0x17e   : > { %v935_v40 = vpop.permute.xlu0 %934 }
 0x17f   : > { %6291 = vmatpush3.bf16.msra.mxu1 %v935_v40  ;;  %6533 = vmatmul.mubr.msk.bf16.vlgmr.msra.gmra.mxu0 %vm663_vm4, %v7051_v30 }
 0x180   : > { %6296 = vmatprep.subr.bf16.mxu1 %v6761_v50 }
 0x182   : > { %6293 = vmatmul.mubr.msk.bf16.vlgmr.msra.gmra.mxu1 %vm663_vm4, %v7065_v33 }
 0x183   : > { %6298 = vmatprep.mubr.msk.bf16.mxu1 %vm6762_vm3, %v6761_v50 }
 0x186   : > { %v980_v42 = vpop.permute.xlu1 %979 }
 0x187   : > { %6297 = vmatpush3.bf16.msra.mxu1 %v980_v42 }
 0x188   : > { %6302 = vmatprep.subr.bf16.mxu1 %v6761_v50 }
 0x18a   : > { %6299 = vmatmul.mubr.msk.bf16.vlgmr.msra.gmra.mxu1 %vm663_vm4, %v7065_v33 }
 0x18b   : > { %6304 = vmatprep.mubr.msk.bf16.mxu1 %vm6762_vm3, %v6761_v50 }
 0x18e   : > { %v1025_v43 = vpop.permute.xlu0 %1024 }
 0x18f   : > { %6303 = vmatpush3.bf16.msra.mxu1 %v1025_v43 }
 0x190   : > { %6308 = vmatprep.subr.bf16.mxu1 %v6761_v50 }
 0x192   : > { %6305 = vmatmul.mubr.msk.bf16.vlgmr.msra.gmra.mxu1 %vm663_vm4, %v7065_v33 }
 0x193   : > { %6310 = vmatprep.mubr.msk.bf16.mxu1 %vm6762_vm3, %v6761_v50 }
 0x196   : > { %v1070_v44 = vpop.permute.xlu1 %1069 }
 0x197   : > { %6309 = vmatpush3.bf16.msra.mxu1 %v1070_v44  ;;  %v6600_v44 = vld [vmem:[%s8660_s5 + $0x78] sm:$0xff]  }
 0x198   : > { %6314 = vmatprep.subr.bf16.mxu1 %v6761_v50  ;;  %6010 = vmatprep.subr.bf16.mxu0 %v6600_v44  ;;  %v3029_v44 = vld [vmem:[#allocation2 + $0x4] sm:$0xf] }
 0x199   : > { %6011 = vmatpush3.bf16.msra.mxu0 %v6601_v4  ;;  %3061 = vst.msk [vmem:[#allocation3 + $0x14] sm:$0xf] %vm2867_vm5, %v3029_v44 }
 0x19a   : > { %6311 = vmatmul.mubr.msk.bf16.vlgmr.msra.gmra.mxu1 %vm663_vm4, %v7065_v33  ;;  %6012 = vmatprep.subr.bf16.mxu0 %v6602_v46 }
 0x19b   : > { %6316 = vmatprep.mubr.msk.bf16.mxu1 %vm6762_vm3, %v6761_v50 }
 0x19d   : > { %6013 = vmatpush3.bf16.msra.mxu0 %v6603_v55  ;;  %v3286_v55 = vld [vmem:[#allocation2 + $0x14] sm:$0xf] }
 0x19e   : > { %v1115_v51 = vpop.permute.xlu0 %1114  ;;  %3318 = vst.msk [vmem:[#allocation3 + $0x18] sm:$0xf] %vm2867_vm5, %v3286_v55  ;;  %v632_v55 = vpack.c.bf16 %v6977_v39, %v6969_v35 }
 0x19f   : > { %6315 = vmatpush3.bf16.msra.mxu1 %v1115_v51  ;;  %v7195_v53 = vpop.f32.mrf.mxu0 }
 0x1a0   : > { %6320 = vmatprep.subr.bf16.mxu1 %v6761_v50 }
 0x1a1   : > { %v6354_v57 = vpop.f32.mrf.mxu0 }
 0x1a2   : > { %6317 = vmatmul.mubr.msk.bf16.vlgmr.msra.gmra.mxu1 %vm663_vm4, %v7065_v33  ;;  %v620_v57 = vpack.c.bf16 %v6919_v3, %v6911_v0  ;;  %v6606_v0 = vld [vmem:[%s8660_s5 + $0x60] sm:$0xff]  }
 0x1a3   : > { %6322 = vmatprep.mubr.msk.bf16.mxu1 %vm6762_vm3, %v6761_v50  ;;  %v7204_v59 = vpop.f32.mrf.mxu0  ;;  %v1205_v8 = vpop.permute.xlu0 %1204 }
 0x1a5   : > { %v6355_v1 = vpop.f32.mrf.mxu0 }
 0x1a6   : > { %v1160_v5 = vpop.permute.xlu1 %1159 }
 0x1a7   : > { %6321 = vmatpush3.bf16.msra.mxu1 %v1160_v5  ;;  %v1295_v31 = vpop.permute.xlu0 %1294  ;;  %v6607_v5 = vld [vmem:[%s8660_s5 + $0x20] sm:$0xff]  }
 0x1a8   : > { %6326 = vmatprep.subr.bf16.mxu1 %v6761_v50 }
 0x1aa   : > { %6323 = vmatmul.mubr.msk.bf16.vlgmr.msra.gmra.mxu1 %vm663_vm4, %v7065_v33 }
 0x1ab   : > { %6327 = vmatpush3.bf16.msra.mxu1 %v1205_v8  ;;  %6328 = vmatprep.mubr.msk.bf16.mxu1 %vm6762_vm3, %v6761_v50  ;;  %v1250_v15 = vpop.permute.xlu1 %1249  ;;  %v7339_v8 = vpop.f32.mrf.mxu1 }
 0x1ac   : > { %6332 = vmatprep.subr.bf16.mxu1 %v6761_v50  ;;  %v3157_v7 = vpop.permute.xlu0 %3156 }
 0x1af   : > { %v7215_v12 = vpop.f32.mrf.mxu0  ;;  %v1340_v61 = vpop.permute.xlu1 %1339 }
 0x1b1   : > { %v6366_v18 = vpop.f32.mrf.mxu0 }
 0x1b2   : > { %6329 = vmatmul.mubr.msk.bf16.vlgmr.msra.gmra.mxu1 %vm663_vm4, %v7065_v33  ;;  %v624_v18 = vpack.c.bf16 %v6937_v14, %v6929_v11  ;;  %v7360_v14 = vld [vmem:[%s8658_s3] ss:$0 sm:$0xff] }
 0x1b3   : > { %6333 = vmatpush3.bf16.msra.mxu1 %v1250_v15  ;;  %6334 = vmatprep.mubr.msk.bf16.mxu1 %vm6762_vm3, %v6761_v50  ;;  %v7221_v24 = vpop.f32.mrf.mxu0  ;;  %v6608_v15 = vld [vmem:[%s8660_s5 + $0x58] sm:$0xff]  }
 0x1b4   : > { %6338 = vmatprep.subr.bf16.mxu1 %v6761_v50 }
 0x1b5   : > { %v6367_v29 = vpop.f32.mrf.mxu0 }
 0x1ba   : > { %6335 = vmatmul.mubr.msk.bf16.vlgmr.msra.gmra.mxu1 %vm663_vm4, %v7065_v33 }
 0x1bb   : > { %6339 = vmatpush3.bf16.msra.mxu1 %v1295_v31  ;;  %6340 = vmatprep.mubr.msk.bf16.mxu1 %vm6762_vm3, %v6761_v50  ;;  %v6609_v31 = vld [vmem:[%s8660_s5 + $0x18] sm:$0xff]  }
 0x1bc   : > { %6344 = vmatprep.subr.bf16.mxu1 %v6761_v50 }
 0x1bf   : > { %v7229_v58 = vpop.f32.mrf.mxu0 }
 0x1c1   : > { %v6378_v6 = vpop.f32.mrf.mxu0 }
 0x1c2   : > { %6341 = vmatmul.mubr.msk.bf16.vlgmr.msra.gmra.mxu1 %vm663_vm4, %v7065_v33  ;;  %v3159_v6 = vpop.permute.xlu1 %3158 }
 0x1c3   : > { %6345 = vmatpush3.bf16.msra.mxu1 %v1340_v61  ;;  %6346 = vmatprep.mubr.msk.bf16.mxu1 %vm6762_vm3, %v6761_v50  ;;  %v7235_v9 = vpop.f32.mrf.mxu0  ;;  %3254 = vst.msk [vmem:[#allocation3 + $0x14] sm:$0xf] %vm3252_vm6, %v3159_v6 }
 0x1c4   : > { %6356 = vmatprep.subr.bf16.mxu1 %v6761_v50 }
 0x1c5   : > { %v6379_v16 = vpop.f32.mrf.mxu0 }
 0x1ca   : > { %6347 = vmatmul.mubr.msk.bf16.vlgmr.msra.gmra.mxu1 %vm663_vm4, %v7065_v33 }
 0x1cb   : > { %6357 = vmatpush3.bf16.msra.mxu1 %v6917_v2  ;;  %6358 = vmatprep.mubr.msk.bf16.mxu1 %vm6762_vm3, %v6761_v50 }
 0x1cc   : > { %6368 = vmatprep.subr.bf16.mxu1 %v6761_v50 }
 0x1cf   : > { %v7244_v19 = vpop.f32.mrf.mxu0 }
 0x1d1   : > { %v6390_v28 = vpop.f32.mrf.mxu0 }
 0x1d2   : > { %6359 = vmatmul.mubr.msk.bf16.vlgmr.msra.gmra.mxu1 %vm663_vm4, %v6907_v62 }
 0x1d3   : > { %6369 = vmatpush3.bf16.msra.mxu1 %v6935_v13  ;;  %6370 = vmatprep.mubr.msk.bf16.mxu1 %vm6762_vm3, %v6761_v50  ;;  %v7251_v32 = vpop.f32.mrf.mxu0 }
 0x1d4   : > { %6380 = vmatprep.subr.bf16.mxu1 %v6761_v50 }
 0x1d5   : > { %v6391_v2 = vpop.f32.mrf.mxu0 }
 0x1d6   : > { %v6610_v2 = vld [vmem:[%s8660_s5 + $0x50] sm:$0xff]  }
 0x1da   : > { %6371 = vmatmul.mubr.msk.bf16.vlgmr.msra.gmra.mxu1 %vm663_vm4, %v6907_v62 }
 0x1db   : > { %6381 = vmatpush3.bf16.msra.mxu1 %v6953_v23  ;;  %6382 = vmatprep.mubr.msk.bf16.mxu1 %vm6762_vm3, %v6761_v50 }
 0x1dc   : > { %6392 = vmatprep.subr.bf16.mxu1 %v6761_v50 }
 0x1df   : > { %v7260_v33 = vpop.f32.mrf.mxu0 }
 0x1e1   : > { %v6402_v13 = vpop.f32.mrf.mxu0 }
 0x1e2   : > { %6383 = vmatmul.mubr.msk.bf16.vlgmr.msra.gmra.mxu1 %vm663_vm4, %v6907_v62  ;;  %v7368_v13 = vld [vmem:[%s8659_s4] sm:$0xff] }
 0x1e3   : > { %6393 = vmatpush3.bf16.msra.mxu1 %v6975_v37  ;;  %6394 = vmatprep.mubr.msk.bf16.mxu1 %vm6762_vm3, %v6761_v50  ;;  %v7267_v36 = vpop.f32.mrf.mxu0 }
 0x1e4   : > { %6404 = vmatprep.subr.bf16.mxu1 %v6761_v50 }
 0x1e5   : > { %v6403_v23 = vpop.f32.mrf.mxu0 }
 0x1ea   : > { %6395 = vmatmul.mubr.msk.bf16.vlgmr.msra.gmra.mxu1 %vm663_vm4, %v6907_v62 }
 0x1eb   : > { %6405 = vmatpush3.bf16.msra.mxu1 %v6997_v52  ;;  %6406 = vmatprep.mubr.msk.bf16.mxu1 %vm6762_vm3, %v6761_v50 }
 0x1ec   : > { %6416 = vmatprep.subr.bf16.mxu1 %v6761_v50 }
 0x1ef   : > { %v7276_v38 = vpop.f32.mrf.mxu0 }
 0x1f1   : > { %v6414_v37 = vpop.f32.mrf.mxu0 }
 0x1f2   : > { %6407 = vmatmul.mubr.msk.bf16.vlgmr.msra.gmra.mxu1 %vm663_vm4, %v6907_v62  ;;  %v3414_v37 = vpop.permute.xlu0 %3413 }
 0x1f3   : > { %6417 = vmatpush3.bf16.msra.mxu1 %v7021_v17  ;;  %6418 = vmatprep.mubr.msk.bf16.mxu1 %vm6762_vm3, %v6761_v50  ;;  %v7283_v27 = vpop.f32.mrf.mxu0 }
 0x1f4   : > { %6428 = vmatprep.subr.bf16.mxu1 %v6761_v50 }
 0x1f5   : > { %v6415_v52 = vpop.f32.mrf.mxu0 }
 0x1f6   : > { %v6611_v52 = vld [vmem:[%s8660_s5 + $0x10] sm:$0xff]  }
 0x1f7   : > { %v7286_v34 = vpop.f32.mrf.mxu0 }
 0x1f9   : > { %v6426_v40 = vpop.f32.mrf.mxu0 }
 0x1fa   : > { %6419 = vmatmul.mubr.msk.bf16.vlgmr.msra.gmra.mxu1 %vm663_vm4, %v6907_v62 }
 0x1fb   : > { %6429 = vmatpush3.bf16.msra.mxu1 %v7027_v22  ;;  %6430 = vmatprep.mubr.msk.bf16.mxu1 %vm6762_vm3, %v6761_v50  ;;  %v7293_v17 = vpop.f32.mrf.mxu0 }
 0x1fc   : > { %6440 = vmatprep.subr.bf16.mxu1 %v6761_v50 }
 0x1fd   : > { %v6427_v42 = vpop.f32.mrf.mxu0 }
 0x1fe   : > { %v3028_v42 = vld [vmem:[#allocation2] sm:$0xf] }
 0x1ff   : > { %v7296_v43 = vpop.f32.mrf.mxu0  ;;  %3060 = vst.msk [vmem:[#allocation3] sm:$0xf] %vm2867_vm5, %v3028_v42 }
 0x200   : > { %3253 = vst.msk [vmem:[#allocation3] sm:$0xf] %vm3252_vm6, %v3157_v7  ;;  %v7401_v7 = vld [vmem:[%s8659_s4 + $0x8] sm:$0xff] }
 0x201   : > { %v6438_v45 = vpop.f32.mrf.mxu0 }
 0x202   : > { %6431 = vmatmul.mubr.msk.bf16.vlgmr.msra.gmra.mxu1 %vm663_vm4, %v6907_v62  ;;  %v3285_v45 = vld [vmem:[#allocation2 + $0x10] sm:$0xf] }
 0x203   : > { %6441 = vmatpush3.bf16.msra.mxu1 %v7037_v26  ;;  %6442 = vmatprep.mubr.msk.bf16.mxu1 %vm6762_vm3, %v6761_v50  ;;  %v7309_v22 = vpop.f32.mrf.mxu0  ;;  %v6604_v26 = vld [vmem:[%s8660_s5 + $0x68] sm:$0xff]   ;;  %3317 = vst.msk [vmem:[#allocation3 + $0x4] sm:$0xf] %vm2867_vm5, %v3285_v45 }
 0x204   : > { %6452 = vmatprep.subr.bf16.mxu1 %v6761_v50  ;;  %6014 = vmatprep.subr.bf16.mxu0 %v6604_v26  ;;  %3509 = vst.msk [vmem:[#allocation3 + $0x4] sm:$0xf] %vm3252_vm6, %v3414_v37  ;;  %v6612_v26 = vld [vmem:[%s8660_s5 + $0x48] sm:$0xff]   ;;  %v3288_v37 = vld [vmem:[#allocation2 + $0x1c] sm:$0xf] }
 0x205   : > { %v6439_v51 = vpop.f32.mrf.mxu0  ;;  %6015 = vmatpush3.bf16.msra.mxu0 %v6605_v63  ;;  %3320 = vst.msk [vmem:[#allocation3 + $0x40] sm:$0xf] %vm2867_vm5, %v3288_v37 }
 0x206   : > { %6016 = vmatprep.subr.bf16.mxu0 %v6606_v0 }
 0x207   : > { %v2092_v56 = vpop.f32.mrf.mxu0 }
 0x209   : > { %v6450_v60 = vpop.f32.mrf.mxu0  ;;  %6017 = vmatpush3.bf16.msra.mxu0 %v6607_v5 }
 0x20a   : > { %6443 = vmatmul.mubr.msk.bf16.vlgmr.msra.gmra.mxu1 %vm663_vm4, %v6907_v62  ;;  %6018 = vmatprep.subr.bf16.mxu0 %v6608_v15 }
 0x20b   : > { %6453 = vmatpush3.bf16.msra.mxu1 %v620_v57  ;;  %6454 = vmatprep.mubr.msk.bf16.mxu1 %vm6762_vm3, %v6761_v50  ;;  %v2095_v1 = vpop.f32.mrf.mxu0  ;;  %v628_v57 = vpack.c.bf16 %v6955_v25, %v6947_v21  ;;  %v3030_v21 = vld [vmem:[#allocation2 + $0x8] sm:$0xf]  ;;  %v3287_v25 = vld [vmem:[#allocation2 + $0x18] sm:$0xf] }
 0x20c   : > { %6464 = vmatprep.subr.bf16.mxu1 %v6761_v50  ;;  %3062 = vst.msk [vmem:[#allocation3 + $0x28] sm:$0xf] %vm2867_vm5, %v3030_v21  ;;  %3319 = vst.msk [vmem:[#allocation3 + $0x2c] sm:$0xf] %vm2867_vm5, %v3287_v25 }
 0x20d   : > { %v6451_v3 = vpop.f32.mrf.mxu0  ;;  %6019 = vmatpush3.bf16.msra.mxu0 %v6609_v31 }
 0x20e   : > { %6020 = vmatprep.subr.bf16.mxu0 %v6610_v2  ;;  %v6613_v3 = vld [vmem:[%s8660_s5 + $0x8] sm:$0xff]   ;;  %v6615_v2 = vld [vmem:[%s8660_s5] sm:$0xff]  }
 0x20f   : > { %v7337_v62 = vpop.f32.mrf.mxu0 }
 0x211   : > { %v6462_v29 = vpop.f32.mrf.mxu0  ;;  %6021 = vmatpush3.bf16.msra.mxu0 %v6611_v52  ;;  %v3034_v52 = vld [vmem:[#allocation2 + $0x18] sm:$0xf] }
 0x212   : > { %v701_v61 = vpop.f32.mrf.mxu1  ;;  %6455 = vmatmul.mubr.msk.bf16.vlgmr.msra.gmra.mxu1 %vm663_vm4, %v7051_v30  ;;  %6022 = vmatprep.subr.bf16.mxu0 %v6612_v26  ;;  %v3161_v29 = vpop.permute.xlu0 %3160  ;;  %3066 = vst.msk [vmem:[#allocation3 + $0x78] sm:$0xf] %vm2867_vm5, %v3034_v52 }
 0x213   : > { %v1426_v16 = vadd.f32 %v7195_v53, %v701_v61  ;;  %6465 = vmatpush3.bf16.msra.mxu1 %v624_v18  ;;  %6466 = vmatprep.mubr.msk.bf16.mxu1 %vm6762_vm3, %v6761_v50  ;;  %v7354_v28 = vpop.f32.mrf.mxu0  ;;  %3255 = vst.msk [vmem:[#allocation3 + $0x28] sm:$0xf] %vm3252_vm6, %v3161_v29  ;;  %v6614_v61 = vld [vmem:[%s8660_s5 + $0x40] sm:$0xff]  }
 0x214   : > { %v6258_v11 = vpop.f32.mrf.mxu1  ;;  %6476 = vmatprep.subr.bf16.mxu1 %v6761_v50 }
 0x215   : > { %v2714_v53 = vadd.f32 %v2092_v56, %v1426_v16  ;;  %v6463_v23 = vpop.f32.mrf.mxu0  ;;  %6023 = vmatpush3.bf16.msra.mxu0 %v6613_v3 }
 0x216   : > { %v704_v40 = vpop.f32.mrf.mxu1  ;;  %v3031_v23 = vld [vmem:[#allocation2 + $0xc] sm:$0xf]  ;;  %6024 = vmatprep.subr.bf16.mxu0 %v6614_v61 }
 0x217   : > { %v1429_v4 = vadd.f32 %v7204_v59, %v704_v40  ;;  %v2753_v46 = vmul.f32 %v7360_v14, %v2714_v53  ;;  %v7375_v51 = vpop.f32.mrf.mxu0  ;;  %v3416_v59 = vpop.permute.xlu1 %3415  ;;  %3063 = vst.msk [vmem:[#allocation3 + $0x3c] sm:$0xf] %vm2867_vm5, %v3031_v23 }
 0x218   : > { %v6259_v56 = vpop.f32.mrf.mxu1  ;;  %3510 = vst.msk [vmem:[#allocation3 + $0x18] sm:$0xf] %vm3252_vm6, %v3416_v59 }
 0x219   : > { %v2787_v60 = vadd.f32 %v7368_v13, %v2753_v46  ;;  %v2715_v63 = vadd.f32 %v2095_v1, %v1429_v4  ;;  %v6474_v0 = vpop.f32.mrf.mxu0  ;;  %6025 = vmatpush3.bf16.msra.mxu0 %v6615_v2  ;;  %v6616_v4 = vld [vmem:[#allocation3] ss:$20 sps:$4 sm:$0xff]  }
 0x21a   : > { %v7394_v5 = vpop.f32.mrf.mxu1  ;;  %6467 = vmatmul.mubr.msk.bf16.vlgmr.msra.gmra.mxu1 %vm663_vm4, %v7051_v30 }
 0x21b   : > { %6477 = vmatpush3.bf16.msra.mxu1 %v628_v57  ;;  %6478 = vmatprep.mubr.msk.bf16.mxu1 %vm6762_vm3, %v6761_v50  ;;  %v2819_v1 = vmax.f32 %v2787_v60, 0.0  ;;  %v2754_v15 = vmul.f32 %v7360_v14, %v2715_v63  ;;  %v7406_v18 = vpop.f32.mrf.mxu0  ;;  %v3163_v44 = vpop.permute.xlu1 %3162  ;;  %v3035_v57 = vld [vmem:[#allocation2 + $0x1c] sm:$0xf] }
 0x21c   : > { %v6264_v31 = vpop.f32.mrf.mxu1  ;;  %6488 = vmatprep.subr.bf16.mxu1 %v6761_v50  ;;  %3256 = vst.msk [vmem:[#allocation3 + $0x3c] sm:$0xf] %vm3252_vm6, %v3163_v44 }
 0x21d   : > { %v5882_v6 = vpack.c.bf16 %v2819_v1, %v2819_v1  ;;  %v2788_v16 = vadd.f32 %v7401_v7, %v2754_v15  ;;  %v6475_v11 = vpop.f32.mrf.mxu0  ;;  %3067 = vst.msk [vmem:[#allocation3 + $0x8c] sm:$0xf] %vm2867_vm5, %v3035_v57 }
 0x21e   : > { %v7419_v53 = vpop.f32.mrf.mxu1 }
 0x21f   : > { %2996 = vst.msk [vmem:[#allocation2 + $0x20] sm:$0xf] %vm2867_vm5, %v5882_v6  ;;  %v2820_v40 = vmax.f32 %v2788_v16, 0.0  ;;  %v7422_v42 = vpop.f32.mrf.mxu0  ;;  %v6618_v46 = vld [vmem:[#allocation3 + $0x4] ss:$20 sps:$4 sm:$0xff]  }
 0x220   : > { %v6265_v45 = vpop.f32.mrf.mxu1  ;;  %4982 = vmatprep.mubr.bf16.mxu0 %v6618_v46 }
 0x221   : > { %v5883_v56 = vpack.c.bf16 %v2820_v40, %v2820_v40  ;;  %v6486_v59 = vpop.f32.mrf.mxu0  ;;  %4983 = vmatmul.mubr.bf16.vlgmr.msra.gmra.mxu0 %v6616_v4  ;;  %v3165_v40 = vpop.permute.xlu0 %3164 }
 0x222   : > { %v791_v26 = vpop.f32.mrf.mxu1  ;;  %6479 = vmatmul.mubr.msk.bf16.vlgmr.msra.gmra.mxu1 %vm663_vm4, %v7051_v30  ;;  %v3167_v4 = vpop.permute.xlu1 %3166 }
 0x223   : > { %v1508_v60 = vadd.f32 %v7215_v12, %v791_v26  ;;  %6489 = vmatpush3.bf16.msra.mxu1 %v632_v55  ;;  %6490 = vmatprep.mubr.msk.bf16.mxu1 %vm6762_vm3, %v6761_v50  ;;  %2997 = vst.msk [vmem:[#allocation2 + $0x24] sm:$0xf] %vm2867_vm5, %v5883_v56  ;;  %v7436_v63 = vpop.f32.mrf.mxu0 }
 0x224   : > { %v6270_v35 = vpop.f32.mrf.mxu1  ;;  %6500 = vmatprep.subr.bf16.mxu1 %v6761_v50 }
 0x225   : > { %v2718_v39 = vadd.f32 %v7337_v62, %v1508_v60  ;;  %v6487_v0 = vpop.f32.mrf.mxu0  ;;  %v636_v62 = vpack.c.bf16 %v6999_v54, %v6991_v49  ;;  %v3032_v54 = vld [vmem:[#allocation2 + $0x10] sm:$0xf] }
 0x226   : > { %v794_v3 = vpop.f32.mrf.mxu1  ;;  %v3351_v21 = vld [vmem:[#allocation2 + $0x20] sm:$0xf]  ;;  %3064 = vst.msk [vmem:[#allocation3 + $0x50] sm:$0xf] %vm2867_vm5, %v3032_v54 }
 0x227   : > { %v3289_v12 = vld [vmem:[#allocation2 + $0x20] sm:$0xf]  ;;  %v1511_v25 = vadd.f32 %v7221_v24, %v794_v3  ;;  %v2757_v1 = vmul.f32 %v7360_v14, %v2718_v39  ;;  %3417 = vrot.lane.b32.xlu0 %v3351_v21, %s6763_s15  ;;  %v7444_v15 = vpop.f32.mrf.mxu0  ;;  %3257 = vst.msk [vmem:[#allocation3 + $0x50] sm:$0xf] %vm3252_vm6, %v3165_v40  ;;  %v640_v3 = vpack.c.bf16 %v7193_v47, %v7013_v10 }
 0x228   : > { %3321 = vst.msk [vmem:[#allocation3 + $0x54] sm:$0xf] %vm2867_vm5, %v3289_v12  ;;  %v3036_v29 = vld [vmem:[#allocation2 + $0x20] sm:$0xf]  ;;  %v6271_v61 = vpop.f32.mrf.mxu1 }
 0x229   : > { %v3541_v31 = vld [vmem:[#allocation2 + $0x20] sm:$0xf]  ;;  %3068 = vst.msk [vmem:[#allocation3 + $0xa0] sm:$0xf] %vm2867_vm5, %v3036_v29  ;;  %v2791_v24 = vadd.f32 %v7368_v13, %v2757_v1  ;;  %v2719_v6 = vadd.f32 %v7354_v28, %v1511_v25  ;;  %v6498_v16 = vpop.f32.mrf.mxu0  ;;  %v3033_v28 = vld [vmem:[#allocation2 + $0x14] sm:$0xf] }
 0x22a   : > { %3573 = vst.msk [vmem:[#allocation3 + $0x8] sm:$0xf] %vm2867_vm5, %v3541_v31  ;;  %v7453_v11 = vpop.f32.mrf.mxu1  ;;  %6491 = vmatmul.mubr.msk.bf16.vlgmr.msra.gmra.mxu1 %vm663_vm4, %v7051_v30  ;;  %v3352_v2 = vld [vmem:[#allocation2 + $0x24] sm:$0xf]  ;;  %v3098_v45 = vld [vmem:[#allocation2 + $0x20] sm:$0xf] }
 0x22b   : > { %v3290_v23 = vld [vmem:[#allocation2 + $0x24] sm:$0xf]  ;;  %6501 = vmatpush3.bf16.msra.mxu1 %v636_v62  ;;  %6502 = vmatprep.mubr.msk.bf16.mxu1 %vm6762_vm3, %v6761_v50  ;;  %v2823_v37 = vmax.f32 %v2791_v24, 0.0  ;;  %v2758_v52 = vmul.f32 %v7360_v14, %v2719_v6  ;;  %v7460_v49 = vpop.f32.mrf.mxu0  ;;  %3065 = vst.msk [vmem:[#allocation3 + $0x64] sm:$0xf] %vm2867_vm5, %v3033_v28 }
 0x22c   : > { %3322 = vst.msk [vmem:[#allocation3 + $0x68] sm:$0xf] %vm2867_vm5, %v3290_v23  ;;  %v6276_v44 = vpop.f32.mrf.mxu1  ;;  %6512 = vmatprep.subr.bf16.mxu1 %v6761_v50  ;;  %3419 = vrot.lane.b32.xlu1 %v3352_v2, %s6763_s15  ;;  %v3037_v46 = vld [vmem:[#allocation2 + $0x24] sm:$0xf] }
 0x22d   : > { %v3542_v55 = vld [vmem:[#allocation2 + $0x24] sm:$0xf]  ;;  %v5886_v56 = vpack.c.bf16 %v2823_v37, %v2823_v37  ;;  %v2792_v59 = vadd.f32 %v7401_v7, %v2758_v52  ;;  %3168 = vrot.lane.b32.xlu0 %v3098_v45, %s6763_s15  ;;  %v6499_v26 = vpop.f32.mrf.mxu0  ;;  %3258 = vst.msk [vmem:[#allocation3 + $0x64] sm:$0xf] %vm3252_vm6, %v3167_v4 }
 0x22e   : > { %3069 = vst.msk [vmem:[#allocation3 + $0xb4] sm:$0xf] %vm2867_vm5, %v3037_v46  ;;  %3574 = vst.msk [vmem:[#allocation3 + $0x1c] sm:$0xf] %vm2867_vm5, %v3542_v55  ;;  %v7473_v57 = vpop.f32.mrf.mxu1  ;;  %v3099_v35 = vld [vmem:[#allocation2 + $0x24] sm:$0xf] }
 0x22f   : > { %3000 = vst.msk [vmem:[#allocation2 + $0x30] sm:$0xf] %vm2867_vm5, %v5886_v56  ;;  %v2824_v60 = vmax.f32 %v2792_v59, 0.0  ;;  %v7476_v39 = vpop.f32.mrf.mxu0 }
 0x230   : > { %v6277_v0 = vpop.f32.mrf.mxu1  ;;  %3170 = vrot.lane.b32.xlu1 %v3099_v35, %s6763_s15 }
 0x231   : > { %v5887_v21 = vpack.c.bf16 %v2824_v60, %v2824_v60  ;;  %v6510_v12 = vpop.f32.mrf.mxu0 }
 0x232   : > { %v881_v25 = vpop.f32.mrf.mxu1  ;;  %6503 = vmatmul.mubr.msk.bf16.vlgmr.msra.gmra.mxu1 %vm663_vm4, %v7051_v30 }
 0x233   : > { %v1590_v1 = vadd.f32 %v7229_v58, %v881_v25  ;;  %6513 = vmatpush3.bf16.msra.mxu1 %v640_v3  ;;  %3001 = vst.msk [vmem:[#allocation2 + $0x34] sm:$0xf] %vm2867_vm5, %v5887_v21  ;;  %6514 = vmatprep.mubr.msk.bf16.mxu1 %vm6762_vm3, %v6761_v50  ;;  %v7487_v29 = vpop.f32.mrf.mxu0 }
 0x234   : > { %v6282_v31 = vpop.f32.mrf.mxu1  ;;  %6524 = vmatprep.subr.bf16.mxu1 %v6761_v50 }
 0x235   : > { %v2722_v10 = vadd.f32 %v7375_v51, %v1590_v1  ;;  %v6511_v47 = vpop.f32.mrf.mxu0  ;;  %v648_v31 = vpack.c.bf16 %v7339_v8, %v7025_v20 }
 0x236   : > { %v884_v61 = vpop.f32.mrf.mxu1  ;;  %v3355_v62 = vld [vmem:[#allocation2 + $0x30] sm:$0xf] }
 0x237   : > { %v1593_v24 = vadd.f32 %v7235_v9, %v884_v61  ;;  %v2761_v58 = vmul.f32 %v7360_v14, %v2722_v10  ;;  %3425 = vrot.lane.b32.xlu0 %v3355_v62, %s6763_s15  ;;  %v7494_v6 = vpop.f32.mrf.mxu0  ;;  %v3293_v16 = vld [vmem:[#allocation2 + $0x30] sm:$0xf]  ;;  %v644_v9 = vpack.c.bf16 %v6989_v48, %v6981_v41 }
 0x238   : > { %v3040_v2 = vld [vmem:[#allocation2 + $0x30] sm:$0xf]  ;;  %v6283_v37 = vpop.f32.mrf.mxu1  ;;  %3325 = vst.msk [vmem:[#allocation3 + $0xa4] sm:$0xf] %vm2867_vm5, %v3293_v16 }
 0x239   : > { %v3797_v23 = vld [vmem:[#allocation2 + $0x30] sm:$0xf]  ;;  %3072 = vst.msk [vmem:[#allocation3 + $0xf0] sm:$0xf] %vm2867_vm5, %v3040_v2  ;;  %v2795_v52 = vadd.f32 %v7368_v13, %v2761_v58  ;;  %v2723_v54 = vadd.f32 %v7406_v18, %v1593_v24  ;;  %v6522_v40 = vpop.f32.mrf.mxu0 }
 0x23a   : > { %3829 = vst.msk [vmem:[#allocation3 + $0xc] sm:$0xf] %vm2867_vm5, %v3797_v23  ;;  %v3545_v51 = vld [vmem:[#allocation2 + $0x30] sm:$0xf]  ;;  %v7504_v28 = vpop.f32.mrf.mxu1  ;;  %6515 = vmatmul.mubr.msk.bf16.vlgmr.msra.gmra.mxu1 %vm663_vm4, %v7051_v30  ;;  %v3356_v44 = vld [vmem:[#allocation2 + $0x34] sm:$0xf] }
 0x23b   : > { %3577 = vst.msk [vmem:[#allocation3 + $0x58] sm:$0xf] %vm2867_vm5, %v3545_v51  ;;  %6525 = vmatpush3.bf16.msra.mxu1 %v644_v9  ;;  %v2827_v45 = vmax.f32 %v2795_v52, 0.0  ;;  %6526 = vmatprep.mubr.msk.bf16.mxu1 %vm6762_vm3, %v6761_v50  ;;  %v2762_v41 = vmul.f32 %v7360_v14, %v2723_v54  ;;  %v7511_v48 = vpop.f32.mrf.mxu0  ;;  %v3294_v4 = vld [vmem:[#allocation2 + $0x34] sm:$0xf] }
 0x23c   : > { %v3041_v18 = vld [vmem:[#allocation2 + $0x34] sm:$0xf]  ;;  %v6288_v46 = vpop.f32.mrf.mxu1  ;;  %6536 = vmatprep.subr.bf16.mxu1 %v6761_v50  ;;  %3427 = vrot.lane.b32.xlu1 %v3356_v44, %s6763_s15  ;;  %v3102_v55 = vld [vmem:[#allocation2 + $0x30] sm:$0xf]  ;;  %3326 = vst.msk [vmem:[#allocation3 + $0xb8] sm:$0xf] %vm2867_vm5, %v3294_v4 }
 0x23d   : > { %3073 = vst.msk [vmem:[#allocation3 + $0x104] sm:$0xf] %vm2867_vm5, %v3041_v18  ;;  %v3798_v56 = vld [vmem:[#allocation2 + $0x34] sm:$0xf]  ;;  %v5890_v26 = vpack.c.bf16 %v2827_v45, %v2827_v45  ;;  %v2796_v60 = vadd.f32 %v7401_v7, %v2762_v41  ;;  %3176 = vrot.lane.b32.xlu0 %v3102_v55, %s6763_s15  ;;  %v6523_v35 = vpop.f32.mrf.mxu0  ;;  %v3607_v1 = vld [vmem:[#allocation2 + $0x30] sm:$0xf] }
 0x23e   : > { %v3546_v59 = vld [vmem:[#allocation2 + $0x34] sm:$0xf]  ;;  %3830 = vst.msk [vmem:[#allocation3 + $0x20] sm:$0xf] %vm2867_vm5, %v3798_v56  ;;  %v7521_v0 = vpop.f32.mrf.mxu1 }
 0x23f   : > { %3578 = vst.msk [vmem:[#allocation3 + $0x6c] sm:$0xf] %vm2867_vm5, %v3546_v59  ;;  %3004 = vst.msk [vmem:[#allocation2 + $0x40] sm:$0xf] %vm2867_vm5, %v5890_v26  ;;  %v2828_v3 = vmax.f32 %v2796_v60, 0.0  ;;  %v7524_v12 = vpop.f32.mrf.mxu0 }
 0x240   : > { %v3103_v21 = vld [vmem:[#allocation2 + $0x34] sm:$0xf]  ;;  %v6289_v25 = vpop.f32.mrf.mxu1 }
 0x241   : > { %3178 = vrot.lane.b32.xlu1 %v3103_v21, %s6763_s15  ;;  %v5891_v10 = vpack.c.bf16 %v2828_v3, %v2828_v3  ;;  %3673 = vrot.lane.b32.xlu0 %v3607_v1, %s6763_s15  ;;  %v6534_v47 = vpop.f32.mrf.mxu0  ;;  %v3608_v24 = vld [vmem:[#allocation2 + $0x34] sm:$0xf] }
 0x242   : > { %v971_v61 = vpop.f32.mrf.mxu1  ;;  %6527 = vmatmul.mubr.msk.bf16.vlgmr.msra.gmra.mxu1 %vm663_vm4, %v7051_v30 }
 0x243   : > { %v1672_v62 = vadd.f32 %v7244_v19, %v971_v61  ;;  %6537 = vmatpush3.bf16.msra.mxu1 %v648_v31  ;;  %3005 = vst.msk [vmem:[#allocation2 + $0x44] sm:$0xf] %vm2867_vm5, %v5891_v10  ;;  %6538 = vmatprep.mubr.msk.bf16.mxu1 %vm6762_vm3, %v6761_v50  ;;  %v7536_v58 = vpop.f32.mrf.mxu0 }
 0x244   : > { %v6294_v20 = vpop.f32.mrf.mxu1 }
 0x245   : > { %3675 = vrot.lane.b32.xlu1 %v3608_v24, %s6763_s15  ;;  %v2726_v8 = vadd.f32 %v7422_v42, %v1672_v62  ;;  %v6535_v16 = vpop.f32.mrf.mxu0 }
 0x246   : > { %v4053_v2 = vld [vmem:[#allocation2 + $0x40] sm:$0xf]  ;;  %v974_v23 = vpop.f32.mrf.mxu1 }
 0x247   : > { %v3359_v37 = vld [vmem:[#allocation2 + $0x40] sm:$0xf]  ;;  %4085 = vst.msk [vmem:[#allocation3 + $0x10] sm:$0xf] %vm2867_vm5, %v4053_v2  ;;  %v1675_v19 = vadd.f32 %v7251_v32, %v974_v23  ;;  %v2765_v51 = vmul.f32 %v7360_v14, %v2726_v8 }
 0x248   : > { %3433 = vrot.lane.b32.xlu0 %v3359_v37, %s6763_s15  ;;  %v3297_v50 = vld [vmem:[#allocation2 + $0x40] sm:$0xf]  ;;  %v6295_v9 = vpop.f32.mrf.mxu1 }
 0x249   : > { %3329 = vst.msk [vmem:[#allocation3 + $0xf4] sm:$0xf] %vm2867_vm5, %v3297_v50  ;;  %v3044_v52 = vld [vmem:[#allocation2 + $0x40] sm:$0xf]  ;;  %v2799_v42 = vadd.f32 %v7368_v13, %v2765_v51  ;;  %v2727_v44 = vadd.f32 %v7436_v63, %v1675_v19 }
 0x24a   : > { %v3801_v54 = vld [vmem:[#allocation2 + $0x40] sm:$0xf]  ;;  %3076 = vst.msk [vmem:[#allocation3 + $0x140] sm:$0xf] %vm2867_vm5, %v3044_v52  ;;  %v4054_v32 = vld [vmem:[#allocation2 + $0x44] sm:$0xf]  ;;  %v7550_v45 = vpop.f32.mrf.mxu1  ;;  %6539 = vmatmul.mubr.msk.bf16.vlgmr.msra.gmra.mxu1 %vm663_vm4, %v7051_v30 }
 0x24b   : > { %v3549_v40 = vld [vmem:[#allocation2 + $0x40] sm:$0xf]  ;;  %3833 = vst.msk [vmem:[#allocation3 + $0x5c] sm:$0xf] %vm2867_vm5, %v3801_v54  ;;  %v3360_v41 = vld [vmem:[#allocation2 + $0x44] sm:$0xf]  ;;  %v2766_v46 = vmul.f32 %v7360_v14, %v2727_v44 }
 0x24c   : > { %3581 = vst.msk [vmem:[#allocation3 + $0xa8] sm:$0xf] %vm2867_vm5, %v3549_v40  ;;  %v3106_v4 = vld [vmem:[#allocation2 + $0x40] sm:$0xf]  ;;  %4086 = vst.msk [vmem:[#allocation3 + $0x24] sm:$0xf] %vm2867_vm5, %v4054_v32  ;;  %3435 = vrot.lane.b32.xlu1 %v3360_v41, %s6763_s15  ;;  %v6300_v63 = vpop.f32.mrf.mxu1 }
 0x24d   : > { %v2831_v18 = vmax.f32 %v2799_v42, 0.0  ;;  %3184 = vrot.lane.b32.xlu0 %v3106_v4, %s6763_s15  ;;  %v3298_v55 = vld [vmem:[#allocation2 + $0x44] sm:$0xf]  ;;  %v2800_v60 = vadd.f32 %v7401_v7, %v2766_v46  ;;  %v3863_v21 = vld [vmem:[#allocation2 + $0x40] sm:$0xf] }
 0x24e   : > { %v3045_v56 = vld [vmem:[#allocation2 + $0x44] sm:$0xf]  ;;  %3330 = vst.msk [vmem:[#allocation3 + $0x108] sm:$0xf] %vm2867_vm5, %v3298_v55  ;;  %v7562_v35 = vpop.f32.mrf.mxu1  ;;  %v3611_v61 = vld [vmem:[#allocation2 + $0x40] sm:$0xf] }
 0x24f   : > { %v3802_v59 = vld [vmem:[#allocation2 + $0x44] sm:$0xf]  ;;  %v5894_v26 = vpack.c.bf16 %v2831_v18, %v2831_v18  ;;  %3077 = vst.msk [vmem:[#allocation3 + $0x154] sm:$0xf] %vm2867_vm5, %v3045_v56  ;;  %v2832_v25 = vmax.f32 %v2800_v60, 0.0 }
 0x250   : > { %3834 = vst.msk [vmem:[#allocation3 + $0x70] sm:$0xf] %vm2867_vm5, %v3802_v59  ;;  %v3550_v30 = vld [vmem:[#allocation2 + $0x44] sm:$0xf]  ;;  %v6301_v1 = vpop.f32.mrf.mxu1 }
 0x251   : > { %v3107_v3 = vld [vmem:[#allocation2 + $0x44] sm:$0xf]  ;;  %3582 = vst.msk [vmem:[#allocation3 + $0xbc] sm:$0xf] %vm2867_vm5, %v3550_v30  ;;  %3008 = vst.msk [vmem:[#allocation2 + $0x50] sm:$0xf] %vm2867_vm5, %v5894_v26  ;;  %3929 = vrot.lane.b32.xlu0 %v3863_v21, %s6763_s15  ;;  %v5895_v31 = vpack.c.bf16 %v2832_v25, %v2832_v25 }
 0x252   : > { %3186 = vrot.lane.b32.xlu1 %v3107_v3, %s6763_s15  ;;  %v1061_v10 = vpop.f32.mrf.mxu1  ;;  %v3864_v47 = vld [vmem:[#allocation2 + $0x44] sm:$0xf] }
 0x253   : > { %v1754_v62 = vadd.f32 %v7260_v33, %v1061_v10  ;;  %3009 = vst.msk [vmem:[#allocation2 + $0x54] sm:$0xf] %vm2867_vm5, %v5895_v31  ;;  %v3612_v2 = vld [vmem:[#allocation2 + $0x44] sm:$0xf] }
 0x254   : > { %v6306_v24 = vpop.f32.mrf.mxu1 }
 0x255   : > { %3681 = vrot.lane.b32.xlu0 %v3611_v61, %s6763_s15  ;;  %v2730_v20 = vadd.f32 %v7444_v15, %v1754_v62 }
 0x256   : > { %3931 = vrot.lane.b32.xlu1 %v3864_v47, %s6763_s15  ;;  %v1064_v16 = vpop.f32.mrf.mxu1 }
 0x257   : > { %v1757_v37 = vadd.f32 %v7267_v36, %v1064_v16  ;;  %v2769_v33 = vmul.f32 %v7360_v14, %v2730_v20 }
 0x258   : > { %v4057_v8 = vld [vmem:[#allocation2 + $0x50] sm:$0xf]  ;;  %v6307_v51 = vpop.f32.mrf.mxu1 }
 0x259   : > { %v3363_v23 = vld [vmem:[#allocation2 + $0x50] sm:$0xf]  ;;  %4089 = vst.msk [vmem:[#allocation3 + $0x60] sm:$0xf] %vm2867_vm5, %v4057_v8  ;;  %v2803_v52 = vadd.f32 %v7368_v13, %v2769_v33  ;;  %v2731_v54 = vadd.f32 %v7460_v49, %v1757_v37 }
 0x25a   : > { %3683 = vrot.lane.b32.xlu1 %v3612_v2, %s6763_s15  ;;  %3441 = vrot.lane.b32.xlu0 %v3363_v23, %s6763_s15  ;;  %v3301_v19 = vld [vmem:[#allocation2 + $0x50] sm:$0xf]  ;;  %v4058_v36 = vld [vmem:[#allocation2 + $0x54] sm:$0xf]  ;;  %v7584_v40 = vpop.f32.mrf.mxu1 }
 0x25b   : > { %3333 = vst.msk [vmem:[#allocation3 + $0x144] sm:$0xf] %vm2867_vm5, %v3301_v19  ;;  %v3048_v50 = vld [vmem:[#allocation2 + $0x50] sm:$0xf]  ;;  %v3364_v42 = vld [vmem:[#allocation2 + $0x54] sm:$0xf]  ;;  %v2770_v41 = vmul.f32 %v7360_v14, %v2731_v54 }
 0x25c   : > { %v3805_v15 = vld [vmem:[#allocation2 + $0x50] sm:$0xf]  ;;  %3080 = vst.msk [vmem:[#allocation3 + $0x190] sm:$0xf] %vm2867_vm5, %v3048_v50  ;;  %4090 = vst.msk [vmem:[#allocation3 + $0x74] sm:$0xf] %vm2867_vm5, %v4058_v36  ;;  %v6312_v49 = vpop.f32.mrf.mxu1 }
 0x25d   : > { %v3553_v9 = vld [vmem:[#allocation2 + $0x50] sm:$0xf]  ;;  %3837 = vst.msk [vmem:[#allocation3 + $0xac] sm:$0xf] %vm2867_vm5, %v3805_v15  ;;  %v2835_v32 = vmax.f32 %v2803_v52, 0.0  ;;  %v2804_v55 = vadd.f32 %v7401_v7, %v2770_v41 }
 0x25e   : > { %3585 = vst.msk [vmem:[#allocation3 + $0xf8] sm:$0xf] %vm2867_vm5, %v3553_v9  ;;  %v3110_v44 = vld [vmem:[#allocation2 + $0x50] sm:$0xf]  ;;  %3443 = vrot.lane.b32.xlu1 %v3364_v42, %s6763_s15  ;;  %v3302_v4 = vld [vmem:[#allocation2 + $0x54] sm:$0xf]  ;;  %v7594_v59 = vpop.f32.mrf.mxu1 }
 0x25f   : > { %3192 = vrot.lane.b32.xlu0 %v3110_v44, %s6763_s15  ;;  %v3049_v18 = vld [vmem:[#allocation2 + $0x54] sm:$0xf]  ;;  %v5898_v63 = vpack.c.bf16 %v2835_v32, %v2835_v32  ;;  %3334 = vst.msk [vmem:[#allocation3 + $0x158] sm:$0xf] %vm2867_vm5, %v3302_v4  ;;  %v3867_v60 = vld [vmem:[#allocation2 + $0x50] sm:$0xf] }
 0x260   : > { %v3806_v46 = vld [vmem:[#allocation2 + $0x54] sm:$0xf]  ;;  %3081 = vst.msk [vmem:[#allocation3 + $0x1a4] sm:$0xf] %vm2867_vm5, %v3049_v18  ;;  %v2836_v30 = vmax.f32 %v2804_v55, 0.0  ;;  %v6313_v3 = vpop.f32.mrf.mxu1 }
 0x261   : > { %3838 = vst.msk [vmem:[#allocation3 + $0xc0] sm:$0xf] %vm2867_vm5, %v3806_v46  ;;  %v3554_v56 = vld [vmem:[#allocation2 + $0x54] sm:$0xf]  ;;  %3012 = vst.msk [vmem:[#allocation2 + $0x60] sm:$0xf] %vm2867_vm5, %v5898_v63 }
 0x262   : > { %v3111_v26 = vld [vmem:[#allocation2 + $0x54] sm:$0xf]  ;;  %3586 = vst.msk [vmem:[#allocation3 + $0x10c] sm:$0xf] %vm2867_vm5, %v3554_v56  ;;  %v5899_v21 = vpack.c.bf16 %v2836_v30, %v2836_v30  ;;  %v1151_v25 = vpop.f32.mrf.mxu1  ;;  %v3615_v31 = vld [vmem:[#allocation2 + $0x50] sm:$0xf] }
 0x263   : > { %3194 = vrot.lane.b32.xlu1 %v3111_v26, %s6763_s15  ;;  %3937 = vrot.lane.b32.xlu0 %v3867_v60, %s6763_s15  ;;  %v3868_v1 = vld [vmem:[#allocation2 + $0x54] sm:$0xf]  ;;  %v1836_v10 = vadd.f32 %v7276_v38, %v1151_v25 }
 0x264   : > { %3013 = vst.msk [vmem:[#allocation2 + $0x64] sm:$0xf] %vm2867_vm5, %v5899_v21  ;;  %v6318_v47 = vpop.f32.mrf.mxu1  ;;  %v3616_v20 = vld [vmem:[#allocation2 + $0x54] sm:$0xf] }
 0x265   : > { %v2734_v61 = vadd.f32 %v7476_v39, %v1836_v10 }
 0x266   : > { %v1154_v24 = vpop.f32.mrf.mxu1 }
 0x267   : > { %3939 = vrot.lane.b32.xlu1 %v3868_v1, %s6763_s15  ;;  %3689 = vrot.lane.b32.xlu0 %v3615_v31, %s6763_s15  ;;  %v1839_v16 = vadd.f32 %v7283_v27, %v1154_v24  ;;  %v2773_v38 = vmul.f32 %v7360_v14, %v2734_v61 }
 0x268   : > { %v4061_v62 = vld [vmem:[#allocation2 + $0x60] sm:$0xf]  ;;  %v6319_v23 = vpop.f32.mrf.mxu1 }
 0x269   : > { %v3367_v8 = vld [vmem:[#allocation2 + $0x60] sm:$0xf]  ;;  %4093 = vst.msk [vmem:[#allocation3 + $0xb0] sm:$0xf] %vm2867_vm5, %v4061_v62  ;;  %v2807_v19 = vadd.f32 %v7368_v13, %v2773_v38  ;;  %v2735_v51 = vadd.f32 %v7487_v29, %v1839_v16 }
 0x26a   : > { %v3305_v2 = vld [vmem:[#allocation2 + $0x60] sm:$0xf]  ;;  %v7616_v50 = vpop.f32.mrf.mxu1 }
 0x26b   : > { %3691 = vrot.lane.b32.xlu1 %v3616_v20, %s6763_s15  ;;  %3449 = vrot.lane.b32.xlu0 %v3367_v8, %s6763_s15  ;;  %3337 = vst.msk [vmem:[#allocation3 + $0x194] sm:$0xf] %vm2867_vm5, %v3305_v2  ;;  %v3052_v37 = vld [vmem:[#allocation2 + $0x60] sm:$0xf]  ;;  %v4062_v27 = vld [vmem:[#allocation2 + $0x64] sm:$0xf]  ;;  %v2774_v54 = vmul.f32 %v7360_v14, %v2735_v51 }
 0x26c   : > { %v3809_v39 = vld [vmem:[#allocation2 + $0x60] sm:$0xf]  ;;  %3084 = vst.msk [vmem:[#allocation3 + $0x1e0] sm:$0xf] %vm2867_vm5, %v3052_v37  ;;  %v3368_v15 = vld [vmem:[#allocation2 + $0x64] sm:$0xf]  ;;  %v6324_v29 = vpop.f32.mrf.mxu1 }
 0x26d   : > { %v3557_v33 = vld [vmem:[#allocation2 + $0x60] sm:$0xf]  ;;  %3841 = vst.msk [vmem:[#allocation3 + $0xfc] sm:$0xf] %vm2867_vm5, %v3809_v39  ;;  %4094 = vst.msk [vmem:[#allocation3 + $0xc4] sm:$0xf] %vm2867_vm5, %v4062_v27  ;;  %v2808_v41 = vadd.f32 %v7401_v7, %v2774_v54 }
 0x26e   : > { %3589 = vst.msk [vmem:[#allocation3 + $0x148] sm:$0xf] %vm2867_vm5, %v3557_v33  ;;  %v3114_v9 = vld [vmem:[#allocation2 + $0x60] sm:$0xf]  ;;  %v2839_v52 = vmax.f32 %v2807_v19, 0.0  ;;  %v7626_v4 = vpop.f32.mrf.mxu1 }
 0x26f   : > { %3451 = vrot.lane.b32.xlu1 %v3368_v15, %s6763_s15  ;;  %3200 = vrot.lane.b32.xlu0 %v3114_v9, %s6763_s15  ;;  %v3306_v36 = vld [vmem:[#allocation2 + $0x64] sm:$0xf]  ;;  %v3871_v46 = vld [vmem:[#allocation2 + $0x60] sm:$0xf]  ;;  %v2840_v63 = vmax.f32 %v2808_v41, 0.0 }
 0x270   : > { %v3053_v42 = vld [vmem:[#allocation2 + $0x64] sm:$0xf]  ;;  %v5902_v32 = vpack.c.bf16 %v2839_v52, %v2839_v52  ;;  %3338 = vst.msk [vmem:[#allocation3 + $0x1a8] sm:$0xf] %vm2867_vm5, %v3306_v36  ;;  %v6325_v55 = vpop.f32.mrf.mxu1 }
 0x271   : > { %v3810_v44 = vld [vmem:[#allocation2 + $0x64] sm:$0xf]  ;;  %3085 = vst.msk [vmem:[#allocation3 + $0x1f4] sm:$0xf] %vm2867_vm5, %v3053_v42  ;;  %v5903_v56 = vpack.c.bf16 %v2840_v63, %v2840_v63 }
 0x272   : > { %3842 = vst.msk [vmem:[#allocation3 + $0x110] sm:$0xf] %vm2867_vm5, %v3810_v44  ;;  %v3558_v49 = vld [vmem:[#allocation2 + $0x64] sm:$0xf]  ;;  %3016 = vst.msk [vmem:[#allocation2 + $0x70] sm:$0xf] %vm2867_vm5, %v5902_v32  ;;  %v1241_v26 = vpop.f32.mrf.mxu1 }
 0x273   : > { %v3115_v18 = vld [vmem:[#allocation2 + $0x64] sm:$0xf]  ;;  %3590 = vst.msk [vmem:[#allocation3 + $0x15c] sm:$0xf] %vm2867_vm5, %v3558_v49  ;;  %3945 = vrot.lane.b32.xlu0 %v3871_v46, %s6763_s15  ;;  %v1918_v30 = vadd.f32 %v7286_v34, %v1241_v26  ;;  %3017 = vst.msk [vmem:[#allocation2 + $0x74] sm:$0xf] %vm2867_vm5, %v5903_v56 }
 0x274   : > { %3202 = vrot.lane.b32.xlu1 %v3115_v18, %s6763_s15  ;;  %v3872_v60 = vld [vmem:[#allocation2 + $0x64] sm:$0xf]  ;;  %v6330_v3 = vpop.f32.mrf.mxu1 }
 0x275   : > { %v2738_v21 = vadd.f32 %v7494_v6, %v1918_v30 }
 0x276   : > { %v1244_v25 = vpop.f32.mrf.mxu1 }
 0x277   : > { %v1921_v10 = vadd.f32 %v7293_v17, %v1244_v25  ;;  %v2777_v47 = vmul.f32 %v7360_v14, %v2738_v21 }
 0x278   : > { %3947 = vrot.lane.b32.xlu1 %v3872_v60, %s6763_s15  ;;  %v6331_v34 = vpop.f32.mrf.mxu1 }
 0x279   : > { %v4065_v1 = vld [vmem:[#allocation2 + $0x70] sm:$0xf]  ;;  %v2811_v6 = vadd.f32 %v7368_v13, %v2777_v47  ;;  %v2739_v8 = vadd.f32 %v7511_v48, %v1921_v10 }
 0x27a   : > { %v3371_v31 = vld [vmem:[#allocation2 + $0x70] sm:$0xf]  ;;  %4097 = vst.msk [vmem:[#allocation3 + $0x100] sm:$0xf] %vm2867_vm5, %v4065_v1  ;;  %v7646_v17 = vpop.f32.mrf.mxu1  ;;  %v4066_v16 = vld [vmem:[#allocation2 + $0x74] sm:$0xf] }
 0x27b   : > { %3457 = vrot.lane.b32.xlu0 %v3371_v31, %s6763_s15  ;;  %v3309_v61 = vld [vmem:[#allocation2 + $0x70] sm:$0xf]  ;;  %v3372_v38 = vld [vmem:[#allocation2 + $0x74] sm:$0xf]  ;;  %4098 = vst.msk [vmem:[#allocation3 + $0x114] sm:$0xf] %vm2867_vm5, %v4066_v16  ;;  %v2778_v37 = vmul.f32 %v7360_v14, %v2739_v8 }
 0x27c   : > { %3341 = vst.msk [vmem:[#allocation3 + $0x1e4] sm:$0xf] %vm2867_vm5, %v3309_v61  ;;  %v3056_v62 = vld [vmem:[#allocation2 + $0x70] sm:$0xf]  ;;  %v2843_v23 = vmax.f32 %v2811_v6, 0.0  ;;  %3459 = vrot.lane.b32.xlu1 %v3372_v38, %s6763_s15  ;;  %v6336_v48 = vpop.f32.mrf.mxu1 }
 0x27d   : > { %v3813_v24 = vld [vmem:[#allocation2 + $0x70] sm:$0xf]  ;;  %3088 = vst.msk [vmem:[#allocation3 + $0x230] sm:$0xf] %vm2867_vm5, %v3056_v62  ;;  %v3310_v39 = vld [vmem:[#allocation2 + $0x74] sm:$0xf]  ;;  %v2812_v27 = vadd.f32 %v7401_v7, %v2778_v37 }
 0x27e   : > { %v3561_v20 = vld [vmem:[#allocation2 + $0x70] sm:$0xf]  ;;  %3845 = vst.msk [vmem:[#allocation3 + $0x14c] sm:$0xf] %vm2867_vm5, %v3813_v24  ;;  %v3057_v33 = vld [vmem:[#allocation2 + $0x74] sm:$0xf]  ;;  %v5906_v51 = vpack.c.bf16 %v2843_v23, %v2843_v23  ;;  %v7656_v9 = vpop.f32.mrf.mxu1 }
 0x27f   : > { %3593 = vst.msk [vmem:[#allocation3 + $0x198] sm:$0xf] %vm2867_vm5, %v3561_v20  ;;  %v3118_v2 = vld [vmem:[#allocation2 + $0x70] sm:$0xf]  ;;  %v3814_v19 = vld [vmem:[#allocation2 + $0x74] sm:$0xf] }
 0x280   : > { %3208 = vrot.lane.b32.xlu0 %v3118_v2, %s6763_s15  ;;  %3342 = vst.msk [vmem:[#allocation3 + $0x1f8] sm:$0xf] %vm2867_vm5, %v3310_v39  ;;  %3089 = vst.msk [vmem:[#allocation3 + $0x244] sm:$0xf] %vm2867_vm5, %v3057_v33  ;;  %v3562_v15 = vld [vmem:[#allocation2 + $0x74] sm:$0xf]  ;;  %v6337_v29 = vpop.f32.mrf.mxu1 }
 0x281   : > { %3846 = vst.msk [vmem:[#allocation3 + $0x160] sm:$0xf] %vm2867_vm5, %v3814_v19  ;;  %v3119_v52 = vld [vmem:[#allocation2 + $0x74] sm:$0xf]  ;;  %3594 = vst.msk [vmem:[#allocation3 + $0x1ac] sm:$0xf] %vm2867_vm5, %v3562_v15 }
 0x282   : > { %3020 = vst.msk [vmem:[#allocation2 + $0x80] sm:$0xf] %vm2867_vm5, %v5906_v51  ;;  %v2844_v54 = vmax.f32 %v2812_v27, 0.0  ;;  %3210 = vrot.lane.b32.xlu1 %v3119_v52, %s6763_s15  ;;  %v1331_v42 = vpop.f32.mrf.mxu1 }
 0x283   : > { %v2000_v44 = vadd.f32 %v7296_v43, %v1331_v42 }
 0x284   : > { %v5907_v36 = vpack.c.bf16 %v2844_v54, %v2844_v54  ;;  %v6342_v32 = vpop.f32.mrf.mxu1 }
 0x285   : > { %v2742_v41 = vadd.f32 %v7524_v12, %v2000_v44 }
 0x286   : > { %3021 = vst.msk [vmem:[#allocation2 + $0x84] sm:$0xf] %vm2867_vm5, %v5907_v36  ;;  %v1334_v49 = vpop.f32.mrf.mxu1  ;;  %v6619_v36 = vld [vmem:[#allocation3 + $0x28] ss:$20 sps:$4 sm:$0xff]  }
 0x287   : > { %v2003_v46 = vadd.f32 %v7309_v22, %v1334_v49  ;;  %v2781_v63 = vmul.f32 %v7360_v14, %v2742_v41 }
 0x288   : > { %v6343_v56 = vpop.f32.mrf.mxu1 }
 0x289   : > { %v4069_v18 = vld [vmem:[#allocation2 + $0x80] sm:$0xf]  ;;  %v2815_v43 = vadd.f32 %v7368_v13, %v2781_v63  ;;  %v2743_v30 = vadd.f32 %v7536_v58, %v2003_v46 }
 0x28a   : > { %4101 = vst.msk [vmem:[#allocation3 + $0x150] sm:$0xf] %vm2867_vm5, %v4069_v18  ;;  %v3313_v55 = vld [vmem:[#allocation2 + $0x80] sm:$0xf]  ;;  %v7672_v12 = vpop.f32.mrf.mxu1 }
 0x28b   : > { %3345 = vst.msk [vmem:[#allocation3 + $0x234] sm:$0xf] %vm2867_vm5, %v3313_v55  ;;  %v3817_v26 = vld [vmem:[#allocation2 + $0x80] sm:$0xf]  ;;  %v2847_v3 = vmax.f32 %v2815_v43, 0.0  ;;  %v2782_v21 = vmul.f32 %v7360_v14, %v2743_v30 }
 0x28c   : > { %v3565_v60 = vld [vmem:[#allocation2 + $0x80] sm:$0xf]  ;;  %3849 = vst.msk [vmem:[#allocation3 + $0x19c] sm:$0xf] %vm2867_vm5, %v3817_v26  ;;  %v6348_v25 = vpop.f32.mrf.mxu1 }
 0x28d   : > { %3597 = vst.msk [vmem:[#allocation3 + $0x1e8] sm:$0xf] %vm2867_vm5, %v3565_v60  ;;  %v4070_v22 = vld [vmem:[#allocation2 + $0x84] sm:$0xf]  ;;  %v5910_v47 = vpack.c.bf16 %v2847_v3, %v2847_v3  ;;  %v2816_v13 = vadd.f32 %v7401_v7, %v2782_v21 }
 0x28e   : > { %4102 = vst.msk [vmem:[#allocation3 + $0x164] sm:$0xf] %vm2867_vm5, %v4070_v22  ;;  %v3314_v1 = vld [vmem:[#allocation2 + $0x84] sm:$0xf]  ;;  %v7680_v58 = vpop.f32.mrf.mxu1 }
 0x28f   : > { %v3818_v31 = vld [vmem:[#allocation2 + $0x84] sm:$0xf]  ;;  %3346 = vst.msk [vmem:[#allocation3 + $0x248] sm:$0xf] %vm2867_vm5, %v3314_v1  ;;  %3024 = vst.msk [vmem:[#allocation2 + $0x90] sm:$0xf] %vm2867_vm5, %v5910_v47 }
 0x290   : > { %v3566_v10 = vld [vmem:[#allocation2 + $0x84] sm:$0xf]  ;;  %3850 = vst.msk [vmem:[#allocation3 + $0x1b0] sm:$0xf] %vm2867_vm5, %v3818_v31  ;;  %v2848_v61 = vmax.f32 %v2816_v13, 0.0  ;;  %v6349_v34 = vpop.f32.mrf.mxu1 }
 0x291   : > { %3598 = vst.msk [vmem:[#allocation3 + $0x1fc] sm:$0xf] %vm2867_vm5, %v3566_v10 }
 0x292   : > { %v5911_v14 = vpack.c.bf16 %v2848_v61, %v2848_v61  ;;  %v7683_v62 = vpop.f32.mrf.mxu1 }
 0x294   : > { %3025 = vst.msk [vmem:[#allocation2 + $0x94] sm:$0xf] %vm2867_vm5, %v5911_v14  ;;  %v6360_v24 = vpop.f32.mrf.mxu1 }
 0x296   : > { %v7686_v20 = vpop.f32.mrf.mxu1  ;;  %v4073_v7 = vld [vmem:[#allocation2 + $0x90] sm:$0xf] }
 0x297   : > { %4105 = vst.msk [vmem:[#allocation3 + $0x1a0] sm:$0xf] %vm2867_vm5, %v4073_v7  ;;  %v3821_v6 = vld [vmem:[#allocation2 + $0x90] sm:$0xf] }
 0x298   : > { %v3569_v8 = vld [vmem:[#allocation2 + $0x90] sm:$0xf]  ;;  %v6361_v16 = vpop.f32.mrf.mxu1  ;;  %3853 = vst.msk [vmem:[#allocation3 + $0x1ec] sm:$0xf] %vm2867_vm5, %v3821_v6 }
 0x299   : > { %3601 = vst.msk [vmem:[#allocation3 + $0x238] sm:$0xf] %vm2867_vm5, %v3569_v8  ;;  %v3418_v38 = vpop.permute.xlu0 %3417 }
 0x29a   : > { %v7691_v2 = vpop.f32.mrf.mxu1  ;;  %3511 = vst.msk [vmem:[#allocation3 + $0x2c] sm:$0xf] %vm3252_vm6, %v3418_v38 }
 0x29b   : > { %v4074_v23 = vld [vmem:[#allocation2 + $0x94] sm:$0xf] }
 0x29c   : > { %4106 = vst.msk [vmem:[#allocation3 + $0x1b4] sm:$0xf] %vm2867_vm5, %v4074_v23  ;;  %v3822_v37 = vld [vmem:[#allocation2 + $0x94] sm:$0xf]  ;;  %v6372_v39 = vpop.f32.mrf.mxu1 }
 0x29d   : > { %v3570_v48 = vld [vmem:[#allocation2 + $0x94] sm:$0xf]  ;;  %3854 = vst.msk [vmem:[#allocation3 + $0x200] sm:$0xf] %vm2867_vm5, %v3822_v37 }
 0x29e   : > { %3602 = vst.msk [vmem:[#allocation3 + $0x24c] sm:$0xf] %vm2867_vm5, %v3570_v48  ;;  %v7697_v33 = vpop.f32.mrf.mxu1  ;;  %v3420_v19 = vpop.permute.xlu1 %3419  ;;  %v1467_v48 = vadd.f32 %v7683_v62, %v7394_v5  ;;  %v7767_v5 = vld [vmem:[%s8659_s4] sm:$0xff] }
 0x29f   : > { %3512 = vst.msk [vmem:[#allocation3 + $0x40] sm:$0xf] %vm3252_vm6, %v3420_v19  ;;  %v3169_v51 = vpop.permute.xlu0 %3168 }
 0x2a0   : > { %v6373_v27 = vpop.f32.mrf.mxu1  ;;  %3259 = vst.msk [vmem:[#allocation3 + $0x78] sm:$0xf] %vm3252_vm6, %v3169_v51 }
 0x2a2   : > { %v7701_v15 = vpop.f32.mrf.mxu1  ;;  %v3171_v52 = vpop.permute.xlu1 %3170 }
 0x2a3   : > { %3260 = vst.msk [vmem:[#allocation3 + $0x8c] sm:$0xf] %vm3252_vm6, %v3171_v52  ;;  %v1470_v52 = vadd.f32 %v7686_v20, %v7419_v53  ;;  %v1549_v20 = vadd.f32 %v7691_v2, %v7453_v11 }
 0x2a4   : > { %v6384_v54 = vpop.f32.mrf.mxu1 }
 0x2a5   : > { %v7759_v54 = vld [vmem:[%s8658_s3] ss:$0 sm:$0xff] }
 0x2a6   : > { %v7704_v29 = vpop.f32.mrf.mxu1  ;;  %v6621_v42 = vld [vmem:[#allocation3 + $0x2c] ss:$20 sps:$4 sm:$0xff]  }
 0x2a7   : > { %4990 = vmatprep.mubr.bf16.mxu0 %v6621_v42 }
 0x2a8   : > { %v6385_v44 = vpop.f32.mrf.mxu1  ;;  %4991 = vmatmul.mubr.bf16.gmra.mxu0 %v6619_v36 }
 0x2a9   : > { %v7710_v18 = vpop.permute.xlu0 %3425 }
 0x2aa   : > { %v7706_v32 = vpop.f32.mrf.mxu1 }
 0x2ac   : > { %v6396_v41 = vpop.f32.mrf.mxu1 }
 0x2ae   : > { %v7708_v49 = vpop.f32.mrf.mxu1  ;;  %v7714_v55 = vpop.permute.xlu1 %3427 }
 0x2af   : > { %v7716_v26 = vpop.permute.xlu0 %3176 }
 0x2b0   : > { %v6397_v46 = vpop.f32.mrf.mxu1 }
 0x2b2   : > { %v7712_v63 = vpop.f32.mrf.mxu1 }
 0x2b3   : > { %v7720_v30 = vpop.permute.xlu1 %3178  ;;  %v7724_v3 = vpop.permute.xlu0 %3673 }
 0x2b4   : > { %v6408_v56 = vpop.f32.mrf.mxu1 }
 0x2b6   : > { %v7718_v60 = vpop.f32.mrf.mxu1 }
 0x2b7   : > { %v7728_v1 = vpop.permute.xlu1 %3675 }
 0x2b8   : > { %v6409_v43 = vpop.f32.mrf.mxu1 }
 0x2ba   : > { %v7722_v22 = vpop.f32.mrf.mxu1  ;;  %v7730_v31 = vpop.permute.xlu0 %3433 }
 0x2bc   : > { %v6420_v21 = vpop.f32.mrf.mxu1 }
 0x2be   : > { %v7726_v25 = vpop.f32.mrf.mxu1  ;;  %v7734_v13 = vpop.permute.xlu1 %3435 }
 0x2bf   : > { %v7736_v34 = vpop.permute.xlu0 %3184 }
 0x2c0   : > { %v6421_v10 = vpop.f32.mrf.mxu1 }
 0x2c2   : > { %v7732_v47 = vpop.f32.mrf.mxu1 }
 0x2c3   : > { %v7744_v8 = vpop.permute.xlu0 %3929 }
 0x2c4   : > { %v6432_v61 = vpop.f32.mrf.mxu1  ;;  %v7740_v7 = vpop.permute.xlu1 %3186 }
 0x2c5   : > { %v7778_v61 = vld [vmem:[%s8659_s4 + $0x8] sm:$0xff] }
 0x2c6   : > { %v7738_v14 = vpop.f32.mrf.mxu1 }
 0x2c7   : > { %v7752_v39 = vpop.permute.xlu0 %3681 }
 0x2c8   : > { %v6433_v24 = vpop.f32.mrf.mxu1  ;;  %v7748_v23 = vpop.permute.xlu1 %3931 }
 0x2ca   : > { %v7742_v6 = vpop.f32.mrf.mxu1 }
 0x2cc   : > { %v6444_v16 = vpop.f32.mrf.mxu1  ;;  %v7762_v42 = vpop.permute.xlu1 %3683 }
 0x2cd   : > { %v7770_v46 = vpop.permute.xlu0 %3441 }
 0x2ce   : > { %v7746_v38 = vpop.f32.mrf.mxu1 }
 0x2d0   : > { %v6445_v37 = vpop.f32.mrf.mxu1 }
 0x2d1   : > { %v7781_v37 = vpop.permute.xlu1 %3443 }
 0x2d2   : > { %v2133_v19 = vpop.f32.mrf.mxu1 }
 0x2d3   : > { %v2716_v51 = vadd.f32 %v2133_v19, %v1467_v48  ;;  %v1552_v19 = vadd.f32 %v7697_v33, %v7473_v57  ;;  %v6623_v57 = vld [vmem:[%s8660_s5 + $0xb8] sm:$0xff]   ;;  %v1631_v33 = vadd.f32 %v7701_v15, %v7504_v28  ;;  %v6624_v28 = vld [vmem:[%s8660_s5 + $0xf0] sm:$0xff]  }
 0x2d4   : > { %v6456_v27 = vpop.f32.mrf.mxu1 }
 0x2d5   : > { %v2755_v36 = vmul.f32 %v7759_v54, %v2716_v51  ;;  %v7787_v51 = vpop.permute.xlu0 %3192 }
 0x2d6   : > { %v2136_v44 = vpop.f32.mrf.mxu1 }
 0x2d7   : > { %v2789_v62 = vadd.f32 %v7767_v5, %v2755_v36  ;;  %v2717_v41 = vadd.f32 %v2136_v44, %v1470_v52 }
 0x2d8   : > { %v6457_v53 = vpop.f32.mrf.mxu1 }
 0x2d9   : > { %v2821_v56 = vmax.f32 %v2789_v62, 0.0  ;;  %v2756_v43 = vmul.f32 %v7759_v54, %v2717_v41  ;;  %v6622_v62 = vld [vmem:[%s8660_s5 + $0xf8] sm:$0xff]  }
 0x2da   : > { %v2215_v21 = vpop.f32.mrf.mxu1  ;;  %6122 = vmatprep.subr.bf16.mxu1 %v6622_v62 }
 0x2db   : > { %v5884_v10 = vpack.c.bf16 %v2821_v56, %v2821_v56  ;;  %v2790_v24 = vadd.f32 %v7778_v61, %v2756_v43  ;;  %v2720_v16 = vadd.f32 %v2215_v21, %v1549_v20  ;;  %v7800_v56 = vpop.permute.xlu1 %3194  ;;  %6123 = vmatpush3.bf16.msra.mxu1 %v6623_v57 }
 0x2dc   : > { %v6468_v48 = vpop.f32.mrf.mxu1  ;;  %6124 = vmatprep.subr.bf16.mxu1 %v6624_v28  ;;  %v3375_v28 = vld [vmem:[#allocation2 + $0x80] sm:$0xf] }
 0x2dd   : > { %2998 = vst.msk [vmem:[#allocation2 + $0x28] sm:$0xf] %vm2867_vm5, %v5884_v10  ;;  %v2822_v11 = vmax.f32 %v2790_v24, 0.0  ;;  %v2759_v2 = vmul.f32 %v7759_v54, %v2720_v16  ;;  %v7803_v16 = vpop.permute.xlu0 %3937 }
 0x2de   : > { %v2218_v27 = vpop.f32.mrf.mxu1 }
 0x2df   : > { %v5885_v52 = vpack.c.bf16 %v2822_v11, %v2822_v11  ;;  %v2793_v36 = vadd.f32 %v7767_v5, %v2759_v2  ;;  %v2721_v44 = vadd.f32 %v2218_v27, %v1552_v19  ;;  %v1634_v2 = vadd.f32 %v7704_v29, %v7521_v0 }
 0x2e0   : > { %v6469_v41 = vpop.f32.mrf.mxu1 }
 0x2e1   : > { %2999 = vst.msk [vmem:[#allocation2 + $0x2c] sm:$0xf] %vm2867_vm5, %v5885_v52  ;;  %v2825_v53 = vmax.f32 %v2793_v36, 0.0  ;;  %v2760_v20 = vmul.f32 %v7759_v54, %v2721_v44  ;;  %v6625_v44 = vld [vmem:[%s8660_s5 + $0xb0] sm:$0xff]   ;;  %v7826_v41 = vpop.permute.xlu1 %3939 }
 0x2e2   : > { %v2297_v43 = vpop.f32.mrf.mxu1  ;;  %6125 = vmatpush3.bf16.msra.mxu1 %v6625_v44 }
 0x2e3   : > { %v5888_v21 = vpack.c.bf16 %v2825_v53, %v2825_v53  ;;  %v2794_v10 = vadd.f32 %v7778_v61, %v2760_v20  ;;  %v2724_v24 = vadd.f32 %v2297_v43, %v1631_v33 }
 0x2e4   : > { %v3038_v15 = vld [vmem:[#allocation2 + $0x28] sm:$0xf]  ;;  %v6480_v11 = vpop.f32.mrf.mxu1 }
 0x2e5   : > { %v3291_v48 = vld [vmem:[#allocation2 + $0x28] sm:$0xf]  ;;  %3070 = vst.msk [vmem:[#allocation3 + $0xc8] sm:$0xf] %vm2867_vm5, %v3038_v15  ;;  %3002 = vst.msk [vmem:[#allocation2 + $0x38] sm:$0xf] %vm2867_vm5, %v5888_v21  ;;  %v2763_v52 = vmul.f32 %v7759_v54, %v2724_v24 }
 0x2e6   : > { %v3543_v19 = vld [vmem:[#allocation2 + $0x28] sm:$0xf]  ;;  %3323 = vst.msk [vmem:[#allocation3 + $0x7c] sm:$0xf] %vm2867_vm5, %v3291_v48  ;;  %v2826_v27 = vmax.f32 %v2794_v10, 0.0  ;;  %v2300_v0 = vpop.f32.mrf.mxu1  ;;  %v7838_v10 = vpop.permute.xlu0 %3689 }
 0x2e7   : > { %3575 = vst.msk [vmem:[#allocation3 + $0x30] sm:$0xf] %vm2867_vm5, %v3543_v19  ;;  %v3353_v36 = vld [vmem:[#allocation2 + $0x28] sm:$0xf]  ;;  %v2797_v62 = vadd.f32 %v7767_v5, %v2763_v52  ;;  %v2725_v57 = vadd.f32 %v2300_v0, %v1634_v2  ;;  %v3376_v11 = vld [vmem:[#allocation2 + $0x84] sm:$0xf]  ;;  %v7861_v0 = vpop.permute.xlu1 %3691 }
 0x2e8   : > { %3263 = vst.msk [vmem:[#allocation3 + $0xc8] sm:$0xf] %vm3252_vm6, %v7716_v26  ;;  %3515 = vst.msk [vmem:[#allocation3 + $0x7c] sm:$0xf] %vm3252_vm6, %v7710_v18  ;;  %3421 = vrot.lane.b32.xlu0 %v3353_v36, %s6763_s15  ;;  %v5889_v29 = vpack.c.bf16 %v2826_v27, %v2826_v27  ;;  %v6629_v26 = vld [vmem:[%s8660_s5 + $0xe8] sm:$0xff]   ;;  %v6481_v20 = vpop.f32.mrf.mxu1 }
 0x2e9   : > { %3767 = vst.msk [vmem:[#allocation3 + $0x30] sm:$0xf] %vm3252_vm6, %v7724_v3  ;;  %v3039_v33 = vld [vmem:[#allocation2 + $0x2c] sm:$0xf]  ;;  %v1713_v3 = vadd.f32 %v7706_v32, %v7550_v45  ;;  %v2829_v43 = vmax.f32 %v2797_v62, 0.0  ;;  %v2764_v21 = vmul.f32 %v7759_v54, %v2725_v57  ;;  %6126 = vmatprep.subr.bf16.mxu1 %v6629_v26 }
 0x2ea   : > { %v3292_v53 = vld [vmem:[#allocation2 + $0x2c] sm:$0xf]  ;;  %3071 = vst.msk [vmem:[#allocation3 + $0xdc] sm:$0xf] %vm2867_vm5, %v3039_v33  ;;  %3003 = vst.msk [vmem:[#allocation2 + $0x3c] sm:$0xf] %vm2867_vm5, %v5889_v29  ;;  %v2379_v32 = vpop.f32.mrf.mxu1  ;;  %v7876_v33 = vpop.permute.xlu0 %3449 }
 0x2eb   : > { %v3544_v18 = vld [vmem:[#allocation2 + $0x2c] sm:$0xf]  ;;  %3324 = vst.msk [vmem:[#allocation3 + $0x90] sm:$0xf] %vm2867_vm5, %v3292_v53  ;;  %v5892_v15 = vpack.c.bf16 %v2829_v43, %v2829_v43  ;;  %v2798_v48 = vadd.f32 %v7778_v61, %v2764_v21  ;;  %v2728_v19 = vadd.f32 %v2379_v32, %v1713_v3  ;;  %v3100_v62 = vld [vmem:[#allocation2 + $0x28] sm:$0xf]  ;;  %v1795_v43 = vadd.f32 %v7712_v63, %v7584_v40 }
 0x2ec   : > { %3576 = vst.msk [vmem:[#allocation3 + $0x44] sm:$0xf] %vm2867_vm5, %v3544_v18  ;;  %v3354_v24 = vld [vmem:[#allocation2 + $0x2c] sm:$0xf]  ;;  %3465 = vrot.lane.b32.xlu0 %v3375_v28, %s6763_s15  ;;  %v3042_v2 = vld [vmem:[#allocation2 + $0x38] sm:$0xf]  ;;  %v6492_v52 = vpop.f32.mrf.mxu1 }
 0x2ed   : > { %v6633_v45 = vld [vmem:[%s8660_s5 + $0xa8] sm:$0xff]   ;;  %3264 = vst.msk [vmem:[#allocation3 + $0xdc] sm:$0xf] %vm3252_vm6, %v7720_v30  ;;  %3516 = vst.msk [vmem:[#allocation3 + $0x90] sm:$0xf] %vm3252_vm6, %v7714_v55  ;;  %3423 = vrot.lane.b32.xlu1 %v3354_v24, %s6763_s15  ;;  %v6634_v30 = vld [vmem:[%s8660_s5 + $0xe0] sm:$0xff]   ;;  %v2767_v29 = vmul.f32 %v7759_v54, %v2728_v19 }
 0x2ee   : > { %3768 = vst.msk [vmem:[#allocation3 + $0x44] sm:$0xf] %vm3252_vm6, %v7728_v1  ;;  %6127 = vmatpush3.bf16.msra.mxu1 %v6633_v45  ;;  %v3295_v55 = vld [vmem:[#allocation2 + $0x38] sm:$0xf]  ;;  %v1716_v1 = vadd.f32 %v7708_v49, %v7562_v35  ;;  %v2830_v44 = vmax.f32 %v2798_v48, 0.0  ;;  %v2382_v35 = vpop.f32.mrf.mxu1 }
 0x2ef   : > { %v3547_v27 = vld [vmem:[#allocation2 + $0x38] sm:$0xf]  ;;  %3074 = vst.msk [vmem:[#allocation3 + $0x118] sm:$0xf] %vm2867_vm5, %v3042_v2  ;;  %3327 = vst.msk [vmem:[#allocation3 + $0xcc] sm:$0xf] %vm2867_vm5, %v3295_v55  ;;  %6128 = vmatprep.subr.bf16.mxu1 %v6634_v30  ;;  %v2801_v57 = vadd.f32 %v7767_v5, %v2767_v29 }
 0x2f0   : > { %v3799_v36 = vld [vmem:[#allocation2 + $0x38] sm:$0xf]  ;;  %3579 = vst.msk [vmem:[#allocation3 + $0x80] sm:$0xf] %vm2867_vm5, %v3547_v27  ;;  %3006 = vst.msk [vmem:[#allocation2 + $0x48] sm:$0xf] %vm2867_vm5, %v5892_v15  ;;  %3172 = vrot.lane.b32.xlu0 %v3100_v62, %s6763_s15  ;;  %v5893_v49 = vpack.c.bf16 %v2830_v44, %v2830_v44  ;;  %v2729_v26 = vadd.f32 %v2382_v35, %v1716_v1  ;;  %v6493_v3 = vpop.f32.mrf.mxu1  ;;  %v7903_v15 = vpop.permute.xlu1 %3451 }
 0x2f1   : > { %3831 = vst.msk [vmem:[#allocation3 + $0x34] sm:$0xf] %vm2867_vm5, %v3799_v36  ;;  %3467 = vrot.lane.b32.xlu1 %v3376_v11, %s6763_s15  ;;  %v3043_v53 = vld [vmem:[#allocation2 + $0x3c] sm:$0xf]  ;;  %v2833_v24 = vmax.f32 %v2801_v57, 0.0  ;;  %v7915_v44 = vpop.permute.xlu0 %3200 }
 0x2f2   : > { %3267 = vst.msk [vmem:[#allocation3 + $0x118] sm:$0xf] %vm3252_vm6, %v7736_v34  ;;  %3519 = vst.msk [vmem:[#allocation3 + $0xcc] sm:$0xf] %vm3252_vm6, %v7730_v31  ;;  %v3605_v34 = vld [vmem:[#allocation2 + $0x28] sm:$0xf]  ;;  %v2768_v28 = vmul.f32 %v7759_v54, %v2729_v26  ;;  %v2461_v40 = vpop.f32.mrf.mxu1 }
 0x2f3   : > { %3771 = vst.msk [vmem:[#allocation3 + $0x80] sm:$0xf] %vm3252_vm6, %v7752_v39  ;;  %4023 = vst.msk [vmem:[#allocation3 + $0x34] sm:$0xf] %vm3252_vm6, %v7744_v8  ;;  %v6635_v31 = vld [vmem:[%s8660_s5 + $0xa0] sm:$0xff]   ;;  %v6636_v39 = vld [vmem:[%s8660_s5 + $0xd8] sm:$0xff]   ;;  %v6026_v8 = vpop.f32.mrf.mxu0  ;;  %v5896_v63 = vpack.c.bf16 %v2833_v24, %v2833_v24 }
 0x2f4   : > { %v3296_v18 = vld [vmem:[#allocation2 + $0x3c] sm:$0xf]  ;;  %3075 = vst.msk [vmem:[#allocation3 + $0x12c] sm:$0xf] %vm2867_vm5, %v3043_v53  ;;  %3007 = vst.msk [vmem:[#allocation2 + $0x4c] sm:$0xf] %vm2867_vm5, %v5893_v49  ;;  %6129 = vmatpush3.bf16.msra.mxu1 %v6635_v31  ;;  %3669 = vrot.lane.b32.xlu0 %v3605_v34, %s6763_s15  ;;  %v2802_v32 = vadd.f32 %v7778_v61, %v2768_v28  ;;  %v6504_v2 = vpop.f32.mrf.mxu1  ;;  %v7947_v3 = vpop.permute.xlu1 %3202 }
 0x2f5   : > { %v3548_v20 = vld [vmem:[#allocation2 + $0x3c] sm:$0xf]  ;;  %3328 = vst.msk [vmem:[#allocation3 + $0xe0] sm:$0xf] %vm2867_vm5, %v3296_v18  ;;  %v3101_v45 = vld [vmem:[#allocation2 + $0x2c] sm:$0xf]  ;;  %6130 = vmatprep.subr.bf16.mxu1 %v6636_v39  ;;  %v6027_v55 = vpop.f32.mrf.mxu0 }
 0x2f6   : > { %v3800_v21 = vld [vmem:[#allocation2 + $0x3c] sm:$0xf]  ;;  %3580 = vst.msk [vmem:[#allocation3 + $0x94] sm:$0xf] %vm2867_vm5, %v3548_v20  ;;  %3174 = vrot.lane.b32.xlu1 %v3101_v45, %s6763_s15  ;;  %v3357_v48 = vld [vmem:[#allocation2 + $0x38] sm:$0xf]  ;;  %v2464_v29 = vpop.f32.mrf.mxu1 }
 0x2f7   : > { %3832 = vst.msk [vmem:[#allocation3 + $0x48] sm:$0xf] %vm2867_vm5, %v3800_v21  ;;  %v3606_v19 = vld [vmem:[#allocation2 + $0x2c] sm:$0xf]  ;;  %v3299_v11 = vld [vmem:[#allocation2 + $0x48] sm:$0xf] }
 0x2f8   : > { %3268 = vst.msk [vmem:[#allocation3 + $0x12c] sm:$0xf] %vm3252_vm6, %v7740_v7  ;;  %3520 = vst.msk [vmem:[#allocation3 + $0xe0] sm:$0xf] %vm3252_vm6, %v7734_v13  ;;  %v2732_v7 = vadd.f32 %v2461_v40, %v1795_v43  ;;  %v6637_v13 = vld [vmem:[%s8660_s5 + $0x98] sm:$0xff]   ;;  %v2834_v1 = vmax.f32 %v2802_v32, 0.0  ;;  %3429 = vrot.lane.b32.xlu0 %v3357_v48, %s6763_s15  ;;  %v6505_v39 = vpop.f32.mrf.mxu1 }
 0x2f9   : > { %3772 = vst.msk [vmem:[#allocation3 + $0x94] sm:$0xf] %vm3252_vm6, %v7762_v42  ;;  %4024 = vst.msk [vmem:[#allocation3 + $0x48] sm:$0xf] %vm3252_vm6, %v7748_v23  ;;  %v3046_v42 = vld [vmem:[#allocation2 + $0x48] sm:$0xf]  ;;  %v1798_v23 = vadd.f32 %v7718_v60, %v7594_v59  ;;  %6131 = vmatpush3.bf16.msra.mxu1 %v6637_v13  ;;  %v7920_v60 = vadd.f32 %v6027_v55, %v6026_v8  ;;  %v3948_v13 = vpop.permute.xlu1 %3947 }
 0x2fa   : > { %v4055_v30 = vld [vmem:[#allocation2 + $0x48] sm:$0xf]  ;;  %3078 = vst.msk [vmem:[#allocation3 + $0x168] sm:$0xf] %vm2867_vm5, %v3046_v42  ;;  %3331 = vst.msk [vmem:[#allocation3 + $0x11c] sm:$0xf] %vm2867_vm5, %v3299_v11  ;;  %v2771_v36 = vmul.f32 %v7759_v54, %v2732_v7  ;;  %3671 = vrot.lane.b32.xlu1 %v3606_v19, %s6763_s15  ;;  %v5897_v62 = vpack.c.bf16 %v2834_v1, %v2834_v1 }
 0x2fb   : > { %4087 = vst.msk [vmem:[#allocation3 + $0x38] sm:$0xf] %vm2867_vm5, %v4055_v30  ;;  %v3803_v27 = vld [vmem:[#allocation2 + $0x48] sm:$0xf]  ;;  %3010 = vst.msk [vmem:[#allocation2 + $0x58] sm:$0xf] %vm2867_vm5, %v5896_v63  ;;  %v1880_v63 = vadd.f32 %v7726_v25, %v7626_v4 }
 0x2fc   : > { %v3551_v52 = vld [vmem:[#allocation2 + $0x48] sm:$0xf]  ;;  %v6638_v59 = vld [vmem:[%s8660_s5 + $0x118] sm:$0xff]   ;;  %3835 = vst.msk [vmem:[#allocation3 + $0x84] sm:$0xf] %vm2867_vm5, %v3803_v27  ;;  %v2805_v35 = vadd.f32 %v7767_v5, %v2771_v36  ;;  %v6640_v26 = vld [vmem:[%s8660_s5 + $0x90] sm:$0xff]  }
 0x2fd   : > { %3271 = vst.msk [vmem:[#allocation3 + $0x168] sm:$0xf] %vm3252_vm6, %v7787_v51  ;;  %3523 = vst.msk [vmem:[#allocation3 + $0x11c] sm:$0xf] %vm3252_vm6, %v7770_v46  ;;  %v2733_v51 = vadd.f32 %v2464_v29, %v1798_v23  ;;  %v3104_v49 = vld [vmem:[#allocation2 + $0x38] sm:$0xf]  ;;  %6542 = vmatprep.subr.bf16.mxu0 %v6638_v59 }
 0x2fe   : > { %3583 = vst.msk [vmem:[#allocation3 + $0xd0] sm:$0xf] %vm2867_vm5, %v3551_v52  ;;  %v3358_v57 = vld [vmem:[#allocation2 + $0x3c] sm:$0xf]  ;;  %v6639_v46 = vld [vmem:[%s8660_s5 + $0xd0] sm:$0xff]   ;;  %6543 = vmatpush3.bf16.msra.mxu0 %v6638_v59  ;;  %v2837_v20 = vmax.f32 %v2805_v35, 0.0  ;;  %3180 = vrot.lane.b32.xlu0 %v3104_v49, %s6763_s15  ;;  %v1959_v52 = vadd.f32 %v7732_v47, %v7646_v17  ;;  %v3460_v35 = vpop.permute.xlu1 %3459 }
 0x2ff   : > { %4027 = vst.msk [vmem:[#allocation3 + $0x84] sm:$0xf] %vm3252_vm6, %v7803_v16  ;;  %3775 = vst.msk [vmem:[#allocation3 + $0xd0] sm:$0xf] %vm3252_vm6, %v7838_v10  ;;  %v3047_v34 = vld [vmem:[#allocation2 + $0x4c] sm:$0xf]  ;;  %v1877_v10 = vadd.f32 %v7722_v22, %v7616_v50  ;;  %v2772_v8 = vmul.f32 %v7759_v54, %v2733_v51  ;;  %6132 = vmatprep.subr.bf16.mxu1 %v6639_v46  ;;  %3431 = vrot.lane.b32.xlu1 %v3358_v57, %s6763_s15  ;;  %v2543_v22 = vpop.f32.mrf.mxu1 }
 0x300   : > { %v3300_v16 = vld [vmem:[#allocation2 + $0x4c] sm:$0xf]  ;;  %3079 = vst.msk [vmem:[#allocation3 + $0x17c] sm:$0xf] %vm2867_vm5, %v3047_v34  ;;  %3011 = vst.msk [vmem:[#allocation2 + $0x5c] sm:$0xf] %vm2867_vm5, %v5897_v62  ;;  %v5900_v43 = vpack.c.bf16 %v2837_v20, %v2837_v20  ;;  %6133 = vmatpush3.bf16.msra.mxu1 %v6640_v26  ;;  %v1962_v34 = vadd.f32 %v7738_v14, %v7656_v9 }
 0x301   : > { %v3804_v31 = vld [vmem:[#allocation2 + $0x4c] sm:$0xf]  ;;  %3332 = vst.msk [vmem:[#allocation3 + $0x130] sm:$0xf] %vm2867_vm5, %v3300_v16  ;;  %v2806_v21 = vadd.f32 %v7778_v61, %v2772_v8  ;;  %v2736_v24 = vadd.f32 %v2543_v22, %v1877_v10  ;;  %v3861_v28 = vld [vmem:[#allocation2 + $0x38] sm:$0xf]  ;;  %v6516_v40 = vpop.f32.mrf.mxu1 }
 0x302   : > { %v4056_v53 = vld [vmem:[#allocation2 + $0x4c] sm:$0xf]  ;;  %3836 = vst.msk [vmem:[#allocation3 + $0x98] sm:$0xf] %vm2867_vm5, %v3804_v31  ;;  %v3303_v45 = vld [vmem:[#allocation2 + $0x58] sm:$0xf]  ;;  %3925 = vrot.lane.b32.xlu0 %v3861_v28, %s6763_s15 }
 0x303   : > { %v3552_v18 = vld [vmem:[#allocation2 + $0x4c] sm:$0xf]  ;;  %4088 = vst.msk [vmem:[#allocation3 + $0x4c] sm:$0xf] %vm2867_vm5, %v4056_v53  ;;  %3335 = vst.msk [vmem:[#allocation3 + $0x16c] sm:$0xf] %vm2867_vm5, %v3303_v45  ;;  %v2775_v7 = vmul.f32 %v7759_v54, %v2736_v24  ;;  %v2546_v4 = vpop.f32.mrf.mxu1 }
 0x304   : > { %v6644_v50 = vld [vmem:[%s8660_s5 + $0xc8] sm:$0xff]   ;;  %3272 = vst.msk [vmem:[#allocation3 + $0x17c] sm:$0xf] %vm3252_vm6, %v7800_v56  ;;  %3524 = vst.msk [vmem:[#allocation3 + $0x130] sm:$0xf] %vm3252_vm6, %v7781_v37  ;;  %v3946_v56 = vpop.permute.xlu0 %3945  ;;  %v2737_v11 = vadd.f32 %v2546_v4, %v1880_v63  ;;  %v6649_v29 = vld [vmem:[%s8660_s5 + $0xc0] sm:$0xff]  }
 0x305   : > { %4028 = vst.msk [vmem:[#allocation3 + $0x98] sm:$0xf] %vm3252_vm6, %v7826_v41  ;;  %v4059_v37 = vld [vmem:[#allocation2 + $0x58] sm:$0xf]  ;;  %6134 = vmatprep.subr.bf16.mxu1 %v6644_v50  ;;  %v3105_v48 = vld [vmem:[#allocation2 + $0x3c] sm:$0xf]  ;;  %v2809_v42 = vadd.f32 %v7767_v5, %v2775_v7  ;;  %v6517_v27 = vpop.f32.mrf.mxu1 }
 0x306   : > { %3584 = vst.msk [vmem:[#allocation3 + $0xe4] sm:$0xf] %vm2867_vm5, %v3552_v18  ;;  %v3050_v41 = vld [vmem:[#allocation2 + $0x58] sm:$0xf]  ;;  %4091 = vst.msk [vmem:[#allocation3 + $0x88] sm:$0xf] %vm2867_vm5, %v4059_v37  ;;  %3182 = vrot.lane.b32.xlu1 %v3105_v48, %s6763_s15 }
 0x307   : > { %3776 = vst.msk [vmem:[#allocation3 + $0xe4] sm:$0xf] %vm3252_vm6, %v7861_v0  ;;  %v2838_v0 = vmax.f32 %v2806_v21, 0.0  ;;  %v3807_v32 = vld [vmem:[#allocation2 + $0x58] sm:$0xf]  ;;  %v6648_v19 = vld [vmem:[%s8660_s5 + $0x88] sm:$0xff]   ;;  %v2625_v17 = vpop.f32.mrf.mxu1 }
 0x308   : > { %3014 = vst.msk [vmem:[#allocation2 + $0x68] sm:$0xf] %vm2867_vm5, %v5900_v43  ;;  %3082 = vst.msk [vmem:[#allocation3 + $0x1b8] sm:$0xf] %vm2867_vm5, %v3050_v41  ;;  %v3609_v30 = vld [vmem:[#allocation2 + $0x38] sm:$0xf]  ;;  %v3458_v2 = vpop.permute.xlu0 %3457  ;;  %6135 = vmatpush3.bf16.msra.mxu1 %v6648_v19  ;;  %v2740_v51 = vadd.f32 %v2625_v17, %v1959_v52  ;;  %v2041_v43 = vadd.f32 %v7742_v6, %v7672_v12 }
 0x309   : > { %3527 = vst.msk [vmem:[#allocation3 + $0x16c] sm:$0xf] %vm3252_vm6, %v7876_v33  ;;  %3275 = vst.msk [vmem:[#allocation3 + $0x1b8] sm:$0xf] %vm3252_vm6, %v7915_v44  ;;  %v5901_v25 = vpack.c.bf16 %v2838_v0, %v2838_v0  ;;  %v4060_v33 = vld [vmem:[#allocation2 + $0x5c] sm:$0xf]  ;;  %v2776_v44 = vmul.f32 %v7759_v54, %v2737_v11  ;;  %3677 = vrot.lane.b32.xlu0 %v3609_v30, %s6763_s15  ;;  %6136 = vmatprep.subr.bf16.mxu1 %v6649_v29  ;;  %v6528_v46 = vpop.f32.mrf.mxu1 }
 0x30a   : > { %3839 = vst.msk [vmem:[#allocation3 + $0xd4] sm:$0xf] %vm2867_vm5, %v3807_v32  ;;  %v3304_v55 = vld [vmem:[#allocation2 + $0x5c] sm:$0xf]  ;;  %4092 = vst.msk [vmem:[#allocation3 + $0x9c] sm:$0xf] %vm2867_vm5, %v4060_v33  ;;  %v2779_v31 = vmul.f32 %v7759_v54, %v2740_v51  ;;  %v2044_v32 = vadd.f32 %v7746_v38, %v7680_v58 }
 0x30b   : > { %4031 = vst.msk [vmem:[#allocation3 + $0xd4] sm:$0xf] %vm3252_vm6, %v3946_v56  ;;  %v3051_v23 = vld [vmem:[#allocation2 + $0x5c] sm:$0xf]  ;;  %v2841_v36 = vmax.f32 %v2809_v42, 0.0  ;;  %v2810_v62 = vadd.f32 %v7778_v61, %v2776_v44  ;;  %v2628_v9 = vpop.f32.mrf.mxu1  ;;  %v3211_v56 = vpop.permute.xlu1 %3210  ;;  %v6669_v27 = vld [vmem:[%s8660_s5 + $0x110] sm:$0xff]  }
 0x30c   : > { %3336 = vst.msk [vmem:[#allocation3 + $0x180] sm:$0xf] %vm2867_vm5, %v3304_v55  ;;  %3083 = vst.msk [vmem:[#allocation3 + $0x1cc] sm:$0xf] %vm2867_vm5, %v3051_v23  ;;  %v3808_v1 = vld [vmem:[#allocation2 + $0x5c] sm:$0xf]  ;;  %v3209_v53 = vpop.permute.xlu0 %3208  ;;  %v2813_v18 = vadd.f32 %v7767_v5, %v2779_v31  ;;  %v2741_v20 = vadd.f32 %v2628_v9, %v1962_v34  ;;  %6544 = vmatprep.subr.bf16.mxu0 %v6669_v27 }
 0x30d   : > { %3015 = vst.msk [vmem:[#allocation2 + $0x6c] sm:$0xf] %vm2867_vm5, %v5901_v25  ;;  %v3862_v59 = vld [vmem:[#allocation2 + $0x3c] sm:$0xf]  ;;  %3840 = vst.msk [vmem:[#allocation3 + $0xe8] sm:$0xf] %vm2867_vm5, %v3808_v1  ;;  %v5904_v47 = vpack.c.bf16 %v2841_v36, %v2841_v36  ;;  %v6529_v22 = vpop.f32.mrf.mxu1  ;;  %6545 = vmatpush3.bf16.msra.mxu0 %v6669_v27 }
 0x30e   : > { %3528 = vst.msk [vmem:[#allocation3 + $0x180] sm:$0xf] %vm3252_vm6, %v7903_v15  ;;  %3276 = vst.msk [vmem:[#allocation3 + $0x1cc] sm:$0xf] %vm3252_vm6, %v7947_v3  ;;  %3927 = vrot.lane.b32.xlu1 %v3862_v59, %s6763_s15  ;;  %v6650_v15 = vld [vmem:[%s8660_s5 + $0x80] sm:$0xff]   ;;  %v2842_v16 = vmax.f32 %v2810_v62, 0.0  ;;  %v2780_v24 = vmul.f32 %v7759_v54, %v2741_v20 }
 0x30f   : > { %4032 = vst.msk [vmem:[#allocation3 + $0xe8] sm:$0xf] %vm3252_vm6, %v3948_v13  ;;  %v4063_v49 = vld [vmem:[#allocation2 + $0x68] sm:$0xf]  ;;  %v3610_v10 = vld [vmem:[#allocation2 + $0x3c] sm:$0xf]  ;;  %6137 = vmatpush3.bf16.msra.mxu1 %v6650_v15  ;;  %v2707_v12 = vpop.f32.mrf.mxu1 }
 0x310   : > { %v3307_v57 = vld [vmem:[#allocation2 + $0x68] sm:$0xf]  ;;  %4095 = vst.msk [vmem:[#allocation3 + $0xd8] sm:$0xf] %vm2867_vm5, %v4063_v49  ;;  %3018 = vst.msk [vmem:[#allocation2 + $0x78] sm:$0xf] %vm2867_vm5, %v5904_v47  ;;  %v5905_v14 = vpack.c.bf16 %v2842_v16, %v2842_v16  ;;  %v2814_v45 = vadd.f32 %v7778_v61, %v2780_v24  ;;  %v2744_v41 = vadd.f32 %v2707_v12, %v2041_v43 }
 0x311   : > { %v3054_v26 = vld [vmem:[#allocation2 + $0x68] sm:$0xf]  ;;  %3339 = vst.msk [vmem:[#allocation3 + $0x1bc] sm:$0xf] %vm2867_vm5, %v3307_v57  ;;  %v2845_v21 = vmax.f32 %v2813_v18, 0.0  ;;  %v6540_v63 = vpop.f32.mrf.mxu1 }
 0x312   : > { %v3361_v39 = vld [vmem:[#allocation2 + $0x48] sm:$0xf]  ;;  %3086 = vst.msk [vmem:[#allocation3 + $0x208] sm:$0xf] %vm2867_vm5, %v3054_v26  ;;  %3679 = vrot.lane.b32.xlu1 %v3610_v10, %s6763_s15  ;;  %3019 = vst.msk [vmem:[#allocation2 + $0x7c] sm:$0xf] %vm2867_vm5, %v5905_v14  ;;  %v2783_v48 = vmul.f32 %v7759_v54, %v2744_v41 }
 0x313   : > { %3531 = vst.msk [vmem:[#allocation3 + $0x1bc] sm:$0xf] %vm3252_vm6, %v3458_v2  ;;  %3437 = vrot.lane.b32.xlu0 %v3361_v39, %s6763_s15  ;;  %3279 = vst.msk [vmem:[#allocation3 + $0x208] sm:$0xf] %vm3252_vm6, %v3209_v53  ;;  %v3108_v28 = vld [vmem:[#allocation2 + $0x48] sm:$0xf]  ;;  %v5908_v6 = vpack.c.bf16 %v2845_v21, %v2845_v21  ;;  %v2710_v25 = vpop.f32.mrf.mxu1 }
 0x314   : > { %v4064_v3 = vld [vmem:[#allocation2 + $0x6c] sm:$0xf]  ;;  %v3865_v0 = vld [vmem:[#allocation2 + $0x48] sm:$0xf]  ;;  %v2846_v7 = vmax.f32 %v2814_v45, 0.0  ;;  %v2817_v42 = vadd.f32 %v7767_v5, %v2783_v48  ;;  %v2745_v58 = vadd.f32 %v2710_v25, %v2044_v32 }
 0x315   : > { %v3308_v8 = vld [vmem:[#allocation2 + $0x6c] sm:$0xf]  ;;  %4096 = vst.msk [vmem:[#allocation3 + $0xec] sm:$0xf] %vm2867_vm5, %v4064_v3  ;;  %3022 = vst.msk [vmem:[#allocation2 + $0x88] sm:$0xf] %vm2867_vm5, %v5908_v6  ;;  %v6541_v30 = vpop.f32.mrf.mxu1 }
 0x316   : > { %v3055_v50 = vld [vmem:[#allocation2 + $0x6c] sm:$0xf]  ;;  %3340 = vst.msk [vmem:[#allocation3 + $0x1d0] sm:$0xf] %vm2867_vm5, %v3308_v8  ;;  %v5909_v13 = vpack.c.bf16 %v2846_v7, %v2846_v7  ;;  %v3613_v11 = vld [vmem:[#allocation2 + $0x48] sm:$0xf]  ;;  %v2784_v33 = vmul.f32 %v7759_v54, %v2745_v58 }
 0x317   : > { %3087 = vst.msk [vmem:[#allocation3 + $0x21c] sm:$0xf] %vm2867_vm5, %v3055_v50  ;;  %v3362_v37 = vld [vmem:[#allocation2 + $0x4c] sm:$0xf]  ;;  %3188 = vrot.lane.b32.xlu0 %v3108_v28, %s6763_s15  ;;  %v4067_v40 = vld [vmem:[#allocation2 + $0x78] sm:$0xf] }
 0x318   : > { %3532 = vst.msk [vmem:[#allocation3 + $0x1d0] sm:$0xf] %vm3252_vm6, %v3460_v35  ;;  %3280 = vst.msk [vmem:[#allocation3 + $0x21c] sm:$0xf] %vm3252_vm6, %v3211_v56  ;;  %3439 = vrot.lane.b32.xlu1 %v3362_v37, %s6763_s15  ;;  %v3109_v19 = vld [vmem:[#allocation2 + $0x4c] sm:$0xf]  ;;  %v2818_v52 = vadd.f32 %v7778_v61, %v2784_v33 }
 0x319   : > { %4099 = vst.msk [vmem:[#allocation3 + $0x128] sm:$0xf] %vm2867_vm5, %v4067_v40  ;;  %v3311_v4 = vld [vmem:[#allocation2 + $0x78] sm:$0xf]  ;;  %v4068_v38 = vld [vmem:[#allocation2 + $0x7c] sm:$0xf] }
 0x31a   : > { %3343 = vst.msk [vmem:[#allocation3 + $0x20c] sm:$0xf] %vm2867_vm5, %v3311_v4  ;;  %4100 = vst.msk [vmem:[#allocation3 + $0x13c] sm:$0xf] %vm2867_vm5, %v4068_v38  ;;  %v2849_v2 = vmax.f32 %v2817_v42, 0.0  ;;  %v2850_v54 = vmax.f32 %v2818_v52, 0.0 }
 0x31b   : > { %3933 = vrot.lane.b32.xlu0 %v3865_v0, %s6763_s15  ;;  %3023 = vst.msk [vmem:[#allocation2 + $0x8c] sm:$0xf] %vm2867_vm5, %v5909_v13  ;;  %v3866_v55 = vld [vmem:[#allocation2 + $0x4c] sm:$0xf]  ;;  %v3312_v23 = vld [vmem:[#allocation2 + $0x7c] sm:$0xf] }
 0x31c   : > { %3190 = vrot.lane.b32.xlu1 %v3109_v19, %s6763_s15  ;;  %3344 = vst.msk [vmem:[#allocation3 + $0x220] sm:$0xf] %vm2867_vm5, %v3312_v23  ;;  %v5912_v5 = vpack.c.bf16 %v2849_v2, %v2849_v2  ;;  %v4071_v1 = vld [vmem:[#allocation2 + $0x88] sm:$0xf]  ;;  %v3614_v36 = vld [vmem:[#allocation2 + $0x4c] sm:$0xf]  ;;  %v5913_v17 = vpack.c.bf16 %v2850_v54, %v2850_v54 }
 0x31d   : > { %4103 = vst.msk [vmem:[#allocation3 + $0x178] sm:$0xf] %vm2867_vm5, %v4071_v1  ;;  %v3365_v44 = vld [vmem:[#allocation2 + $0x58] sm:$0xf]  ;;  %v3556_v29 = vld [vmem:[#allocation2 + $0x5c] sm:$0xf] }
 0x31e   : > { %3026 = vst.msk [vmem:[#allocation2 + $0x98] sm:$0xf] %vm2867_vm5, %v5912_v5  ;;  %v3555_v59 = vld [vmem:[#allocation2 + $0x58] sm:$0xf]  ;;  %3588 = vst.msk [vmem:[#allocation3 + $0x134] sm:$0xf] %vm2867_vm5, %v3556_v29 }
 0x31f   : > { %3685 = vrot.lane.b32.xlu0 %v3613_v11, %s6763_s15  ;;  %3587 = vst.msk [vmem:[#allocation3 + $0x120] sm:$0xf] %vm2867_vm5, %v3555_v59  ;;  %3027 = vst.msk [vmem:[#allocation2 + $0x9c] sm:$0xf] %vm2867_vm5, %v5913_v17  ;;  %v3112_v47 = vld [vmem:[#allocation2 + $0x58] sm:$0xf] }
 0x320   : > { %3935 = vrot.lane.b32.xlu1 %v3866_v55, %s6763_s15  ;;  %v3366_v62 = vld [vmem:[#allocation2 + $0x5c] sm:$0xf]  ;;  %v3811_v35 = vld [vmem:[#allocation2 + $0x68] sm:$0xf]  ;;  %v3812_v51 = vld [vmem:[#allocation2 + $0x6c] sm:$0xf] }
 0x321   : > { %v3058_v15 = vld [vmem:[#allocation2 + $0x78] sm:$0xf]  ;;  %3843 = vst.msk [vmem:[#allocation3 + $0x124] sm:$0xf] %vm2867_vm5, %v3811_v35  ;;  %3844 = vst.msk [vmem:[#allocation3 + $0x138] sm:$0xf] %vm2867_vm5, %v3812_v51 }
 0x322   : > { %v4072_v61 = vld [vmem:[#allocation2 + $0x8c] sm:$0xf]  ;;  %3090 = vst.msk [vmem:[#allocation3 + $0x258] sm:$0xf] %vm2867_vm5, %v3058_v15  ;;  %v3059_v49 = vld [vmem:[#allocation2 + $0x7c] sm:$0xf]  ;;  %v8127_v15 = vpop.f32.mrf.mxu0 }
 0x323   : > { %3445 = vrot.lane.b32.xlu0 %v3365_v44, %s6763_s15  ;;  %4104 = vst.msk [vmem:[#allocation3 + $0x18c] sm:$0xf] %vm2867_vm5, %v4072_v61  ;;  %v3315_v57 = vld [vmem:[#allocation2 + $0x88] sm:$0xf]  ;;  %v3316_v46 = vld [vmem:[#allocation2 + $0x8c] sm:$0xf] }
 0x324   : > { %3687 = vrot.lane.b32.xlu1 %v3614_v36, %s6763_s15  ;;  %v3869_v34 = vld [vmem:[#allocation2 + $0x58] sm:$0xf]  ;;  %v3113_v16 = vld [vmem:[#allocation2 + $0x5c] sm:$0xf]  ;;  %3091 = vst.msk [vmem:[#allocation3 + $0x26c] sm:$0xf] %vm2867_vm5, %v3059_v49 }
 0x325   : > { %v4075_v26 = vld [vmem:[#allocation2 + $0x98] sm:$0xf]  ;;  %3347 = vst.msk [vmem:[#allocation3 + $0x25c] sm:$0xf] %vm2867_vm5, %v3315_v57  ;;  %3348 = vst.msk [vmem:[#allocation3 + $0x270] sm:$0xf] %vm2867_vm5, %v3316_v46 }
 0x326   : > { %4107 = vst.msk [vmem:[#allocation3 + $0x1c8] sm:$0xf] %vm2867_vm5, %v4075_v26  ;;  %v3559_v31 = vld [vmem:[#allocation2 + $0x68] sm:$0xf]  ;;  %v3815_v39 = vld [vmem:[#allocation2 + $0x78] sm:$0xf] }
 0x327   : > { %3196 = vrot.lane.b32.xlu0 %v3112_v47, %s6763_s15  ;;  %v3560_v10 = vld [vmem:[#allocation2 + $0x6c] sm:$0xf]  ;;  %3591 = vst.msk [vmem:[#allocation3 + $0x170] sm:$0xf] %vm2867_vm5, %v3559_v31  ;;  %3847 = vst.msk [vmem:[#allocation3 + $0x174] sm:$0xf] %vm2867_vm5, %v3815_v39  ;;  %v8133_v31 = vpop.f32.mrf.mxu0 }
 0x328   : > { %3447 = vrot.lane.b32.xlu1 %v3366_v62, %s6763_s15  ;;  %3592 = vst.msk [vmem:[#allocation3 + $0x184] sm:$0xf] %vm2867_vm5, %v3560_v10  ;;  %v3816_v53 = vld [vmem:[#allocation2 + $0x7c] sm:$0xf]  ;;  %v3563_v9 = vld [vmem:[#allocation2 + $0x78] sm:$0xf] }
 0x329   : > { %3848 = vst.msk [vmem:[#allocation3 + $0x188] sm:$0xf] %vm2867_vm5, %v3816_v53  ;;  %3595 = vst.msk [vmem:[#allocation3 + $0x1c0] sm:$0xf] %vm2867_vm5, %v3563_v9  ;;  %v3819_v14 = vld [vmem:[#allocation2 + $0x88] sm:$0xf] }
 0x32a   : > { %v4076_v18 = vld [vmem:[#allocation2 + $0x9c] sm:$0xf]  ;;  %v3617_v20 = vld [vmem:[#allocation2 + $0x58] sm:$0xf]  ;;  %3851 = vst.msk [vmem:[#allocation3 + $0x1c4] sm:$0xf] %vm2867_vm5, %v3819_v14 }
 0x32b   : > { %3941 = vrot.lane.b32.xlu0 %v3869_v34, %s6763_s15  ;;  %v3870_v3 = vld [vmem:[#allocation2 + $0x5c] sm:$0xf]  ;;  %4108 = vst.msk [vmem:[#allocation3 + $0x1dc] sm:$0xf] %vm2867_vm5, %v4076_v18  ;;  %v3820_v50 = vld [vmem:[#allocation2 + $0x8c] sm:$0xf] }
 0x32c   : > { %3198 = vrot.lane.b32.xlu1 %v3113_v16, %s6763_s15  ;;  %v3564_v8 = vld [vmem:[#allocation2 + $0x7c] sm:$0xf]  ;;  %3852 = vst.msk [vmem:[#allocation3 + $0x1d8] sm:$0xf] %vm2867_vm5, %v3820_v50  ;;  %v3567_v43 = vld [vmem:[#allocation2 + $0x88] sm:$0xf] }
 0x32d   : > { %3596 = vst.msk [vmem:[#allocation3 + $0x1d4] sm:$0xf] %vm2867_vm5, %v3564_v8  ;;  %v3618_v22 = vld [vmem:[#allocation2 + $0x5c] sm:$0xf]  ;;  %3599 = vst.msk [vmem:[#allocation3 + $0x210] sm:$0xf] %vm2867_vm5, %v3567_v43 }
 0x32e   : > { %v3823_v21 = vld [vmem:[#allocation2 + $0x98] sm:$0xf]  ;;  %v3568_v56 = vld [vmem:[#allocation2 + $0x8c] sm:$0xf]  ;;  %v3369_v24 = vld [vmem:[#allocation2 + $0x68] sm:$0xf] }
 0x32f   : > { %3693 = vrot.lane.b32.xlu0 %v3617_v20, %s6763_s15  ;;  %3855 = vst.msk [vmem:[#allocation3 + $0x214] sm:$0xf] %vm2867_vm5, %v3823_v21  ;;  %3600 = vst.msk [vmem:[#allocation3 + $0x224] sm:$0xf] %vm2867_vm5, %v3568_v56  ;;  %v3824_v28 = vld [vmem:[#allocation2 + $0x9c] sm:$0xf] }
 0x330   : > { %3943 = vrot.lane.b32.xlu1 %v3870_v3, %s6763_s15  ;;  %3856 = vst.msk [vmem:[#allocation3 + $0x228] sm:$0xf] %vm2867_vm5, %v3824_v28  ;;  %v3571_v37 = vld [vmem:[#allocation2 + $0x98] sm:$0xf]  ;;  %v3572_v12 = vld [vmem:[#allocation2 + $0x9c] sm:$0xf] }
 0x331   : > { %3603 = vst.msk [vmem:[#allocation3 + $0x260] sm:$0xf] %vm2867_vm5, %v3571_v37  ;;  %3604 = vst.msk [vmem:[#allocation3 + $0x274] sm:$0xf] %vm2867_vm5, %v3572_v12  ;;  %v3619_v6 = vld [vmem:[#allocation2 + $0x60] sm:$0xf] }
 0x332   : > { %v3370_v45 = vld [vmem:[#allocation2 + $0x6c] sm:$0xf]  ;;  %v3116_v41 = vld [vmem:[#allocation2 + $0x68] sm:$0xf]  ;;  %v3620_v40 = vld [vmem:[#allocation2 + $0x64] sm:$0xf] }
 0x333   : > { %3453 = vrot.lane.b32.xlu0 %v3369_v24, %s6763_s15  ;;  %v3873_v63 = vld [vmem:[#allocation2 + $0x68] sm:$0xf]  ;;  %v3117_v0 = vld [vmem:[#allocation2 + $0x6c] sm:$0xf]  ;;  %v3373_v48 = vld [vmem:[#allocation2 + $0x78] sm:$0xf] }
 0x334   : > { %3695 = vrot.lane.b32.xlu1 %v3618_v22, %s6763_s15  ;;  %v6691_v32 = vld [vmem:[%s8660_s5 + $0x108] sm:$0xff]   ;;  %v3875_v19 = vld [vmem:[#allocation2 + $0x70] sm:$0xf]  ;;  %v3374_v4 = vld [vmem:[#allocation2 + $0x7c] sm:$0xf] }
 0x335   : > { %v3874_v7 = vld [vmem:[#allocation2 + $0x6c] sm:$0xf]  ;;  %6546 = vmatprep.subr.bf16.mxu0 %v6691_v32  ;;  %v3120_v25 = vld [vmem:[#allocation2 + $0x78] sm:$0xf]  ;;  %v3876_v13 = vld [vmem:[#allocation2 + $0x74] sm:$0xf] }
 0x336   : > { %6547 = vmatpush3.bf16.msra.mxu0 %v6691_v32  ;;  %v3122_v42 = vld [vmem:[#allocation2 + $0x80] sm:$0xf]  ;;  %v3123_v58 = vld [vmem:[#allocation2 + $0x84] sm:$0xf]  ;;  %v3121_v38 = vld [vmem:[#allocation2 + $0x7c] sm:$0xf] }
 0x337   : > { %3697 = vrot.lane.b32.xlu0 %v3619_v6, %s6763_s15  ;;  %v3377_v11 = vld [vmem:[#allocation2 + $0x88] sm:$0xf]  ;;  %v3379_v30 = vld [vmem:[#allocation2 + $0x90] sm:$0xf]  ;;  %v3378_v2 = vld [vmem:[#allocation2 + $0x8c] sm:$0xf] }
 0x338   : > { %3455 = vrot.lane.b32.xlu1 %v3370_v45, %s6763_s15  ;;  %v3621_v33 = vld [vmem:[#allocation2 + $0x68] sm:$0xf]  ;;  %v3380_v55 = vld [vmem:[#allocation2 + $0x94] sm:$0xf]  ;;  %v3877_v23 = vld [vmem:[#allocation2 + $0x78] sm:$0xf] }
 0x339   : > { %v3622_v27 = vld [vmem:[#allocation2 + $0x6c] sm:$0xf]  ;;  %v6711_v5 = vld [vmem:[%s8660_s5 + $0x100] sm:$0xff]   ;;  %v3623_v52 = vld [vmem:[#allocation2 + $0x70] sm:$0xf] }
 0x33a   : > { %6548 = vmatprep.subr.bf16.mxu0 %v6711_v5  ;;  %v3878_v1 = vld [vmem:[#allocation2 + $0x7c] sm:$0xf]  ;;  %v3879_v54 = vld [vmem:[#allocation2 + $0x80] sm:$0xf]  ;;  %v3624_v44 = vld [vmem:[#allocation2 + $0x74] sm:$0xf] }
 0x33b   : > { %3204 = vrot.lane.b32.xlu0 %v3116_v41, %s6763_s15  ;;  %6549 = vmatpush3.bf16.msra.mxu0 %v6711_v5  ;;  %v3625_v17 = vld [vmem:[#allocation2 + $0x78] sm:$0xf]  ;;  %v3880_v61 = vld [vmem:[#allocation2 + $0x84] sm:$0xf]  ;;  %v3881_v35 = vld [vmem:[#allocation2 + $0x88] sm:$0xf] }
 0x33c   : > { %3699 = vrot.lane.b32.xlu1 %v3620_v40, %s6763_s15  ;;  %v3626_v51 = vld [vmem:[#allocation2 + $0x7c] sm:$0xf]  ;;  %v6626_v46 = vld [vmem:[#allocation3 + $0x50] ss:$20 sps:$4 sm:$0xff]   ;;  %v3627_v34 = vld [vmem:[#allocation2 + $0x80] sm:$0xf] }
 0x33d   : > { %v3882_v16 = vld [vmem:[#allocation2 + $0x8c] sm:$0xf]  ;;  %v6632_v39 = vld [vmem:[#allocation3 + $0x7c] ss:$20 sps:$4 sm:$0xff]   ;;  %v3628_v14 = vld [vmem:[#allocation2 + $0x84] sm:$0xf] }
 0x33e   : > { %v3883_v9 = vld [vmem:[#allocation2 + $0x90] sm:$0xf]  ;;  %v3629_v22 = vld [vmem:[#allocation2 + $0x88] sm:$0xf]  ;;  %v3884_v43 = vld [vmem:[#allocation2 + $0x94] sm:$0xf] }
 0x33f   : > { %3949 = vrot.lane.b32.xlu0 %v3873_v63, %s6763_s15  ;;  %v6630_v21 = vld [vmem:[#allocation3 + $0x78] ss:$20 sps:$4 sm:$0xff]   ;;  %v3825_v12 = vld [vmem:[#allocation2 + $0xa0] sm:$0xf]  ;;  %v3631_v63 = vld [vmem:[#allocation2 + $0x90] sm:$0xf] }
 0x340   : > { %3206 = vrot.lane.b32.xlu1 %v3117_v0, %s6763_s15  ;;  %v3630_v28 = vld [vmem:[#allocation2 + $0x8c] sm:$0xf]  ;;  %v3885_v37 = vld [vmem:[#allocation2 + $0x98] sm:$0xf]  ;;  %3857 = vst.msk [vmem:[#allocation3 + $0x23c] sm:$0xf] %vm2867_vm5, %v3825_v12 }
 0x341   : > { %v3886_v0 = vld [vmem:[#allocation2 + $0x9c] sm:$0xf]  ;;  %v3826_v32 = vld [vmem:[#allocation2 + $0xa4] sm:$0xf]  ;;  %v6666_v12 = vld [vmem:[#allocation3 + $0x80] ss:$20 sps:$4 sm:$0xff]  }
 0x342   : > { %3858 = vst.msk [vmem:[#allocation3 + $0x250] sm:$0xf] %vm2867_vm5, %v3826_v32 }
 0x343   : > { %3461 = vrot.lane.b32.xlu0 %v3373_v48, %s6763_s15  ;;  %v3887_v48 = vld [vmem:[#allocation2 + $0xa0] sm:$0xf] }
 0x344   : > { %3951 = vrot.lane.b32.xlu1 %v3874_v7, %s6763_s15  ;;  %v6647_v7 = vld [vmem:[#allocation3 + $0xcc] ss:$20 sps:$4 sm:$0xff]  }
 0x347   : > { %3953 = vrot.lane.b32.xlu0 %v3875_v19, %s6763_s15 }
 0x348   : > { %3463 = vrot.lane.b32.xlu1 %v3374_v4, %s6763_s15 }
 0x34b   : > { %3212 = vrot.lane.b32.xlu0 %v3120_v25, %s6763_s15  ;;  %v3632_v25 = vld [vmem:[#allocation2 + $0x94] sm:$0xf] }
 0x34c   : > { %3955 = vrot.lane.b32.xlu1 %v3876_v13, %s6763_s15  ;;  %v3888_v13 = vld [vmem:[#allocation2 + $0xa4] sm:$0xf] }
 0x34f   : > { %3216 = vrot.lane.b32.xlu0 %v3122_v42, %s6763_s15 }
 0x350   : > { %3218 = vrot.lane.b32.xlu1 %v3123_v58, %s6763_s15 }
 0x353   : > { %3469 = vrot.lane.b32.xlu0 %v3377_v11, %s6763_s15 }
 0x354   : > { %3214 = vrot.lane.b32.xlu1 %v3121_v38, %s6763_s15 }
 0x357   : > { %3473 = vrot.lane.b32.xlu0 %v3379_v30, %s6763_s15  ;;  %v3633_v30 = vld [vmem:[#allocation2 + $0x98] sm:$0xf] }
 0x358   : > { %3471 = vrot.lane.b32.xlu1 %v3378_v2, %s6763_s15  ;;  %v3827_v2 = vld [vmem:[#allocation2 + $0xa8] sm:$0xf] }
 0x359   : > { %3859 = vst.msk [vmem:[#allocation3 + $0x264] sm:$0xf] %vm2867_vm5, %v3827_v2 }
 0x35a   : > { %v3422_v36 = vpop.permute.xlu0 %3421 }
 0x35b   : > { %3701 = vrot.lane.b32.xlu0 %v3621_v33, %s6763_s15  ;;  %3513 = vst.msk [vmem:[#allocation3 + $0x54] sm:$0xf] %vm3252_vm6, %v3422_v36  ;;  %v6645_v33 = vld [vmem:[#allocation3 + $0xc8] ss:$20 sps:$4 sm:$0xff]   ;;  %v3635_v36 = vld [vmem:[#allocation2 + $0xa0] sm:$0xf] }
 0x35c   : > { %3475 = vrot.lane.b32.xlu1 %v3380_v55, %s6763_s15  ;;  %v6656_v55 = vld [vmem:[#allocation3 + $0x34] ss:$20 sps:$4 sm:$0xff]  }
 0x35e   : > { %v3466_v29 = vpop.permute.xlu0 %3465 }
 0x35f   : > { %3957 = vrot.lane.b32.xlu0 %v3877_v23, %s6763_s15  ;;  %v3424_v59 = vpop.permute.xlu1 %3423  ;;  %3535 = vst.msk [vmem:[#allocation3 + $0x20c] sm:$0xf] %vm3252_vm6, %v3466_v29  ;;  %v3889_v23 = vld [vmem:[#allocation2 + $0xa8] sm:$0xf] }
 0x360   : > { %3703 = vrot.lane.b32.xlu1 %v3622_v27, %s6763_s15  ;;  %3514 = vst.msk [vmem:[#allocation3 + $0x68] sm:$0xf] %vm3252_vm6, %v3424_v59  ;;  %v3890_v27 = vld [vmem:[#allocation2 + $0xac] sm:$0xf]  ;;  %v4079_v59 = vld [vmem:[#allocation2 + $0xa8] sm:$0xf] }
 0x361   : > { %4111 = vst.msk [vmem:[#allocation3 + $0x218] sm:$0xf] %vm2867_vm5, %v4079_v59 }
 0x362   : > { %v3173_v47 = vpop.permute.xlu0 %3172 }
 0x363   : > { %3705 = vrot.lane.b32.xlu0 %v3623_v52, %s6763_s15  ;;  %v3468_v62 = vpop.permute.xlu1 %3467  ;;  %3261 = vst.msk [vmem:[#allocation3 + $0xa0] sm:$0xf] %vm3252_vm6, %v3173_v47 }
 0x364   : > { %3959 = vrot.lane.b32.xlu1 %v3878_v1, %s6763_s15  ;;  %3536 = vst.msk [vmem:[#allocation3 + $0x220] sm:$0xf] %vm3252_vm6, %v3468_v62  ;;  %v3828_v1 = vld [vmem:[#allocation2 + $0xac] sm:$0xf]  ;;  %v3634_v62 = vld [vmem:[#allocation2 + $0x9c] sm:$0xf] }
 0x365   : > { %3860 = vst.msk [vmem:[#allocation3 + $0x278] sm:$0xf] %vm2867_vm5, %v3828_v1 }
 0x366   : > { %v3670_v49 = vpop.permute.xlu0 %3669 }
 0x367   : > { %3961 = vrot.lane.b32.xlu0 %v3879_v54, %s6763_s15  ;;  %v6628_v26 = vld [vmem:[#allocation3 + $0x54] ss:$20 sps:$4 sm:$0xff]   ;;  %3765 = vst.msk [vmem:[#allocation3 + $0x8] sm:$0xf] %vm3252_vm6, %v3670_v49  ;;  %v4077_v54 = vld [vmem:[#allocation2 + $0xa0] sm:$0xf] }
 0x368   : > { %3707 = vrot.lane.b32.xlu1 %v3624_v44, %s6763_s15  ;;  %v3175_v57 = vpop.permute.xlu1 %3174  ;;  %4998 = vmatprep.mubr.bf16.mxu0 %v6628_v26  ;;  %v6032_v18 = vpop.f32.mrf.mxu0  ;;  %v4078_v44 = vld [vmem:[#allocation2 + $0xa4] sm:$0xf]  ;;  %4109 = vst.msk [vmem:[#allocation3 + $0x1f0] sm:$0xf] %vm2867_vm5, %v4077_v54  ;;  %v6662_v49 = vld [vmem:[#allocation3 + $0x11c] ss:$20 sps:$4 sm:$0xff]  }
 0x369   : > { %3262 = vst.msk [vmem:[#allocation3 + $0xb4] sm:$0xf] %vm3252_vm6, %v3175_v57  ;;  %4999 = vmatmul.mubr.bf16.gmra.mxu0 %v6626_v46  ;;  %v3636_v57 = vld [vmem:[#allocation2 + $0xa4] sm:$0xf] }
 0x36a   : > { %v3430_v10 = vpop.permute.xlu0 %3429  ;;  %5006 = vmatprep.mubr.bf16.mxu0 %v6632_v39  ;;  %v6033_v20 = vpop.f32.mrf.mxu0  ;;  %4110 = vst.msk [vmem:[#allocation3 + $0x204] sm:$0xf] %vm2867_vm5, %v4078_v44 }
 0x36b   : > { %3709 = vrot.lane.b32.xlu0 %v3625_v17, %s6763_s15  ;;  %3517 = vst.msk [vmem:[#allocation3 + $0xa4] sm:$0xf] %vm3252_vm6, %v3430_v10  ;;  %v8141_v50 = vadd.f32 %v6033_v20, %v6032_v18  ;;  %v4081_v18 = vld [vmem:[#allocation2 + $0xb0] sm:$0xf]  ;;  %v4082_v20 = vld [vmem:[#allocation2 + $0xb4] sm:$0xf] }
 0x36c   : > { %3963 = vrot.lane.b32.xlu1 %v3880_v61, %s6763_s15  ;;  %v3672_v53 = vpop.permute.xlu1 %3671  ;;  %4113 = vst.msk [vmem:[#allocation3 + $0x240] sm:$0xf] %vm2867_vm5, %v4081_v18  ;;  %4114 = vst.msk [vmem:[#allocation3 + $0x254] sm:$0xf] %vm2867_vm5, %v4082_v20 }
 0x36d   : > { %3766 = vst.msk [vmem:[#allocation3 + $0x1c] sm:$0xf] %vm3252_vm6, %v3672_v53 }
 0x36f   : > { %3965 = vrot.lane.b32.xlu0 %v3881_v35, %s6763_s15  ;;  %v4080_v35 = vld [vmem:[#allocation2 + $0xac] sm:$0xf] }
 0x370   : > { %3711 = vrot.lane.b32.xlu1 %v3626_v51, %s6763_s15  ;;  %v3181_v3 = vpop.permute.xlu0 %3180  ;;  %v6641_v41 = vld [vmem:[#allocation3 + $0xa0] ss:$20 sps:$4 sm:$0xff]   ;;  %v6654_v51 = vld [vmem:[#allocation3 + $0x30] ss:$20 sps:$4 sm:$0xff]   ;;  %4112 = vst.msk [vmem:[#allocation3 + $0x22c] sm:$0xf] %vm2867_vm5, %v4080_v35 }
 0x371   : > { %v3432_v8 = vpop.permute.xlu1 %3431  ;;  %3265 = vst.msk [vmem:[#allocation3 + $0xf0] sm:$0xf] %vm3252_vm6, %v3181_v3  ;;  %5007 = vmatmul.mubr.bf16.gmra.mxu0 %v6630_v21  ;;  %v4083_v3 = vld [vmem:[#allocation2 + $0xb8] sm:$0xf] }
 0x372   : > { %3518 = vst.msk [vmem:[#allocation3 + $0xb8] sm:$0xf] %vm3252_vm6, %v3432_v8  ;;  %v6668_v8 = vld [vmem:[#allocation3 + $0x84] ss:$20 sps:$4 sm:$0xff]  }
 0x373   : > { %3713 = vrot.lane.b32.xlu0 %v3627_v34, %s6763_s15  ;;  %v3891_v34 = vld [vmem:[#allocation2 + $0xb0] sm:$0xf]  ;;  %4115 = vst.msk [vmem:[#allocation3 + $0x268] sm:$0xf] %vm2867_vm5, %v4083_v3 }
 0x374   : > { %3967 = vrot.lane.b32.xlu1 %v3882_v16, %s6763_s15  ;;  %v3926_v56 = vpop.permute.xlu0 %3925  ;;  %v6651_v38 = vld [vmem:[#allocation3 + $0x8] ss:$20 sps:$4 sm:$0xff]   ;;  %v3892_v16 = vld [vmem:[#allocation2 + $0xb4] sm:$0xf]  ;;  %v6707_v3 = vld [vmem:[#allocation3 + $0x10] ss:$20 sps:$4 sm:$0xff]  }
 0x375   : > { %4021 = vst.msk [vmem:[#allocation3 + $0xc] sm:$0xf] %vm3252_vm6, %v3926_v56 }
 0x377   : > { %3969 = vrot.lane.b32.xlu0 %v3883_v9, %s6763_s15 }
 0x378   : > { %3715 = vrot.lane.b32.xlu1 %v3628_v14, %s6763_s15  ;;  %v3183_v24 = vpop.permute.xlu1 %3182  ;;  %v6660_v14 = vld [vmem:[#allocation3 + $0x118] ss:$20 sps:$4 sm:$0xff]  }
 0x379   : > { %3266 = vst.msk [vmem:[#allocation3 + $0x104] sm:$0xf] %vm3252_vm6, %v3183_v24  ;;  %v6643_v40 = vld [vmem:[#allocation3 + $0xa4] ss:$20 sps:$4 sm:$0xff]  }
 0x37a   : > { %5014 = vmatprep.mubr.bf16.mxu0 %v6643_v40 }
 0x37b   : > { %3717 = vrot.lane.b32.xlu0 %v3629_v22, %s6763_s15  ;;  %v3678_v6 = vpop.permute.xlu0 %3677  ;;  %5015 = vmatmul.mubr.bf16.gmra.mxu0 %v6641_v41  ;;  %v4084_v22 = vld [vmem:[#allocation2 + $0xbc] sm:$0xf] }
 0x37c   : > { %3971 = vrot.lane.b32.xlu1 %v3884_v43, %s6763_s15  ;;  %3769 = vst.msk [vmem:[#allocation3 + $0x58] sm:$0xf] %vm3252_vm6, %v3678_v6  ;;  %5022 = vmatprep.mubr.bf16.mxu0 %v6647_v7  ;;  %v6675_v6 = vld [vmem:[#allocation3 + $0x16c] ss:$20 sps:$4 sm:$0xff]   ;;  %v6673_v7 = vld [vmem:[#allocation3 + $0x168] ss:$20 sps:$4 sm:$0xff]  }
 0x37d   : > { %4116 = vst.msk [vmem:[#allocation3 + $0x27c] sm:$0xf] %vm2867_vm5, %v4084_v22 }
 0x37f   : > { %3973 = vrot.lane.b32.xlu0 %v3885_v37, %s6763_s15 }
 0x380   : > { %3719 = vrot.lane.b32.xlu1 %v3630_v28, %s6763_s15  ;;  %v3928_v45 = vpop.permute.xlu1 %3927  ;;  %v6657_v61 = vld [vmem:[#allocation3 + $0xf0] ss:$20 sps:$4 sm:$0xff]  }
 0x381   : > { %4022 = vst.msk [vmem:[#allocation3 + $0x20] sm:$0xf] %vm3252_vm6, %v3928_v45 }
 0x383   : > { %3721 = vrot.lane.b32.xlu0 %v3631_v63, %s6763_s15  ;;  %5023 = vmatmul.mubr.bf16.gmra.mxu0 %v6645_v33 }
 0x384   : > { %3975 = vrot.lane.b32.xlu1 %v3886_v0, %s6763_s15  ;;  %v3680_v4 = vpop.permute.xlu1 %3679 }
 0x385   : > { %v3438_v19 = vpop.permute.xlu0 %3437  ;;  %3770 = vst.msk [vmem:[#allocation3 + $0x6c] sm:$0xf] %vm3252_vm6, %v3680_v4 }
 0x386   : > { %3521 = vst.msk [vmem:[#allocation3 + $0xf4] sm:$0xf] %vm3252_vm6, %v3438_v19 }
 0x387   : > { %3977 = vrot.lane.b32.xlu0 %v3887_v48, %s6763_s15  ;;  %v6681_v48 = vld [vmem:[#allocation3 + $0xd4] ss:$20 sps:$4 sm:$0xff]  }
 0x388   : > { %3723 = vrot.lane.b32.xlu1 %v3632_v25, %s6763_s15  ;;  %v6653_v11 = vld [vmem:[#allocation3 + $0xc] ss:$20 sps:$4 sm:$0xff]  }
 0x389   : > { %v3189_v42 = vpop.permute.xlu0 %3188  ;;  %5143 = vmatprep.mubr.bf16.mxu1 %v6653_v11  ;;  %v6687_v11 = vld [vmem:[#allocation3 + $0x1bc] ss:$20 sps:$4 sm:$0xff]  }
 0x38a   : > { %v3440_v58 = vpop.permute.xlu1 %3439  ;;  %3269 = vst.msk [vmem:[#allocation3 + $0x140] sm:$0xf] %vm3252_vm6, %v3189_v42  ;;  %5144 = vmatmul.mubr.bf16.vlgmr.msra.gmra.mxu1 %v6651_v38  ;;  %v6679_v38 = vld [vmem:[#allocation3 + $0xd0] ss:$20 sps:$4 sm:$0xff]  }
 0x38b   : > { %3522 = vst.msk [vmem:[#allocation3 + $0x108] sm:$0xf] %vm3252_vm6, %v3440_v58  ;;  %3725 = vrot.lane.b32.xlu0 %v3633_v30, %s6763_s15  ;;  %5151 = vmatprep.mubr.bf16.mxu1 %v6656_v55 }
 0x38c   : > { %3979 = vrot.lane.b32.xlu1 %v3888_v13, %s6763_s15  ;;  %v6663_v53 = vld [vmem:[#allocation3 + $0x58] ss:$20 sps:$4 sm:$0xff]  }
 0x38d   : > { %v3934_v5 = vpop.permute.xlu0 %3933 }
 0x38e   : > { %v3191_v52 = vpop.permute.xlu1 %3190  ;;  %4025 = vst.msk [vmem:[#allocation3 + $0x5c] sm:$0xf] %vm3252_vm6, %v3934_v5 }
 0x38f   : > { %3270 = vst.msk [vmem:[#allocation3 + $0x154] sm:$0xf] %vm3252_vm6, %v3191_v52  ;;  %3981 = vrot.lane.b32.xlu0 %v3889_v23, %s6763_s15  ;;  %v6685_v23 = vld [vmem:[#allocation3 + $0x1b8] ss:$20 sps:$4 sm:$0xff]  }
 0x390   : > { %3983 = vrot.lane.b32.xlu1 %v3890_v27, %s6763_s15 }
 0x391   : > { %v3686_v29 = vpop.permute.xlu0 %3685 }
 0x392   : > { %v3936_v17 = vpop.permute.xlu1 %3935  ;;  %v6659_v47 = vld [vmem:[#allocation3 + $0xf4] ss:$20 sps:$4 sm:$0xff]   ;;  %3773 = vst.msk [vmem:[#allocation3 + $0xa8] sm:$0xf] %vm3252_vm6, %v3686_v29  ;;  %5152 = vmatmul.mubr.bf16.gmra.mxu1 %v6654_v51  ;;  %v6697_v29 = vld [vmem:[#allocation3 + $0x20c] ss:$20 sps:$4 sm:$0xff]  }
 0x393   : > { %4026 = vst.msk [vmem:[#allocation3 + $0x70] sm:$0xf] %vm3252_vm6, %v3936_v17  ;;  %5030 = vmatprep.mubr.bf16.mxu0 %v6659_v47  ;;  %3729 = vrot.lane.b32.xlu0 %v3635_v36, %s6763_s15 }
 0x394   : > { %3727 = vrot.lane.b32.xlu1 %v3634_v62, %s6763_s15  ;;  %5031 = vmatmul.mubr.bf16.gmra.mxu0 %v6657_v61 }
 0x395   : > { %v3446_v46 = vpop.permute.xlu0 %3445  ;;  %5038 = vmatprep.mubr.bf16.mxu0 %v6662_v49  ;;  %v6695_v49 = vld [vmem:[#allocation3 + $0x208] ss:$20 sps:$4 sm:$0xff]  }
 0x396   : > { %v3688_v26 = vpop.permute.xlu1 %3687  ;;  %3525 = vst.msk [vmem:[#allocation3 + $0x144] sm:$0xf] %vm3252_vm6, %v3446_v46  ;;  %v6670_v28 = vld [vmem:[#allocation3 + $0x140] ss:$20 sps:$4 sm:$0xff]  }
 0x397   : > { %3774 = vst.msk [vmem:[#allocation3 + $0xbc] sm:$0xf] %vm3252_vm6, %v3688_v26  ;;  %3985 = vrot.lane.b32.xlu0 %v3891_v34, %s6763_s15 }
 0x398   : > { %3731 = vrot.lane.b32.xlu1 %v3636_v57, %s6763_s15 }
 0x399   : > { %v3197_v39 = vpop.permute.xlu0 %3196 }
 0x39a   : > { %v3448_v10 = vpop.permute.xlu1 %3447  ;;  %v6665_v9 = vld [vmem:[#allocation3 + $0x5c] ss:$20 sps:$4 sm:$0xff]   ;;  %3273 = vst.msk [vmem:[#allocation3 + $0x190] sm:$0xf] %vm3252_vm6, %v3197_v39 }
 0x39b   : > { %3526 = vst.msk [vmem:[#allocation3 + $0x158] sm:$0xf] %vm3252_vm6, %v3448_v10  ;;  %5159 = vmatprep.mubr.bf16.mxu1 %v6665_v9 }
 0x39c   : > { %3987 = vrot.lane.b32.xlu1 %v3892_v16, %s6763_s15  ;;  %5039 = vmatmul.mubr.bf16.gmra.mxu0 %v6660_v14 }
 0x39d   : > { %v3942_v43 = vpop.permute.xlu0 %3941  ;;  %5160 = vmatmul.mubr.bf16.gmra.mxu1 %v6663_v53 }
 0x39e   : > { %v3199_v21 = vpop.permute.xlu1 %3198  ;;  %4029 = vst.msk [vmem:[#allocation3 + $0xac] sm:$0xf] %vm3252_vm6, %v3942_v43  ;;  %5167 = vmatprep.mubr.bf16.mxu1 %v6668_v8  ;;  %v6676_v0 = vld [vmem:[#allocation3 + $0xa8] ss:$20 sps:$4 sm:$0xff]  }
 0x39f   : > { %3274 = vst.msk [vmem:[#allocation3 + $0x1a4] sm:$0xf] %vm3252_vm6, %v3199_v21 }
 0x3a1   : > { %v3694_v56 = vpop.permute.xlu0 %3693 }
 0x3a2   : > { %v3944_v24 = vpop.permute.xlu1 %3943  ;;  %v6672_v37 = vld [vmem:[#allocation3 + $0x144] ss:$20 sps:$4 sm:$0xff]   ;;  %3777 = vst.msk [vmem:[#allocation3 + $0xf8] sm:$0xf] %vm3252_vm6, %v3694_v56 }
 0x3a3   : > { %4030 = vst.msk [vmem:[#allocation3 + $0xc0] sm:$0xf] %vm3252_vm6, %v3944_v24  ;;  %5046 = vmatprep.mubr.bf16.mxu0 %v6672_v37  ;;  %v6713_v37 = vld [vmem:[#allocation3 + $0x60] ss:$20 sps:$4 sm:$0xff]  }
 0x3a4   : > { %5047 = vmatmul.mubr.bf16.gmra.mxu0 %v6670_v28  ;;  %v6712_v28 = vld [vmem:[#allocation3 + $0x38] ss:$20 sps:$4 sm:$0xff]  }
 0x3a5   : > { %v3454_v45 = vpop.permute.xlu0 %3453  ;;  %5168 = vmatmul.mubr.bf16.gmra.mxu1 %v6666_v12  ;;  %5054 = vmatprep.mubr.bf16.mxu0 %v6675_v6 }
 0x3a6   : > { %v3696_v41 = vpop.permute.xlu1 %3695  ;;  %3529 = vst.msk [vmem:[#allocation3 + $0x194] sm:$0xf] %vm3252_vm6, %v3454_v45  ;;  %v6682_v42 = vld [vmem:[#allocation3 + $0x190] ss:$20 sps:$4 sm:$0xff]  }
 0x3a7   : > { %3778 = vst.msk [vmem:[#allocation3 + $0x10c] sm:$0xf] %vm3252_vm6, %v3696_v41 }
 0x3a9   : > { %v3698_v40 = vpop.permute.xlu0 %3697 }
 0x3aa   : > { %v3456_v63 = vpop.permute.xlu1 %3455  ;;  %v6678_v32 = vld [vmem:[#allocation3 + $0xac] ss:$20 sps:$4 sm:$0xff]   ;;  %3779 = vst.msk [vmem:[#allocation3 + $0x120] sm:$0xf] %vm3252_vm6, %v3698_v40 }
 0x3ab   : > { %3530 = vst.msk [vmem:[#allocation3 + $0x1a8] sm:$0xf] %vm3252_vm6, %v3456_v63  ;;  %5175 = vmatprep.mubr.bf16.mxu1 %v6678_v32  ;;  %v6718_v32 = vld [vmem:[#allocation3 + $0xb0] ss:$20 sps:$4 sm:$0xff]  }
 0x3ac   : > { %5055 = vmatmul.mubr.bf16.gmra.mxu0 %v6673_v7 }
 0x3ad   : > { %v3205_v19 = vpop.permute.xlu0 %3204  ;;  %5176 = vmatmul.mubr.bf16.gmra.mxu1 %v6676_v0  ;;  %v6717_v0 = vld [vmem:[#allocation3 + $0x88] ss:$20 sps:$4 sm:$0xff]  }
 0x3ae   : > { %v3700_v4 = vpop.permute.xlu1 %3699  ;;  %3277 = vst.msk [vmem:[#allocation3 + $0x1e0] sm:$0xf] %vm3252_vm6, %v3205_v19  ;;  %5183 = vmatprep.mubr.bf16.mxu1 %v6681_v48  ;;  %v6688_v52 = vld [vmem:[#allocation3 + $0xf8] ss:$20 sps:$4 sm:$0xff]  }
 0x3af   : > { %3780 = vst.msk [vmem:[#allocation3 + $0x134] sm:$0xf] %vm3252_vm6, %v3700_v4 }
 0x3b1   : > { %v3950_v25 = vpop.permute.xlu0 %3949 }
 0x3b2   : > { %v3207_v13 = vpop.permute.xlu1 %3206  ;;  %v6684_v58 = vld [vmem:[#allocation3 + $0x194] ss:$20 sps:$4 sm:$0xff]   ;;  %4033 = vst.msk [vmem:[#allocation3 + $0xfc] sm:$0xf] %vm3252_vm6, %v3950_v25 }
 0x3b3   : > { %3278 = vst.msk [vmem:[#allocation3 + $0x1f4] sm:$0xf] %vm3252_vm6, %v3207_v13  ;;  %5062 = vmatprep.mubr.bf16.mxu0 %v6684_v58  ;;  %v6723_v58 = vld [vmem:[#allocation3 + $0x100] ss:$20 sps:$4 sm:$0xff]  }
 0x3b4   : > { %5063 = vmatmul.mubr.bf16.gmra.mxu0 %v6682_v42  ;;  %v6722_v42 = vld [vmem:[#allocation3 + $0xd8] ss:$20 sps:$4 sm:$0xff]  }
 0x3b5   : > { %5184 = vmatmul.mubr.bf16.gmra.mxu1 %v6679_v38  ;;  %v3462_v2 = vpop.permute.xlu0 %3461  ;;  %5070 = vmatprep.mubr.bf16.mxu0 %v6687_v11 }
 0x3b6   : > { %v3952_v30 = vpop.permute.xlu1 %3951  ;;  %3533 = vst.msk [vmem:[#allocation3 + $0x1e4] sm:$0xf] %vm3252_vm6, %v3462_v2  ;;  %v6698_v47 = vld [vmem:[#allocation3 + $0x120] ss:$20 sps:$4 sm:$0xff]  }
 0x3b7   : > { %4034 = vst.msk [vmem:[#allocation3 + $0x110] sm:$0xf] %vm3252_vm6, %v3952_v30 }
 0x3b9   : > { %v3954_v33 = vpop.permute.xlu0 %3953 }
 0x3ba   : > { %v3464_v55 = vpop.permute.xlu1 %3463  ;;  %4035 = vst.msk [vmem:[#allocation3 + $0x124] sm:$0xf] %vm3252_vm6, %v3954_v33  ;;  %v6692_v44 = vld [vmem:[#allocation3 + $0x1e0] ss:$20 sps:$4 sm:$0xff]  }
 0x3bb   : > { %3534 = vst.msk [vmem:[#allocation3 + $0x1f8] sm:$0xf] %vm3252_vm6, %v3464_v55 }
 0x3bc   : > { %5071 = vmatmul.mubr.bf16.gmra.mxu0 %v6685_v23  ;;  %v6727_v23 = vld [vmem:[#allocation3 + $0x128] ss:$20 sps:$4 sm:$0xff]  }
 0x3bd   : > { %v3213_v27 = vpop.permute.xlu0 %3212 }
 0x3be   : > { %v3956_v5 = vpop.permute.xlu1 %3955  ;;  %v6690_v1 = vld [vmem:[#allocation3 + $0xfc] ss:$20 sps:$4 sm:$0xff]   ;;  %3281 = vst.msk [vmem:[#allocation3 + $0x230] sm:$0xf] %vm3252_vm6, %v3213_v27 }
 0x3bf   : > { %4036 = vst.msk [vmem:[#allocation3 + $0x138] sm:$0xf] %vm3252_vm6, %v3956_v5  ;;  %5191 = vmatprep.mubr.bf16.mxu1 %v6690_v1  ;;  %v6728_v27 = vld [vmem:[#allocation3 + $0x150] ss:$20 sps:$4 sm:$0xff]  }
 0x3c0   : > { %5192 = vmatmul.mubr.bf16.gmra.mxu1 %v6688_v52 }
 0x3c1   : > { %v3217_v36 = vpop.permute.xlu0 %3216 }
 0x3c2   : > { %v3219_v54 = vpop.permute.xlu1 %3218  ;;  %v6694_v59 = vld [vmem:[#allocation3 + $0x1e4] ss:$20 sps:$4 sm:$0xff]   ;;  %3283 = vst.msk [vmem:[#allocation3 + $0x258] sm:$0xf] %vm3252_vm6, %v3217_v36 }
 0x3c3   : > { %3284 = vst.msk [vmem:[#allocation3 + $0x26c] sm:$0xf] %vm3252_vm6, %v3219_v54  ;;  %5078 = vmatprep.mubr.bf16.mxu0 %v6694_v59  ;;  %v6732_v59 = vld [vmem:[#allocation3 + $0x178] ss:$20 sps:$4 sm:$0xff]  }
 0x3c4   : > { %5079 = vmatmul.mubr.bf16.gmra.mxu0 %v6692_v44 }
 0x3c5   : > { %v3470_v61 = vpop.permute.xlu0 %3469  ;;  %5086 = vmatprep.mubr.bf16.mxu0 %v6697_v29  ;;  %v6733_v29 = vld [vmem:[#allocation3 + $0x1a0] ss:$20 sps:$4 sm:$0xff]  }
 0x3c6   : > { %v3215_v17 = vpop.permute.xlu1 %3214  ;;  %v6700_v62 = vld [vmem:[#allocation3 + $0x124] ss:$20 sps:$4 sm:$0xff]   ;;  %3537 = vst.msk [vmem:[#allocation3 + $0x234] sm:$0xf] %vm3252_vm6, %v3470_v61 }
 0x3c7   : > { %3282 = vst.msk [vmem:[#allocation3 + $0x244] sm:$0xf] %vm3252_vm6, %v3215_v17  ;;  %5199 = vmatprep.mubr.bf16.mxu1 %v6700_v62 }
 0x3c8   : > { %5200 = vmatmul.mubr.bf16.gmra.mxu1 %v6698_v47 }
 0x3c9   : > { %v3474_v35 = vpop.permute.xlu0 %3473 }
 0x3ca   : > { %v3472_v51 = vpop.permute.xlu1 %3471  ;;  %3539 = vst.msk [vmem:[#allocation3 + $0x25c] sm:$0xf] %vm3252_vm6, %v3474_v35  ;;  %v6704_v20 = vld [vmem:[#allocation3 + $0x258] ss:$20 sps:$4 sm:$0xff]  }
 0x3cb   : > { %3538 = vst.msk [vmem:[#allocation3 + $0x248] sm:$0xf] %vm3252_vm6, %v3472_v51 }
 0x3cc   : > { %5087 = vmatmul.mubr.bf16.gmra.mxu0 %v6695_v49  ;;  %v6741_v49 = vld [vmem:[#allocation3 + $0x1f0] ss:$20 sps:$4 sm:$0xff]  }
 0x3cd   : > { %v3702_v57 = vpop.permute.xlu0 %3701 }
 0x3ce   : > { %v3476_v46 = vpop.permute.xlu1 %3475  ;;  %3781 = vst.msk [vmem:[#allocation3 + $0x148] sm:$0xf] %vm3252_vm6, %v3702_v57  ;;  %v6701_v16 = vld [vmem:[#allocation3 + $0x230] ss:$20 sps:$4 sm:$0xff]   ;;  %v6737_v57 = vld [vmem:[#allocation3 + $0x1c8] ss:$20 sps:$4 sm:$0xff]  }
 0x3cf   : > { %3540 = vst.msk [vmem:[#allocation3 + $0x270] sm:$0xf] %vm3252_vm6, %v3476_v46 }
 0x3d1   : > { %v3958_v26 = vpop.permute.xlu0 %3957 }
 0x3d2   : > { %v3704_v34 = vpop.permute.xlu1 %3703  ;;  %v6703_v39 = vld [vmem:[#allocation3 + $0x234] ss:$20 sps:$4 sm:$0xff]   ;;  %4037 = vst.msk [vmem:[#allocation3 + $0x14c] sm:$0xf] %vm3252_vm6, %v3958_v26 }
 0x3d3   : > { %3782 = vst.msk [vmem:[#allocation3 + $0x15c] sm:$0xf] %vm3252_vm6, %v3704_v34  ;;  %5094 = vmatprep.mubr.bf16.mxu0 %v6703_v39  ;;  %v6746_v39 = vld [vmem:[#allocation3 + $0x240] ss:$20 sps:$4 sm:$0xff]  }
 0x3d4   : > { %5095 = vmatmul.mubr.bf16.gmra.mxu0 %v6701_v16  ;;  %v6742_v16 = vld [vmem:[#allocation3 + $0x218] ss:$20 sps:$4 sm:$0xff]  }
 0x3d5   : > { %v3706_v10 = vpop.permute.xlu0 %3705 }
 0x3d6   : > { %v3960_v53 = vpop.permute.xlu1 %3959  ;;  %v6706_v9 = vld [vmem:[#allocation3 + $0x25c] ss:$20 sps:$4 sm:$0xff]   ;;  %3783 = vst.msk [vmem:[#allocation3 + $0x170] sm:$0xf] %vm3252_vm6, %v3706_v10 }
 0x3d7   : > { %4038 = vst.msk [vmem:[#allocation3 + $0x160] sm:$0xf] %vm3252_vm6, %v3960_v53  ;;  %5102 = vmatprep.mubr.bf16.mxu0 %v6706_v9  ;;  %v6747_v9 = vld [vmem:[#allocation3 + $0x268] ss:$20 sps:$4 sm:$0xff]  }
 0x3d9   : > { %v3962_v14 = vpop.permute.xlu0 %3961 }
 0x3da   : > { %v3708_v18 = vpop.permute.xlu1 %3707  ;;  %4039 = vst.msk [vmem:[#allocation3 + $0x174] sm:$0xf] %vm3252_vm6, %v3962_v14  ;;  %v6708_v43 = vld [vmem:[#allocation3 + $0x148] ss:$20 sps:$4 sm:$0xff]   ;;  %v8263_v14 = vpop.f32.mrf.mxu0 }
 0x3db   : > { %3784 = vst.msk [vmem:[#allocation3 + $0x184] sm:$0xf] %vm3252_vm6, %v3708_v18 }
 0x3dc   : > { %5103 = vmatmul.mubr.bf16.gmra.mxu0 %v6704_v20  ;;  %v8265_v18 = vpop.f32.mrf.mxu0 }
 0x3dd   : > { %v3710_v8 = vpop.permute.xlu0 %3709  ;;  %6550 = vmatprep.mubr.msk.bf16.mxu0 %vm4901_vm7, %v6707_v3 }
 0x3de   : > { %v3964_v22 = vpop.permute.xlu1 %3963  ;;  %v6710_v21 = vld [vmem:[#allocation3 + $0x14c] ss:$20 sps:$4 sm:$0xff]   ;;  %3785 = vst.msk [vmem:[#allocation3 + $0x198] sm:$0xf] %vm3252_vm6, %v3710_v8 }
 0x3df   : > { %4040 = vst.msk [vmem:[#allocation3 + $0x188] sm:$0xf] %vm3252_vm6, %v3964_v22  ;;  %5207 = vmatprep.mubr.bf16.mxu1 %v6710_v21 }
 0x3e0   : > { %5208 = vmatmul.mubr.bf16.gmra.mxu1 %v6708_v43 }
 0x3e1   : > { %v3966_v56 = vpop.permute.xlu0 %3965 }
 0x3e2   : > { %v3712_v24 = vpop.permute.xlu1 %3711  ;;  %4041 = vst.msk [vmem:[#allocation3 + $0x19c] sm:$0xf] %vm3252_vm6, %v3966_v56  ;;  %v6714_v45 = vld [vmem:[#allocation3 + $0x170] ss:$20 sps:$4 sm:$0xff]  }
 0x3e3   : > { %3786 = vst.msk [vmem:[#allocation3 + $0x1ac] sm:$0xf] %vm3252_vm6, %v3712_v24 }
 0x3e4   : > { %6551 = vmatmul.mubr.msk.bf16.vlgmr.msra.gmra.mxu0 %vm4901_vm7, %v6712_v28 }
 0x3e5   : > { %v3714_v12 = vpop.permute.xlu0 %3713  ;;  %6554 = vmatprep.mubr.msk.bf16.mxu0 %vm4901_vm7, %v6713_v37 }
 0x3e6   : > { %v3968_v6 = vpop.permute.xlu1 %3967  ;;  %v6716_v41 = vld [vmem:[#allocation3 + $0x174] ss:$20 sps:$4 sm:$0xff]   ;;  %3787 = vst.msk [vmem:[#allocation3 + $0x1c0] sm:$0xf] %vm3252_vm6, %v3714_v12 }
 0x3e7   : > { %4042 = vst.msk [vmem:[#allocation3 + $0x1b0] sm:$0xf] %vm3252_vm6, %v3968_v6  ;;  %5215 = vmatprep.mubr.bf16.mxu1 %v6716_v41 }
 0x3e8   : > { %5216 = vmatmul.mubr.bf16.gmra.mxu1 %v6714_v45 }
 0x3e9   : > { %v3970_v40 = vpop.permute.xlu0 %3969 }
 0x3ea   : > { %v3716_v63 = vpop.permute.xlu1 %3715  ;;  %4043 = vst.msk [vmem:[#allocation3 + $0x1c4] sm:$0xf] %vm3252_vm6, %v3970_v40  ;;  %v6719_v19 = vld [vmem:[#allocation3 + $0x198] ss:$20 sps:$4 sm:$0xff]  }
 0x3eb   : > { %3788 = vst.msk [vmem:[#allocation3 + $0x1d4] sm:$0xf] %vm3252_vm6, %v3716_v63 }
 0x3ec   : > { %6555 = vmatmul.mubr.msk.bf16.gmra.mxu0 %vm4901_vm7, %v6717_v0 }
 0x3ed   : > { %v3718_v7 = vpop.permute.xlu0 %3717  ;;  %6558 = vmatprep.mubr.msk.bf16.mxu0 %vm4901_vm7, %v6718_v32 }
 0x3ee   : > { %v3972_v48 = vpop.permute.xlu1 %3971  ;;  %v6721_v4 = vld [vmem:[#allocation3 + $0x19c] ss:$20 sps:$4 sm:$0xff]   ;;  %3789 = vst.msk [vmem:[#allocation3 + $0x1e8] sm:$0xf] %vm3252_vm6, %v3718_v7 }
 0x3ef   : > { %4044 = vst.msk [vmem:[#allocation3 + $0x1d8] sm:$0xf] %vm3252_vm6, %v3972_v48  ;;  %5223 = vmatprep.mubr.bf16.mxu1 %v6721_v4 }
 0x3f0   : > { %5224 = vmatmul.mubr.bf16.gmra.mxu1 %v6719_v19 }
 0x3f1   : > { %v3974_v13 = vpop.permute.xlu0 %3973 }
 0x3f2   : > { %v3720_v25 = vpop.permute.xlu1 %3719  ;;  %4045 = vst.msk [vmem:[#allocation3 + $0x1ec] sm:$0xf] %vm3252_vm6, %v3974_v13  ;;  %v6724_v30 = vld [vmem:[#allocation3 + $0x1c0] ss:$20 sps:$4 sm:$0xff]  }
 0x3f3   : > { %3790 = vst.msk [vmem:[#allocation3 + $0x1fc] sm:$0xf] %vm3252_vm6, %v3720_v25 }
 0x3f4   : > { %6559 = vmatmul.mubr.msk.bf16.gmra.mxu0 %vm4901_vm7, %v6722_v42 }
 0x3f5   : > { %v3722_v38 = vpop.permute.xlu0 %3721  ;;  %6562 = vmatprep.mubr.msk.bf16.mxu0 %vm4901_vm7, %v6723_v58 }
 0x3f6   : > { %v3976_v11 = vpop.permute.xlu1 %3975  ;;  %v6726_v2 = vld [vmem:[#allocation3 + $0x1c4] ss:$20 sps:$4 sm:$0xff]   ;;  %3791 = vst.msk [vmem:[#allocation3 + $0x210] sm:$0xf] %vm3252_vm6, %v3722_v38 }
 0x3f7   : > { %4046 = vst.msk [vmem:[#allocation3 + $0x200] sm:$0xf] %vm3252_vm6, %v3976_v11  ;;  %5231 = vmatprep.mubr.bf16.mxu1 %v6726_v2  ;;  %v6031_v2 = vadd.f32 %v8133_v31, %v8127_v15 }
 0x3f8   : > { %5232 = vmatmul.mubr.bf16.gmra.mxu1 %v6724_v30 }
 0x3f9   : > { %v3978_v33 = vpop.permute.xlu0 %3977 }
 0x3fa   : > { %v3724_v55 = vpop.permute.xlu1 %3723  ;;  %4047 = vst.msk [vmem:[#allocation3 + $0x214] sm:$0xf] %vm3252_vm6, %v3978_v33  ;;  %v6729_v1 = vld [vmem:[#allocation3 + $0x1e8] ss:$20 sps:$4 sm:$0xff]  }
 0x3fb   : > { %3792 = vst.msk [vmem:[#allocation3 + $0x224] sm:$0xf] %vm3252_vm6, %v3724_v55 }
 0x3fc   : > { %6563 = vmatmul.mubr.msk.bf16.gmra.mxu0 %vm4901_vm7, %v6727_v23 }
 0x3fd   : > { %v3726_v5 = vpop.permute.xlu0 %3725  ;;  %6566 = vmatprep.mubr.msk.bf16.mxu0 %vm4901_vm7, %v6728_v27 }
 0x3fe   : > { %v3980_v52 = vpop.permute.xlu1 %3979  ;;  %v6731_v36 = vld [vmem:[#allocation3 + $0x1ec] ss:$20 sps:$4 sm:$0xff]   ;;  %3793 = vst.msk [vmem:[#allocation3 + $0x238] sm:$0xf] %vm3252_vm6, %v3726_v5 }
 0x3ff   : > { %4048 = vst.msk [vmem:[#allocation3 + $0x228] sm:$0xf] %vm3252_vm6, %v3980_v52  ;;  %5239 = vmatprep.mubr.bf16.mxu1 %v6731_v36 }
 0x400   : > { %5240 = vmatmul.mubr.bf16.gmra.mxu1 %v6729_v1 }
 0x401   : > { %v3982_v54 = vpop.permute.xlu0 %3981 }
 0x402   : > { %v3984_v44 = vpop.permute.xlu1 %3983  ;;  %4049 = vst.msk [vmem:[#allocation3 + $0x23c] sm:$0xf] %vm3252_vm6, %v3982_v54  ;;  %v6734_v61 = vld [vmem:[#allocation3 + $0x210] ss:$20 sps:$4 sm:$0xff]  }
 0x403   : > { %4050 = vst.msk [vmem:[#allocation3 + $0x250] sm:$0xf] %vm3252_vm6, %v3984_v44 }
 0x404   : > { %6567 = vmatmul.mubr.msk.bf16.gmra.mxu0 %vm4901_vm7, %v6732_v59 }
 0x405   : > { %6570 = vmatprep.mubr.msk.bf16.mxu0 %vm4901_vm7, %v6733_v29  ;;  %v3730_v62 = vpop.permute.xlu0 %3729 }
 0x406   : > { %v3728_v17 = vpop.permute.xlu1 %3727  ;;  %v6736_v47 = vld [vmem:[#allocation3 + $0x214] ss:$20 sps:$4 sm:$0xff]   ;;  %3795 = vst.msk [vmem:[#allocation3 + $0x260] sm:$0xf] %vm3252_vm6, %v3730_v62 }
 0x407   : > { %3794 = vst.msk [vmem:[#allocation3 + $0x24c] sm:$0xf] %vm3252_vm6, %v3728_v17  ;;  %5247 = vmatprep.mubr.bf16.mxu1 %v6736_v47 }
 0x408   : > { %5248 = vmatmul.mubr.bf16.gmra.mxu1 %v6734_v61 }
 0x409   : > { %v3986_v51 = vpop.permute.xlu0 %3985 }
 0x40a   : > { %v3732_v35 = vpop.permute.xlu1 %3731  ;;  %4051 = vst.msk [vmem:[#allocation3 + $0x264] sm:$0xf] %vm3252_vm6, %v3986_v51  ;;  %v6740_v34 = vld [vmem:[#allocation3 + $0x23c] ss:$20 sps:$4 sm:$0xff]  }
 0x40b   : > { %3796 = vst.msk [vmem:[#allocation3 + $0x274] sm:$0xf] %vm3252_vm6, %v3732_v35  ;;  %5255 = vmatprep.mubr.bf16.mxu1 %v6740_v34 }
 0x40c   : > { %6571 = vmatmul.mubr.msk.bf16.gmra.mxu0 %vm4901_vm7, %v6737_v57 }
 0x40d   : > { %6574 = vmatprep.mubr.msk.bf16.mxu0 %vm4901_vm7, %v6741_v49 }
 0x40e   : > { %v3988_v46 = vpop.permute.xlu1 %3987  ;;  %v6738_v26 = vld [vmem:[#allocation3 + $0x238] ss:$20 sps:$4 sm:$0xff]  }
 0x40f   : > { %4052 = vst.msk [vmem:[#allocation3 + $0x278] sm:$0xf] %vm3252_vm6, %v3988_v46 }
 0x410   : > { %5256 = vmatmul.mubr.bf16.gmra.mxu1 %v6738_v26 }
 0x412   : > { %v6743_v10 = vld [vmem:[#allocation3 + $0x260] ss:$20 sps:$4 sm:$0xff]  }
 0x414   : > { %6575 = vmatmul.mubr.msk.bf16.gmra.mxu0 %vm4901_vm7, %v6742_v16 }
 0x415   : > { %6578 = vmatprep.mubr.msk.bf16.mxu0 %vm4901_vm7, %v6746_v39 }
 0x416   : > { %v6745_v53 = vld [vmem:[#allocation3 + $0x264] ss:$20 sps:$4 sm:$0xff]  }
 0x417   : > { %5263 = vmatprep.mubr.bf16.mxu1 %v6745_v53 }
 0x418   : > { %5264 = vmatmul.mubr.bf16.gmra.mxu1 %v6743_v10 }
 0x41c   : > { %6579 = vmatmul.mubr.msk.bf16.gmra.mxu0 %vm4901_vm7, %v6747_v9 }
 0x429   : > { %v6038_v20 = vpop.f32.mrf.mxu0 }
 0x42b   : > { %v6039_v3 = vpop.f32.mrf.mxu0 }
 0x42c   : > { %v8267_v8 = vadd.f32 %v6039_v3, %v6038_v20 }
 0x42d   : > { %v6041_v22 = vpop.f32.mrf.mxu0 }
 0x42f   : > { %v6042_v43 = vpop.f32.mrf.mxu0 }
 0x430   : > { %v8269_v21 = vadd.f32 %v6042_v43, %v6041_v22 }
 0x431   : > { %v6044_v56 = vpop.f32.mrf.mxu0 }
 0x433   : > { %v6045_v24 = vpop.f32.mrf.mxu0 }
 0x434   : > { %v8271_v28 = vadd.f32 %v6045_v24, %v6044_v56 }
 0x435   : > { %v6047_v37 = vpop.f32.mrf.mxu0 }
 0x437   : > { %v6048_v12 = vpop.f32.mrf.mxu0 }
 0x438   : > { %v8273_v6 = vadd.f32 %v6048_v12, %v6047_v37 }
 0x43b   : > { %v6050_v45 = vpop.f32.mrf.mxu0 }
 0x43d   : > { %v6051_v41 = vpop.f32.mrf.mxu0 }
 0x43e   : > { %v8275_v40 = vadd.f32 %v6051_v41, %v6050_v45 }
 0x43f   : > { %v6053_v63 = vpop.f32.mrf.mxu0 }
 0x441   : > { %v6054_v0 = vpop.f32.mrf.mxu0 }
 0x442   : > { %v8277_v32 = vadd.f32 %v6054_v0, %v6053_v63 }
 0x443   : > { %v6056_v7 = vpop.f32.mrf.mxu0 }
 0x445   : > { %v6057_v19 = vpop.f32.mrf.mxu0 }
 0x446   : > { %v8279_v25 = vadd.f32 %v6057_v19, %v6056_v7 }
 0x447   : > { %v6059_v42 = vpop.f32.mrf.mxu0 }
 0x449   : > { %v6060_v11 = vpop.f32.mrf.mxu0 }
 0x44a   : > { %v6138_v48 = vpop.f32.mrf.mxu1  ;;  %v8286_v33 = vadd.f32 %v6060_v11, %v6059_v42 }
 0x44c   : > { %v6139_v4 = vpop.f32.mrf.mxu1 }
 0x44d   : > { %v6140_v13 = vadd.f32 %v6139_v4, %v6138_v48 }
 0x44e   : > { %v6141_v58 = vpop.f32.mrf.mxu1 }
 0x44f   : > { %v8282_v38 = vadd.f32 %v6140_v13, %v7920_v60 }
 0x450   : > { %v6142_v30 = vpop.f32.mrf.mxu1 }
 0x451   : > { %v6143_v55 = vadd.f32 %v6142_v30, %v6141_v58 }
 0x452   : > { %v8288_v27 = vpop.f32.mrf.mxu1 }
 0x453   : > { %v8290_v5 = vadd.f32 %v6143_v55, %v6031_v2 }
 0x454   : > { %v6062_v23 = vpop.f32.mrf.mxu0  ;;  %v8292_v1 = vpop.f32.mrf.mxu1 }
 0x456   : > { %v6063_v52 = vpop.f32.mrf.mxu0  ;;  %v8296_v54 = vpop.f32.mrf.mxu1 }
 0x457   : > { %v8294_v36 = vadd.f32 %v6063_v52, %v6062_v23 }
 0x458   : > { %v6065_v60 = vpop.f32.mrf.mxu0  ;;  %v8298_v59 = vpop.f32.mrf.mxu1 }
 0x45a   : > { %v6066_v44 = vpop.f32.mrf.mxu0 }
 0x45b   : > { %v8300_v15 = vadd.f32 %v6066_v44, %v6065_v60 }
 0x45c   : > { %v6068_v31 = vpop.f32.mrf.mxu0 }
 0x45d   : > { %v8302_v29 = vpop.f32.mrf.mxu1 }
 0x45e   : > { %v6069_v17 = vpop.f32.mrf.mxu0 }
 0x45f   : > { %v8304_v61 = vpop.f32.mrf.mxu1  ;;  %v8306_v47 = vadd.f32 %v6069_v17, %v6068_v31 }
 0x460   : > { %v6071_v62 = vpop.f32.mrf.mxu0 }
 0x461   : > { %v8308_v35 = vpop.f32.mrf.mxu1 }
 0x462   : > { %v6072_v51 = vpop.f32.mrf.mxu0 }
 0x463   : > { %v8310_v49 = vpop.f32.mrf.mxu1  ;;  %v8312_v57 = vadd.f32 %v6072_v51, %v6071_v62 }
 0x464   : > { %v6074_v46 = vpop.f32.mrf.mxu0 }
 0x465   : > { %v8314_v26 = vpop.f32.mrf.mxu1 }
 0x466   : > { %v6075_v34 = vpop.f32.mrf.mxu0 }
 0x467   : > { %v8316_v16 = vpop.f32.mrf.mxu1  ;;  %v8318_v39 = vadd.f32 %v6075_v34, %v6074_v46 }
 0x468   : > { %v6077_v10 = vpop.f32.mrf.mxu0 }
 0x469   : > { %v8320_v53 = vpop.f32.mrf.mxu1 }
 0x46a   : > { %v6078_v9 = vpop.f32.mrf.mxu0 }
 0x46b   : > { %v8322_v20 = vpop.f32.mrf.mxu1  ;;  %v8324_v3 = vadd.f32 %v6078_v9, %v6077_v10 }
 0x46c   : > { %v6080_v22 = vpop.f32.mrf.mxu0 }
 0x46d   : > { %v8326_v43 = vpop.f32.mrf.mxu1 }
 0x46e   : > { %v6081_v56 = vpop.f32.mrf.mxu0 }
 0x46f   : > { %v8328_v24 = vpop.f32.mrf.mxu1  ;;  %v8330_v37 = vadd.f32 %v6081_v56, %v6080_v22 }
 0x470   : > { %v6083_v12 = vpop.f32.mrf.mxu0 }
 0x471   : > { %v8332_v45 = vpop.f32.mrf.mxu1 }
 0x472   : > { %v6084_v41 = vpop.f32.mrf.mxu0 }
 0x473   : > { %v8334_v63 = vpop.f32.mrf.mxu1  ;;  %v8336_v0 = vadd.f32 %v6084_v41, %v6083_v12 }
 0x474   : > { %v6086_v7 = vpop.f32.mrf.mxu0 }
 0x475   : > { %v8338_v48 = vpop.f32.mrf.mxu1 }
 0x476   : > { %v6087_v19 = vpop.f32.mrf.mxu0 }
 0x477   : > { %v8340_v4 = vadd.f32 %v6087_v19, %v6086_v7  ;;  %v8342_v13 = vpop.f32.mrf.mxu1 }
 0x478   : > { %v6089_v42 = vpop.f32.mrf.mxu0 }
 0x479   : > { %v8344_v11 = vpop.f32.mrf.mxu1 }
 0x47a   : > { %v6090_v58 = vpop.f32.mrf.mxu0 }
 0x47b   : > { %v8346_v30 = vadd.f32 %v6090_v58, %v6089_v42  ;;  %v8348_v23 = vpop.f32.mrf.mxu1 }
 0x47c   : > { %v6092_v2 = vpop.f32.mrf.mxu0 }
 0x47d   : > { %8664 = vst [vmem:[#allocation4_spill] sm:$0xff] %v8346_v30 }
 0x47e   : > { %v6093_v55 = vpop.f32.mrf.mxu0 }
 0x47f   : > { %v8350_v52 = vadd.f32 %v6093_v55, %v6092_v2 }
 0x480   : > { %v6095_v60 = vpop.f32.mrf.mxu0  ;;  %v8352_v44 = vpop.f32.mrf.mxu1 }
 0x482   : > { %v6096_v31 = vpop.f32.mrf.mxu0  ;;  %v8356_v51 = vpop.f32.mrf.mxu1 }
 0x483   : > { %v8354_v17 = vadd.f32 %v6096_v31, %v6095_v60 }
 0x484   : > { %v6098_v62 = vpop.f32.mrf.mxu0  ;;  %v8360_v9 = vpop.f32.mrf.mxu1 }
 0x485   : > { %8665 = vst [vmem:[#allocation5_spill] sm:$0xff] %v8354_v17  ;;  %v6161_v17 = vadd.f32 %v8322_v20, %v8320_v53  ;;  %v6155_v53 = vadd.f32 %v8310_v49, %v8308_v35 }
 0x486   : > { %v6099_v46 = vpop.f32.mrf.mxu0  ;;  %v8364_v41 = vpop.f32.mrf.mxu1 }
 0x487   : > { %v8358_v34 = vadd.f32 %v6099_v46, %v6098_v62  ;;  %v5173_v35 = vadd.f32 %v6161_v17, %v8273_v6 }
 0x488   : > { %v6101_v10 = vpop.f32.mrf.mxu0  ;;  %v8368_v58 = vpop.f32.mrf.mxu1 }
 0x489   : > { %8666 = vst [vmem:[#allocation6_spill] sm:$0xff] %v8358_v34 }
 0x48a   : > { %v6102_v22 = vpop.f32.mrf.mxu0  ;;  %v8372_v31 = vpop.f32.mrf.mxu1 }
 0x48b   : > { %v8362_v56 = vadd.f32 %v6102_v22, %v6101_v10 }
 0x48c   : > { %v6104_v12 = vpop.f32.mrf.mxu0  ;;  %v8376_v22 = vpop.f32.mrf.mxu1 }
 0x48d   : > { %8667 = vst [vmem:[#allocation7_spill] sm:$0xff] %v8362_v56 }
 0x48e   : > { %v6105_v7 = vpop.f32.mrf.mxu0 }
 0x48f   : > { %v8366_v19 = vadd.f32 %v6105_v7, %v6104_v12  ;;  %v8382_v7 = vpop.f32.mrf.mxu1 }
 0x490   : > { %v6107_v42 = vpop.f32.mrf.mxu0 }
 0x491   : > { %8668 = vst [vmem:[#allocation8_spill] sm:$0xff] %v8366_v19 }
 0x492   : > { %v6108_v2 = vpop.f32.mrf.mxu0 }
 0x493   : > { %v8370_v55 = vadd.f32 %v6108_v2, %v6107_v42  ;;  %v6146_v42 = vadd.f32 %v8292_v1, %v8288_v27  ;;  %v8404_v27 = vld [vmem:[%s8661_s6] ss:$0 sm:$0xff]  ;;  %v6037_v1 = vadd.f32 %v8265_v18, %v8263_v14  ;;  %v6152_v18 = vadd.f32 %v8304_v61, %v8302_v29 }
 0x494   : > { %v6110_v60 = vpop.f32.mrf.mxu0 }
 0x495   : > { %8669 = vst [vmem:[#allocation9_spill] sm:$0xff] %v8370_v55 }
 0x496   : > { %v6111_v62 = vpop.f32.mrf.mxu0 }
 0x497   : > { %v8374_v46 = vadd.f32 %v6111_v62, %v6110_v60 }
 0x498   : > { %v6113_v10 = vpop.f32.mrf.mxu0 }
 0x499   : > { %8670 = vst [vmem:[#allocation10_spill] sm:$0xff] %v8374_v46 }
 0x49a   : > { %v6114_v56 = vpop.f32.mrf.mxu0 }
 0x49b   : > { %v8378_v34 = vadd.f32 %v6114_v56, %v6113_v10  ;;  %v6149_v56 = vadd.f32 %v8298_v59, %v8296_v54  ;;  %v6158_v54 = vadd.f32 %v8316_v16, %v8314_v26 }
 0x49c   : > { %v8380_v12 = vpop.f32.mrf.mxu0 }
 0x49d   : > { %8671 = vst [vmem:[#allocation11_spill] sm:$0xff] %v8378_v34  ;;  %8672 = vst [vmem:[#allocation12_spill] sm:$0xff] %v8380_v12  ;;  %v5154_v34 = vadd.f32 %v6146_v42, %v8141_v50  ;;  %v8415_v50 = vld [vmem:[%s8662_s7] ss:$0 sm:$0xff]  ;;  %v5157_v14 = vadd.f32 %v6149_v56, %v6037_v1  ;;  %v5170_v29 = vadd.f32 %v6158_v54, %v8271_v28 }
 0x49e   : > { %v8384_v19 = vpop.f32.mrf.mxu0 }
 0x49f   : > { %8673 = vst [vmem:[#allocation13_spill] sm:$0xff] %v8384_v19 }
 0x4a0   : > { %v8388_v2 = vpop.f32.mrf.mxu1  ;;  %v8390_v55 = vpop.f32.mrf.mxu0 }
 0x4a1   : > { %8674 = vst [vmem:[#allocation14_spill] sm:$0xff] %v8390_v55 }
 0x4a2   : > { %v8392_v60 = vpop.f32.mrf.mxu1  ;;  %v8394_v62 = vpop.f32.mrf.mxu0 }
 0x4a3   : > { %8675 = vst [vmem:[#allocation15_spill] sm:$0xff] %v8394_v62 }
 0x4a4   : > { %v8398_v10 = vpop.f32.mrf.mxu1  ;;  %v6552_v46 = vpop.f32.mrf.mxu0 }
 0x4a5   : > { %v5315_v55 = vadd.f32 %v6552_v46, %v5154_v34 }
 0x4a6   : > { %v8408_v19 = vpop.f32.mrf.mxu1  ;;  %v5306_v59 = vpop.f32.mrf.mxu0 }
 0x4a7   : > { %v5442_v42 = vmul.f32 %v8404_v27, %v5315_v55  ;;  %v5307_v62 = vadd.f32 %v5306_v59, %v8282_v38  ;;  %v5162_v59 = vadd.f32 %v6152_v18, %v8267_v8 }
 0x4a8   : > { %v8419_v12 = vpop.f32.mrf.mxu1  ;;  %v6553_v34 = vpop.f32.mrf.mxu0 }
 0x4a9   : > { %v5481_v46 = vadd.f32 %v8415_v50, %v5442_v42  ;;  %v5440_v26 = vmul.f32 %v8404_v27, %v5307_v62  ;;  %v5318_v16 = vadd.f32 %v6553_v34, %v5157_v14 }
 0x4aa   : > { %v8425_v30 = vpop.f32.mrf.mxu1  ;;  %v5309_v38 = vpop.f32.mrf.mxu0 }
 0x4ab   : > { %v5513_v61 = vmax.f32 %v5481_v46, 0.0  ;;  %v5479_v55 = vadd.f32 %v8415_v50, %v5440_v26  ;;  %v5443_v62 = vmul.f32 %v8404_v27, %v5318_v16  ;;  %v5310_v56 = vadd.f32 %v5309_v38, %v8290_v5 }
 0x4ac   : > { %v8440_v1 = vpop.f32.mrf.mxu1  ;;  %v6556_v20 = vpop.f32.mrf.mxu0  ;;  %v6170_v5 = vadd.f32 %v8342_v13, %v8338_v48  ;;  %v6164_v38 = vadd.f32 %v8328_v24, %v8326_v43  ;;  %v5165_v48 = vadd.f32 %v6155_v53, %v8269_v21 }
 0x4ad   : > { %5545 = vst.msk [vmem:[%s8434_s19 + $0x10] sm:$0xff] %vm4901_vm7, %v5513_v61  ;;  %v5511_v42 = vmax.f32 %v5479_v55, 0.0  ;;  %v5482_v28 = vadd.f32 %v8415_v50, %v5443_v62  ;;  %v5441_v54 = vmul.f32 %v8404_v27, %v5310_v56  ;;  %v5331_v14 = vadd.f32 %v6556_v20, %v5170_v29 }
 0x4ae   : > { %v8449_v34 = vpop.f32.mrf.mxu1  ;;  %v5322_v46 = vpop.f32.mrf.mxu0  ;;  %v6173_v62 = vadd.f32 %v8348_v23, %v8344_v11  ;;  %v5186_v43 = vadd.f32 %v6170_v5, %v8279_v25  ;;  %v5178_v11 = vadd.f32 %v6164_v38, %v8275_v40 }
 0x4af   : > { %5543 = vst.msk [vmem:[%s8434_s19] sm:$0xff] %vm4901_vm7, %v5511_v42  ;;  %v5514_v8 = vmax.f32 %v5482_v28, 0.0  ;;  %v5480_v49 = vadd.f32 %v8415_v50, %v5441_v54  ;;  %v5446_v18 = vmul.f32 %v8404_v27, %v5331_v14  ;;  %v5323_v26 = vadd.f32 %v5322_v46, %v5162_v59 }
 0x4b0   : > { %v8458_v16 = vpop.f32.mrf.mxu1  ;;  %v6557_v29 = vpop.f32.mrf.mxu0  ;;  %v6167_v42 = vadd.f32 %v8334_v63, %v8332_v45  ;;  %v6182_v46 = vadd.f32 %v8372_v31, %v8368_v58  ;;  %v5189_v45 = vadd.f32 %v6173_v62, %v8286_v33 }
 0x4b1   : > { %5546 = vst.msk [vmem:[%s8434_s19 + $0x18] sm:$0xff] %vm4901_vm7, %v5514_v8  ;;  %v5512_v6 = vmax.f32 %v5480_v49, 0.0  ;;  %v5485_v13 = vadd.f32 %v8415_v50, %v5446_v18  ;;  %v5444_v17 = vmul.f32 %v8404_v27, %v5323_v26  ;;  %v5334_v61 = vadd.f32 %v6557_v29, %v5173_v35 }
 0x4b2   : > { %v8467_v55 = vpop.f32.mrf.mxu1  ;;  %v5325_v56 = vpop.f32.mrf.mxu0  ;;  %v6176_v26 = vadd.f32 %v8356_v51, %v8352_v44  ;;  %v5181_v58 = vadd.f32 %v6167_v42, %v8277_v32  ;;  %v6194_v42 = vadd.f32 %v8425_v30, %v8419_v12 }
 0x4b3   : > { %5544 = vst.msk [vmem:[%s8434_s19 + $0x8] sm:$0xff] %vm4901_vm7, %v5512_v6  ;;  %v5517_v21 = vmax.f32 %v5485_v13, 0.0  ;;  %v5483_v24 = vadd.f32 %v8415_v50, %v5444_v17  ;;  %v5447_v53 = vmul.f32 %v8404_v27, %v5334_v61  ;;  %v5326_v20 = vadd.f32 %v5325_v56, %v5165_v48 }
 0x4b4   : > { %v8476_v59 = vpop.f32.mrf.mxu1  ;;  %v6560_v28 = vpop.f32.mrf.mxu0  ;;  %v6185_v13 = vadd.f32 %v8382_v7, %v8376_v22  ;;  %v5202_v61 = vadd.f32 %v6182_v46, %v8306_v47  ;;  %v5194_v22 = vadd.f32 %v6176_v26, %v8294_v36 }
 0x4b5   : > { %5549 = vst.msk [vmem:[%s8434_s19 + $0x30] sm:$0xff] %vm4901_vm7, %v5517_v21  ;;  %v5515_v25 = vmax.f32 %v5483_v24, 0.0  ;;  %v5486_v23 = vadd.f32 %v8415_v50, %v5447_v53  ;;  %v5445_v54 = vmul.f32 %v8404_v27, %v5326_v20  ;;  %v5347_v14 = vadd.f32 %v6560_v28, %v5186_v43 }
 0x4b6   : > { %v8485_v5 = vpop.f32.mrf.mxu1  ;;  %v5338_v35 = vpop.f32.mrf.mxu0  ;;  %v6179_v43 = vadd.f32 %v8364_v41, %v8360_v9 }
 0x4b7   : > { %5547 = vst.msk [vmem:[%s8434_s19 + $0x20] sm:$0xff] %vm4901_vm7, %v5515_v25  ;;  %v5518_v40 = vmax.f32 %v5486_v23, 0.0  ;;  %v5484_v63 = vadd.f32 %v8415_v50, %v5445_v54  ;;  %v5450_v8 = vmul.f32 %v8404_v27, %v5347_v14  ;;  %v5339_v49 = vadd.f32 %v5338_v35, %v5178_v11 }
 0x4b8   : > { %v8494_v18 = vpop.f32.mrf.mxu1  ;;  %v6561_v38 = vpop.f32.mrf.mxu0  ;;  %v5205_v11 = vadd.f32 %v6185_v13, %v8312_v57  ;;  %v6188_v54 = vadd.f32 %v8392_v60, %v8388_v2  ;;  %v5197_v30 = vadd.f32 %v6179_v43, %v8300_v15  ;;  %v5218_v2 = vadd.f32 %v6194_v42, %v8330_v37 }
 0x4b9   : > { %5550 = vst.msk [vmem:[%s8434_s19 + $0x38] sm:$0xff] %vm4901_vm7, %v5518_v40  ;;  %v5516_v33 = vmax.f32 %v5484_v63, 0.0  ;;  %v5489_v31 = vadd.f32 %v8415_v50, %v5450_v8  ;;  %v5448_v29 = vmul.f32 %v8404_v27, %v5339_v49  ;;  %v5350_v48 = vadd.f32 %v6561_v38, %v5189_v45 }
 0x4ba   : > { %v6205_v6 = vpop.f32.mrf.mxu1  ;;  %v5341_v17 = vpop.f32.mrf.mxu0  ;;  %v6197_v40 = vadd.f32 %v8449_v34, %v8440_v1  ;;  %v6191_v38 = vadd.f32 %v8408_v19, %v8398_v10  ;;  %v5210_v1 = vadd.f32 %v6188_v54, %v8318_v39  ;;  %v6203_v42 = vadd.f32 %v8485_v5, %v8476_v59  ;;  %v8676_v54 = vld [vmem:[#allocation5_spill] sm:$0xff] }
 0x4bb   : > { %5548 = vst.msk [vmem:[%s8434_s19 + $0x28] sm:$0xff] %vm4901_vm7, %v5516_v33  ;;  %v5521_v44 = vmax.f32 %v5489_v31, 0.0  ;;  %v5487_v32 = vadd.f32 %v8415_v50, %v5448_v29  ;;  %v5451_v51 = vmul.f32 %v8404_v27, %v5350_v48  ;;  %v5342_v62 = vadd.f32 %v5341_v17, %v5181_v58 }
 0x4bc   : > { %v8510_v56 = vpop.f32.mrf.mxu1  ;;  %v6564_v21 = vpop.f32.mrf.mxu0  ;;  %v6206_v48 = vadd.f32 %v6205_v6, %v8494_v18  ;;  %v5221_v17 = vadd.f32 %v6197_v40, %v8336_v0 }
 0x4bd   : > { %5553 = vst.msk [vmem:[%s8434_s19 + $0x50] sm:$0xff] %vm4901_vm7, %v5521_v44  ;;  %v5519_v47 = vmax.f32 %v5487_v32, 0.0  ;;  %v5490_v7 = vadd.f32 %v8415_v50, %v5451_v51  ;;  %v5449_v24 = vmul.f32 %v8404_v27, %v5342_v62  ;;  %v5363_v53 = vadd.f32 %v6564_v21, %v5202_v61 }
 0x4be   : > { %v6208_v20 = vpop.f32.mrf.mxu1  ;;  %v5354_v28 = vpop.f32.mrf.mxu0  ;;  %v6200_v32 = vadd.f32 %v8467_v55, %v8458_v16  ;;  %v5213_v62 = vadd.f32 %v6191_v38, %v8324_v3 }
 0x4bf   : > { %5551 = vst.msk [vmem:[%s8434_s19 + $0x40] sm:$0xff] %vm4901_vm7, %v5519_v47  ;;  %v5522_v9 = vmax.f32 %v5490_v7, 0.0  ;;  %v5488_v36 = vadd.f32 %v8415_v50, %v5449_v24  ;;  %v5454_v41 = vmul.f32 %v8404_v27, %v5363_v53  ;;  %v5355_v25 = vadd.f32 %v5354_v28, %v5194_v22 }
 0x4c0   : > { %v8526_v23 = vpop.f32.mrf.mxu1  ;;  %v6565_v14 = vpop.f32.mrf.mxu0  ;;  %v6209_v22 = vadd.f32 %v6208_v20, %v8510_v56  ;;  %v5234_v7 = vadd.f32 %v6206_v48, %v8350_v52 }
 0x4c1   : > { %5554 = vst.msk [vmem:[%s8434_s19 + $0x58] sm:$0xff] %vm4901_vm7, %v5522_v9  ;;  %v5520_v57 = vmax.f32 %v5488_v36, 0.0  ;;  %v5493_v12 = vadd.f32 %v8415_v50, %v5454_v41  ;;  %v5452_v46 = vmul.f32 %v8404_v27, %v5355_v25  ;;  %v5366_v35 = vadd.f32 %v6565_v14, %v5205_v11 }
 0x4c2   : > { %v8535_v45 = vpop.f32.mrf.mxu1  ;;  %v5357_v63 = vpop.f32.mrf.mxu0  ;;  %v5226_v11 = vadd.f32 %v6200_v32, %v8340_v4  ;;  %v5237_v14 = vadd.f32 %v6209_v22, %v8676_v54  ;;  %v8681_v22 = vld [vmem:[#allocation7_spill] sm:$0xff] }
 0x4c3   : > { %5552 = vst.msk [vmem:[%s8434_s19 + $0x48] sm:$0xff] %vm4901_vm7, %v5520_v57  ;;  %v5525_v15 = vmax.f32 %v5493_v12, 0.0  ;;  %v5491_v60 = vadd.f32 %v8415_v50, %v5452_v46  ;;  %v5455_v8 = vmul.f32 %v8404_v27, %v5366_v35  ;;  %v5358_v49 = vadd.f32 %v5357_v63, %v5197_v30  ;;  %v8677_v35 = vld [vmem:[#allocation4_spill] sm:$0xff] }
 0x4c4   : > { %v8544_v26 = vpop.f32.mrf.mxu1  ;;  %v6568_v58 = vpop.f32.mrf.mxu0  ;;  %v6212_v12 = vadd.f32 %v8535_v45, %v8526_v23  ;;  %v5229_v40 = vadd.f32 %v6203_v42, %v8677_v35  ;;  %v8683_v42 = vld [vmem:[#allocation13_spill] sm:$0xff]  ;;  %v8686_v35 = vld [vmem:[#allocation15_spill] sm:$0xff] }
 0x4c5   : > { %5557 = vst.msk [vmem:[%s8434_s19 + $0x70] sm:$0xff] %vm4901_vm7, %v5525_v15  ;;  %v5523_v37 = vmax.f32 %v5491_v60, 0.0  ;;  %v5494_v34 = vadd.f32 %v8415_v50, %v5455_v8  ;;  %v5453_v33 = vmul.f32 %v8404_v27, %v5358_v49  ;;  %v5379_v31 = vadd.f32 %v6568_v58, %v5218_v2  ;;  %v8678_v58 = vld [vmem:[#allocation8_spill] sm:$0xff] }
 0x4c6   : > { %v8553_v29 = vpop.f32.mrf.mxu1  ;;  %v5370_v13 = vpop.f32.mrf.mxu0 }
 0x4c7   : > { %5555 = vst.msk [vmem:[%s8434_s19 + $0x60] sm:$0xff] %vm4901_vm7, %v5523_v37  ;;  %v5526_v19 = vmax.f32 %v5494_v34, 0.0  ;;  %v5492_v39 = vadd.f32 %v8415_v50, %v5453_v33  ;;  %v5458_v10 = vmul.f32 %v8404_v27, %v5379_v31  ;;  %v5371_v61 = vadd.f32 %v5370_v13, %v5210_v1  ;;  %v8679_v13 = vld [vmem:[#allocation6_spill] sm:$0xff] }
 0x4c8   : > { %v6216_v44 = vpop.f32.mrf.mxu1  ;;  %v6569_v51 = vpop.f32.mrf.mxu0  ;;  %v6215_v31 = vadd.f32 %v8553_v29, %v8544_v26 }
 0x4c9   : > { %5558 = vst.msk [vmem:[%s8434_s19 + $0x78] sm:$0xff] %vm4901_vm7, %v5526_v19  ;;  %v5524_v18 = vmax.f32 %v5492_v39, 0.0  ;;  %v5497_v0 = vadd.f32 %v8415_v50, %v5458_v10  ;;  %v5456_v6 = vmul.f32 %v8404_v27, %v5371_v61  ;;  %v5382_v43 = vadd.f32 %v6569_v51, %v5221_v17  ;;  %v8680_v51 = vld [vmem:[#allocation9_spill] sm:$0xff] }
 0x4ca   : > { %v6217_v21 = vpop.f32.mrf.mxu1  ;;  %v5373_v47 = vpop.f32.mrf.mxu0  ;;  %v5242_v17 = vadd.f32 %v6212_v12, %v8679_v13 }
 0x4cb   : > { %5556 = vst.msk [vmem:[%s8434_s19 + $0x68] sm:$0xff] %vm4901_vm7, %v5524_v18  ;;  %v5529_v16 = vmax.f32 %v5497_v0, 0.0  ;;  %v5495_v3 = vadd.f32 %v8415_v50, %v5456_v6  ;;  %v5459_v55 = vmul.f32 %v8404_v27, %v5382_v43  ;;  %v5374_v24 = vadd.f32 %v5373_v47, %v5213_v62 }
 0x4cc   : > { %v6219_v53 = vpop.f32.mrf.mxu1  ;;  %v6572_v28 = vpop.f32.mrf.mxu0  ;;  %v6218_v41 = vadd.f32 %v6217_v21, %v6216_v44  ;;  %v5245_v47 = vadd.f32 %v6215_v31, %v8681_v22 }
 0x4cd   : > { %5561 = vst.msk [vmem:[%s8434_s19 + $0x90] sm:$0xff] %vm4901_vm7, %v5529_v16  ;;  %v5527_v56 = vmax.f32 %v5495_v3, 0.0  ;;  %v5498_v52 = vadd.f32 %v8415_v50, %v5459_v55  ;;  %v5457_v20 = vmul.f32 %v8404_v27, %v5374_v24  ;;  %v5395_v9 = vadd.f32 %v6572_v28, %v5234_v7 }
 0x4ce   : > { %v6220_v36 = vpop.f32.mrf.mxu1  ;;  %v5386_v25 = vpop.f32.mrf.mxu0  ;;  %v5250_v1 = vadd.f32 %v6218_v41, %v8678_v58 }
 0x4cf   : > { %5559 = vst.msk [vmem:[%s8434_s19 + $0x80] sm:$0xff] %vm4901_vm7, %v5527_v56  ;;  %v5530_v59 = vmax.f32 %v5498_v52, 0.0  ;;  %v5496_v5 = vadd.f32 %v8415_v50, %v5457_v20  ;;  %v5462_v4 = vmul.f32 %v8404_v27, %v5395_v9  ;;  %v5387_v30 = vadd.f32 %v5386_v25, %v5226_v11 }
 0x4d0   : > { %v6222_v57 = vpop.f32.mrf.mxu1  ;;  %v6573_v46 = vpop.f32.mrf.mxu0  ;;  %v6221_v49 = vadd.f32 %v6220_v36, %v6219_v53  ;;  %v8682_v53 = vld [vmem:[#allocation12_spill] sm:$0xff] }
 0x4d1   : > { %5562 = vst.msk [vmem:[%s8434_s19 + $0x98] sm:$0xff] %vm4901_vm7, %v5530_v59  ;;  %v5528_v63 = vmax.f32 %v5496_v5, 0.0  ;;  %v5501_v2 = vadd.f32 %v8415_v50, %v5462_v4  ;;  %v5460_v15 = vmul.f32 %v8404_v27, %v5387_v30  ;;  %v5398_v60 = vadd.f32 %v6573_v46, %v5237_v14  ;;  %v8684_v14 = vld [vmem:[#allocation10_spill] sm:$0xff] }
 0x4d2   : > { %v6223_v8 = vpop.f32.mrf.mxu1  ;;  %v5389_v38 = vpop.f32.mrf.mxu0  ;;  %v5253_v62 = vadd.f32 %v6221_v49, %v8680_v51  ;;  %v6118_v28 = vadd.f32 %v8683_v42, %v8682_v53  ;;  %v8685_v46 = vld [vmem:[#allocation14_spill] sm:$0xff] }
 0x4d3   : > { %5560 = vst.msk [vmem:[%s8434_s19 + $0x88] sm:$0xff] %vm4901_vm7, %v5528_v63  ;;  %v5533_v23 = vmax.f32 %v5501_v2, 0.0  ;;  %v5499_v45 = vadd.f32 %v8415_v50, %v5460_v15  ;;  %v5463_v37 = vmul.f32 %v8404_v27, %v5398_v60  ;;  %v5390_v34 = vadd.f32 %v5389_v38, %v5229_v40 }
 0x4d4   : > { %v6225_v33 = vpop.f32.mrf.mxu1  ;;  %v6576_v48 = vpop.f32.mrf.mxu0  ;;  %v6224_v43 = vadd.f32 %v6223_v8, %v6222_v57  ;;  %v6121_v40 = vadd.f32 %v8686_v35, %v8685_v46 }
 0x4d5   : > { %5565 = vst.msk [vmem:[%s8434_s19 + $0xb0] sm:$0xff] %vm4901_vm7, %v5533_v23  ;;  %v5531_v19 = vmax.f32 %v5499_v45, 0.0  ;;  %v5502_v39 = vadd.f32 %v8415_v50, %v5463_v37  ;;  %v5461_v10 = vmul.f32 %v8404_v27, %v5390_v34  ;;  %v5411_v61 = vadd.f32 %v6576_v48, %v5250_v1  ;;  %v8687_v37 = vld [vmem:[#allocation11_spill] sm:$0xff] }
 0x4d6   : > { %v6226_v44 = vpop.f32.mrf.mxu1  ;;  %v5402_v32 = vpop.f32.mrf.mxu0  ;;  %v5258_v59 = vadd.f32 %v6224_v43, %v8684_v14 }
 0x4d7   : > { %5563 = vst.msk [vmem:[%s8434_s19 + $0xa0] sm:$0xff] %vm4901_vm7, %v5531_v19  ;;  %v5534_v18 = vmax.f32 %v5502_v39, 0.0  ;;  %v5500_v26 = vadd.f32 %v8415_v50, %v5461_v10  ;;  %v5466_v29 = vmul.f32 %v8404_v27, %v5411_v61  ;;  %v5403_v0 = vadd.f32 %v5402_v32, %v5242_v17 }
 0x4d8   : > { %v6228_v6 = vpop.f32.mrf.mxu1  ;;  %v6577_v21 = vpop.f32.mrf.mxu0  ;;  %v6227_v5 = vadd.f32 %v6226_v44, %v6225_v33 }
 0x4d9   : > { %5566 = vst.msk [vmem:[%s8434_s19 + $0xb8] sm:$0xff] %vm4901_vm7, %v5534_v18  ;;  %v5532_v7 = vmax.f32 %v5500_v26, 0.0  ;;  %v5505_v16 = vadd.f32 %v8415_v50, %v5466_v29  ;;  %v5464_v3 = vmul.f32 %v8404_v27, %v5403_v0  ;;  %v5414_v55 = vadd.f32 %v6577_v21, %v5253_v62 }
 0x4da   : > { %v6229_v24 = vpop.f32.mrf.mxu1  ;;  %v5405_v56 = vpop.f32.mrf.mxu0  ;;  %v5261_v34 = vadd.f32 %v6227_v5, %v8687_v37 }
 0x4db   : > { %v6230_v11 = vadd.f32 %v6229_v24, %v6228_v6  ;;  %5564 = vst.msk [vmem:[%s8434_s19 + $0xa8] sm:$0xff] %vm4901_vm7, %v5532_v7  ;;  %v5537_v52 = vmax.f32 %v5505_v16, 0.0  ;;  %v5503_v20 = vadd.f32 %v8415_v50, %v5464_v3  ;;  %v5467_v9 = vmul.f32 %v8404_v27, %v5414_v55 }
 0x4dc   : > { %v5406_v36 = vadd.f32 %v5405_v56, %v5245_v47  ;;  %v6231_v41 = vpop.f32.mrf.mxu1  ;;  %v6580_v54 = vpop.f32.mrf.mxu0 }
 0x4dd   : > { %v5266_v25 = vadd.f32 %v6230_v11, %v6118_v28  ;;  %5569 = vst.msk [vmem:[%s8434_s19 + $0xd0] sm:$0xff] %vm4901_vm7, %v5537_v52  ;;  %v5535_v4 = vmax.f32 %v5503_v20, 0.0  ;;  %v5506_v30 = vadd.f32 %v8415_v50, %v5467_v9 }
 0x4de   : > { %v5465_v57 = vmul.f32 %v8404_v27, %v5406_v36  ;;  %v6232_v12 = vpop.f32.mrf.mxu1  ;;  %v5418_v15 = vpop.f32.mrf.mxu0 }
 0x4df   : > { %v5427_v63 = vadd.f32 %v6580_v54, %v5266_v25  ;;  %v6233_v2 = vadd.f32 %v6232_v12, %v6231_v41  ;;  %5567 = vst.msk [vmem:[%s8434_s19 + $0xc0] sm:$0xff] %vm4901_vm7, %v5535_v4  ;;  %v5538_v60 = vmax.f32 %v5506_v30, 0.0  ;;  %v5419_v49 = vadd.f32 %v5418_v15, %v5258_v59 }
 0x4e0   : > { %v5504_v8 = vadd.f32 %v8415_v50, %v5465_v57  ;;  %v6581_v1 = vpop.f32.mrf.mxu0 }
 0x4e1   : > { %v5470_v38 = vmul.f32 %v8404_v27, %v5427_v63  ;;  %v5269_v58 = vadd.f32 %v6233_v2, %v6121_v40  ;;  %5570 = vst.msk [vmem:[%s8434_s19 + $0xd8] sm:$0xff] %vm4901_vm7, %v5538_v60  ;;  %v5468_v45 = vmul.f32 %v8404_v27, %v5419_v49 }
 0x4e2   : > { %v5536_v23 = vmax.f32 %v5504_v8, 0.0  ;;  %v5421_v48 = vpop.f32.mrf.mxu0 }
 0x4e3   : > { %v5509_v33 = vadd.f32 %v8415_v50, %v5470_v38  ;;  %v5430_v31 = vadd.f32 %v6581_v1, %v5269_v58  ;;  %v5507_v13 = vadd.f32 %v8415_v50, %v5468_v45  ;;  %v5422_v17 = vadd.f32 %v5421_v48, %v5261_v34 }
 0x4e4   : > { %5568 = vst.msk [vmem:[%s8434_s19 + $0xc8] sm:$0xff] %vm4901_vm7, %v5536_v23 }
 0x4e5   : > { %v5541_v19 = vmax.f32 %v5509_v33, 0.0  ;;  %v5471_v39 = vmul.f32 %v8404_v27, %v5430_v31  ;;  %v5539_v10 = vmax.f32 %v5507_v13, 0.0  ;;  %v5469_v61 = vmul.f32 %v8404_v27, %v5422_v17 }
 0x4e7   : > { %5573 = vst.msk [vmem:[%s8434_s19 + $0xf0] sm:$0xff] %vm4901_vm7, %v5541_v19  ;;  %v5510_v44 = vadd.f32 %v8415_v50, %v5471_v39  ;;  %5571 = vst.msk [vmem:[%s8434_s19 + $0xe0] sm:$0xff] %vm4901_vm7, %v5539_v10  ;;  %v5508_v32 = vadd.f32 %v8415_v50, %v5469_v61 }
 0x4e9   : > { %v5542_v51 = vmax.f32 %v5510_v44, 0.0  ;;  %v5540_v62 = vmax.f32 %v5508_v32, 0.0 }
 0x4eb   : > { %5574 = vst.msk [vmem:[%s8434_s19 + $0xf8] sm:$0xff] %vm4901_vm7, %v5542_v51  ;;  %5572 = vst.msk [vmem:[%s8434_s19 + $0xe8] sm:$0xff] %vm4901_vm7, %v5540_v62 }
 0x4ec PF: > { %s18_s27 = sadd.s32 1, %s6757_s27  }
 0x4ed   : > { %p15_p4 = scmp.ge.s32.totalorder %s18_s27, 4  }
 0x4ef   :  { %17 = sbr.rel (!%p15_p4) target bundleno = 1 (0x1), region = 84 }

</bundles_post_ra>
